<compile_context>
chip_gen: v7x
topology: tpu7x:2x2x1
jax: 0.10.0
libtpu: 0.0.40
codegen_flags: <defaults>
</compile_context>

<pallas_src>
import functools

import jax
import jax.numpy as jnp
from jax import lax
from jax.experimental import pallas as pl
from jax.experimental.pallas import tpu as pltpu


def _pick_tile(n, cap):
    """Largest multiple of 8 that divides n and is <= cap; fall back to full n."""
    for t in (512, 256, 128, 64, 32, 16, 8):
        if t <= cap and t <= n and n % t == 0:
            return t
    return n


# ---------------------------------------------------------------------------
# Fused kernel: QKV projection + causal attention, one launch.
# ---------------------------------------------------------------------------
def _fused_head_kernel(x_ref, wq_ref, wk_ref, wv_ref, o_ref, k_scr, v_scr, *, tq):
    """Grid (B, nq). x_ref holds the full (T, C) block for batch b (resident across qi);
    wq/wk/wv are resident bf16 weights (wq already carries the C**0.5 scale)."""
    qi = pl.program_id(1)

    # --- K / V projection: once per batch element, kept in VMEM scratch. ---
    @pl.when(qi == 0)
    def _project_kv():
        xb = x_ref[0]                                                     # (T, C) bf16
        k = jnp.dot(xb, wk_ref[...], preferred_element_type=jnp.float32)  # (T, H) f32
        v = jnp.dot(xb, wv_ref[...], preferred_element_type=jnp.float32)  # (T, H) f32
        k_scr[...] = k.astype(k_scr.dtype)
        v_scr[...] = v.astype(v_scr.dtype)

    # --- Q projection for this q tile (slice of the already-resident x block). ---
    row0 = qi * tq
    xq = x_ref[0, pl.ds(pl.multiple_of(row0, tq), tq), :]                 # (tq, C) bf16
    q = jnp.dot(xq, wq_ref[...], preferred_element_type=jnp.float32)      # (tq, H) f32
    q = q.astype(jnp.bfloat16)                                            # scale already folded

    # --- scores = q @ k^T (contract last dims directly; no k.T materialization). ---
    s = lax.dot_general(q, k_scr[...], (((1,), (1,)), ((), ())),
                        preferred_element_type=jnp.float32)               # (tq, T) f32

    # --- Causal mask: one mask per q tile (K/V resident -> no per-kv-step masking). ---
    T = s.shape[1]
    row = row0 + lax.broadcasted_iota(jnp.int32, (tq, T), 0)
    col = lax.broadcasted_iota(jnp.int32, (tq, T), 1)
    s = jnp.where(col <= row, s, -jnp.inf)

    # --- Single-pass softmax (every row has >= 1 unmasked column -> no -inf NaNs). ---
    m = jnp.max(s, axis=-1, keepdims=True)
    p = jnp.exp(s - m)
    l = jnp.sum(p, axis=-1, keepdims=True)

    # TODO(synk): training-mode dropout(p=0.2) on the attention weights would use
    # pltpu.prng_seed / pltpu.prng_random_bits; eval mode is identity, as implemented.

    o = lax.dot_general(p.astype(jnp.bfloat16), v_scr[...], (((1,), (0,)), ((), ())),
                        preferred_element_type=jnp.float32)               # (tq, H) f32
    inv_l = pl.reciprocal(l, approx=True)                                 # EUP slot, off the VALU
    o_ref[0] = (o * inv_l).astype(o_ref.dtype)


def prepare_head_weights(wq, wk, wv, n_embd):
    """One-time weight preparation, hoisted out of the per-call path:
    fold the module's C**0.5 scale into the query projection and cast to bf16."""
    scale = float(n_embd) ** 0.5   # exactly as in the module: wei = q @ k^T * C**0.5
    return ((wq * scale).astype(jnp.bfloat16),
            wk.astype(jnp.bfloat16),
            wv.astype(jnp.bfloat16))


@jax.jit
def head_forward(x, wq_scaled, wk, wv):
    """x: (B, T, C) f32; weights pre-transposed (C, H), already prepared by
    prepare_head_weights. Returns (B, T, H) in x.dtype."""
    B, T, C = x.shape
    H = wq_scaled.shape[1]
    tq = _pick_tile(T, 256)     # 256 rows per q tile; at T=256 -> nq=1 (single-pass softmax)
    nq = T // tq

    xb = x.astype(jnp.bfloat16)
    kernel = functools.partial(_fused_head_kernel, tq=tq)

    return pl.pallas_call(
        kernel,
        out_shape=jax.ShapeDtypeStruct((B, T, H), x.dtype),
        grid_spec=pltpu.PrefetchScalarGridSpec(
            num_scalar_prefetch=0,
            grid=(B, nq),
            in_specs=[
                pl.BlockSpec((1, T, C), lambda b, qi: (b, 0, 0)),   # x: resident per batch
                pl.BlockSpec((C, H), lambda b, qi: (0, 0)),          # wq (scale folded): resident
                pl.BlockSpec((C, H), lambda b, qi: (0, 0)),          # wk: resident
                pl.BlockSpec((C, H), lambda b, qi: (0, 0)),          # wv: resident
            ],
            out_specs=pl.BlockSpec((1, tq, H), lambda b, qi: (b, qi, 0)),
            scratch_shapes=[
                pltpu.VMEM((T, H), jnp.bfloat16),   # K, resident per batch element
                pltpu.VMEM((T, H), jnp.bfloat16),   # V, resident per batch element
            ],
        ),
        compiler_params=pltpu.CompilerParams(
            # Batch axis parallel (feeds both v7x TensorCores); q-tile axis must stay
            # sequential because K/V scratch is filled at qi == 0 and reused afterwards.
            dimension_semantics=("parallel", "arbitrary"),
            vmem_limit_bytes=32 * 1024 * 1024,  # footprint is < 2 MiB; keep the limit generous
        ),
    )(xb, wq_scaled, wk, wv)


def reference_head(x, wq, wk, wv):
    """Pure-JAX reference mirroring the kernel's precision policy (bf16 MXU inputs with the
    C**0.5 scale folded into wq, f32 accumulation, f32 softmax) so the comparison is tight."""
    B, T, C = x.shape
    H = wq.shape[1]
    scale = C ** 0.5
    xb = x.astype(jnp.bfloat16)
    wq_s = (wq * scale).astype(jnp.bfloat16)
    wk_b = wk.astype(jnp.bfloat16)
    wv_b = wv.astype(jnp.bfloat16)
    q = jnp.einsum("btc,ch->bth", xb, wq_s,
                   preferred_element_type=jnp.float32).astype(jnp.bfloat16)
    k = jnp.einsum("btc,ch->bth", xb, wk_b,
                   preferred_element_type=jnp.float32).astype(jnp.bfloat16)
    v = jnp.einsum("btc,ch->bth", xb, wv_b,
                   preferred_element_type=jnp.float32).astype(jnp.bfloat16)
    s = jnp.einsum("bqh,bkh->bqk", q, k, preferred_element_type=jnp.float32)
    mask = jnp.tril(jnp.ones((T, T), dtype=bool))
    s = jnp.where(mask[None, :, :], s, -jnp.inf)
    p = jax.nn.softmax(s, axis=-1)
    out = jnp.einsum("bqk,bkh->bqh", p.astype(jnp.bfloat16), v,
                     preferred_element_type=jnp.float32)
    return out.astype(x.dtype)


if __name__ == "__main__":
    # Shapes consistent with the module: block_size=256, n_embd=384, head_size=64.
    B, T, C, H = 2, 256, 384, 64

    key = jax.random.PRNGKey(0)
    kx, kq, kk, kv = jax.random.split(key, 4)

    x = jax.random.normal(kx, (B, T, C), dtype=jnp.float32)
    # Deterministic init mimicking nn.Linear's uniform(-1/sqrt(C), 1/sqrt(C)),
    # stored pre-transposed as (C, H).
    bound = 1.0 / (C ** 0.5)
    wq = jax.random.uniform(kq, (C, H), jnp.float32, -bound, bound)
    wk = jax.random.uniform(kk, (C, H), jnp.float32, -bound, bound)
    wv = jax.random.uniform(kv, (C, H), jnp.float32, -bound, bound)

    # One-time weight preparation (hoisted out of the per-call path).
    wq_s, wk_b, wv_b = prepare_head_weights(wq, wk, wv, C)

    out = jax.block_until_ready(head_forward(x, wq_s, wk_b, wv_b))
    ref = jax.block_until_ready(reference_head(x, wq, wk, wv))

    assert out.shape == (B, T, H)
    assert bool(jnp.isfinite(out).all()), "non-finite values in kernel output"
    max_diff = float(jnp.max(jnp.abs(out - ref)))
    assert jnp.allclose(out, ref, atol=2e-2, rtol=2e-2), (
        f"mismatch vs reference (max |diff| = {max_diff})")

    print("KERNEL_OK")
</pallas_src>

<mosaic_0001>
module attributes {stable_mosaic.version = 11 : i64} {
  func.func @_fused_head_kernel(%arg0: i32, %arg1: i32, %arg2: memref<1x256x384xbf16, #tpu.memory_space<vmem>>, %arg3: memref<384x64xbf16, #tpu.memory_space<vmem>>, %arg4: memref<384x64xbf16, #tpu.memory_space<vmem>>, %arg5: memref<384x64xbf16, #tpu.memory_space<vmem>>, %arg6: memref<1x256x64xf32, #tpu.memory_space<vmem>>, %arg7: memref<256x64xbf16, #tpu.memory_space<vmem>>, %arg8: memref<256x64xbf16, #tpu.memory_space<vmem>>) attributes {dimension_semantics = [#tpu.dimension_semantics<parallel>, #tpu.dimension_semantics<arbitrary>], iteration_bounds = array<i64: 2, 1>, scalar_prefetch = 0 : i64, scratch_operands = 2 : i64, tpu.core_type = #tpu.core_type<tc>, window_params = [{transform_indices = @transform_0, window_bounds = array<i64: 1, 256, 384>}, {pipeline_mode = #tpu.pipeline_mode<synchronous>, transform_indices = @transform_1, window_bounds = array<i64: 384, 64>}, {pipeline_mode = #tpu.pipeline_mode<synchronous>, transform_indices = @transform_2, window_bounds = array<i64: 384, 64>}, {pipeline_mode = #tpu.pipeline_mode<synchronous>, transform_indices = @transform_3, window_bounds = array<i64: 384, 64>}, {transform_indices = @transform_4, window_bounds = array<i64: 1, 256, 64>}]} {
    %c0_i32 = arith.constant 0 : i32
    %0 = arith.cmpi eq, %arg1, %c0_i32 : i32
    %1 = arith.extui %0 : i1 to i32
    %c0_i32_0 = arith.constant 0 : i32
    %2 = arith.cmpi ne, %1, %c0_i32_0 : i32
    scf.if %2 {
      %c0_16 = arith.constant 0 : index
      %c0_17 = arith.constant 0 : index
      %c0_18 = arith.constant 0 : index
      %36 = vector.load %arg2[%c0_16, %c0_17, %c0_18] : memref<1x256x384xbf16, #tpu.memory_space<vmem>>, vector<1x256x384xbf16>
      %37 = vector.shape_cast %36 : vector<1x256x384xbf16> to vector<256x384xbf16>
      %c0_19 = arith.constant 0 : index
      %c0_20 = arith.constant 0 : index
      %38 = vector.load %arg4[%c0_19, %c0_20] : memref<384x64xbf16, #tpu.memory_space<vmem>>, vector<384x64xbf16>
      %cst_21 = arith.constant dense<0.000000e+00> : vector<256x64xf32>
      %39 = tpu.matmul %37, %38, %cst_21 {dimension_numbers = #tpu.dot_dimension_numbers<[1], [0], [0], [1], [0, 0, 1, 1], [], []>} : vector<256x384xbf16>, vector<384x64xbf16>, vector<256x64xf32> -> vector<256x64xf32>
      %c0_22 = arith.constant 0 : index
      %c0_23 = arith.constant 0 : index
      %40 = vector.load %arg5[%c0_22, %c0_23] : memref<384x64xbf16, #tpu.memory_space<vmem>>, vector<384x64xbf16>
      %cst_24 = arith.constant dense<0.000000e+00> : vector<256x64xf32>
      %41 = tpu.matmul %37, %40, %cst_24 {dimension_numbers = #tpu.dot_dimension_numbers<[1], [0], [0], [1], [0, 0, 1, 1], [], []>} : vector<256x384xbf16>, vector<384x64xbf16>, vector<256x64xf32> -> vector<256x64xf32>
      %42 = arith.truncf %39 : vector<256x64xf32> to vector<256x64xbf16>
      %c0_25 = arith.constant 0 : index
      %c0_26 = arith.constant 0 : index
      %43 = vector.load %arg7[%c0_25, %c0_26] : memref<256x64xbf16, #tpu.memory_space<vmem>>, vector<256x64xbf16>
      tpu.vector_store %arg7[%c0_25, %c0_26], %42 {strides = array<i32>} : memref<256x64xbf16, #tpu.memory_space<vmem>>, vector<256x64xbf16>,
      %44 = arith.truncf %41 : vector<256x64xf32> to vector<256x64xbf16>
      %c0_27 = arith.constant 0 : index
      %c0_28 = arith.constant 0 : index
      %45 = vector.load %arg8[%c0_27, %c0_28] : memref<256x64xbf16, #tpu.memory_space<vmem>>, vector<256x64xbf16>
      tpu.vector_store %arg8[%c0_27, %c0_28], %44 {strides = array<i32>} : memref<256x64xbf16, #tpu.memory_space<vmem>>, vector<256x64xbf16>,
    } else {
    }
    %c256_i32 = arith.constant 256 : i32
    %3 = arith.muli %arg1, %c256_i32 : i32
    %4 = tpu.assume_multiple %3, 256 : i32
    %c0 = arith.constant 0 : index
    %5 = arith.index_cast %4 : i32 to index
    %c0_1 = arith.constant 0 : index
    %6 = vector.load %arg2[%c0, %5, %c0_1] : memref<1x256x384xbf16, #tpu.memory_space<vmem>>, vector<1x256x384xbf16>
    %7 = vector.shape_cast %6 : vector<1x256x384xbf16> to vector<256x384xbf16>
    %c0_2 = arith.constant 0 : index
    %c0_3 = arith.constant 0 : index
    %8 = vector.load %arg3[%c0_2, %c0_3] : memref<384x64xbf16, #tpu.memory_space<vmem>>, vector<384x64xbf16>
    %cst = arith.constant dense<0.000000e+00> : vector<256x64xf32>
    %9 = tpu.matmul %7, %8, %cst {dimension_numbers = #tpu.dot_dimension_numbers<[1], [0], [0], [1], [0, 0, 1, 1], [], []>} : vector<256x384xbf16>, vector<384x64xbf16>, vector<256x64xf32> -> vector<256x64xf32>
    %10 = arith.truncf %9 : vector<256x64xf32> to vector<256x64xbf16>
    %c0_4 = arith.constant 0 : index
    %c0_5 = arith.constant 0 : index
    %11 = vector.load %arg7[%c0_4, %c0_5] : memref<256x64xbf16, #tpu.memory_space<vmem>>, vector<256x64xbf16>
    %cst_6 = arith.constant dense<0.000000e+00> : vector<256x256xf32>
    %12 = tpu.matmul %10, %11, %cst_6 {dimension_numbers = #tpu.dot_dimension_numbers<[1], [1], [0], [0], [0, 0, 1, 0], [], []>} : vector<256x64xbf16>, vector<256x64xbf16>, vector<256x256xf32> -> vector<256x256xf32>
    %13 = tpu.iota {dimensions = array<i32: 0>} : vector<256x256xi32>
    %14 = vector.broadcast %3 : i32 to vector<256x256xi32>
    %15 = arith.addi %14, %13 : vector<256x256xi32>
    %16 = tpu.iota {dimensions = array<i32: 1>} : vector<256x256xi32>
    %17 = arith.cmpi sle, %16, %15 : vector<256x256xi32>
    %cst_7 = arith.constant 0xFF800000 : f32
    %18 = vector.broadcast %cst_7 : f32 to vector<256x256xf32>
    %19 = arith.select %17, %12, %18 : vector<256x256xi1>, vector<256x256xf32>
    %cst_8 = arith.constant dense<0xFF800000> : vector<256xf32>
    %20 = vector.multi_reduction <maximumf>, %19, %cst_8 [1] : vector<256x256xf32> to vector<256xf32>
    %21 = vector.shape_cast %20 : vector<256xf32> to vector<256x1xf32>
    %22 = vector.broadcast %21 : vector<256x1xf32> to vector<256x256xf32>
    %23 = arith.subf %19, %22 : vector<256x256xf32>
    %24 = math.exp %23 : vector<256x256xf32>
    %cst_9 = arith.constant dense<0.000000e+00> : vector<256xf32>
    %25 = vector.multi_reduction <add>, %24, %cst_9 [1] : vector<256x256xf32> to vector<256xf32>
    %26 = vector.shape_cast %25 : vector<256xf32> to vector<256x1xf32>
    %27 = arith.truncf %24 : vector<256x256xf32> to vector<256x256xbf16>
    %c0_10 = arith.constant 0 : index
    %c0_11 = arith.constant 0 : index
    %28 = vector.load %arg8[%c0_10, %c0_11] : memref<256x64xbf16, #tpu.memory_space<vmem>>, vector<256x64xbf16>
    %cst_12 = arith.constant dense<0.000000e+00> : vector<256x64xf32>
    %29 = tpu.matmul %27, %28, %cst_12 {dimension_numbers = #tpu.dot_dimension_numbers<[1], [0], [0], [1], [0, 0, 1, 1], [], []>} : vector<256x256xbf16>, vector<256x64xbf16>, vector<256x64xf32> -> vector<256x64xf32>
    %30 = tpu.reciprocal %26 {approx = true} : vector<256x1xf32> -> vector<256x1xf32>
    %31 = vector.broadcast %30 : vector<256x1xf32> to vector<256x64xf32>
    %32 = arith.mulf %29, %31 : vector<256x64xf32>
    %c0_13 = arith.constant 0 : index
    %c0_14 = arith.constant 0 : index
    %c0_15 = arith.constant 0 : index
    %33 = vector.load %arg6[%c0_13, %c0_14, %c0_15] : memref<1x256x64xf32, #tpu.memory_space<vmem>>, vector<1x256x64xf32>
    %34 = vector.shape_cast %33 : vector<1x256x64xf32> to vector<256x64xf32>
    %35 = vector.shape_cast %32 : vector<256x64xf32> to vector<1x256x64xf32>
    tpu.vector_store %arg6[%c0_13, %c0_14, %c0_15], %35 {strides = array<i32>} : memref<1x256x64xf32, #tpu.memory_space<vmem>>, vector<1x256x64xf32>,
    return
  }
  func.func @transform_0(%arg0: i32, %arg1: i32) -> (i32, i32, i32) {
    %c0_i32 = arith.constant 0 : i32
    %c0_i32_0 = arith.constant 0 : i32
    %c0_i32_1 = arith.constant 0 : i32
    return %arg0, %c0_i32, %c0_i32_0 : i32, i32, i32
  }
  func.func @transform_1(%arg0: i32, %arg1: i32) -> (i32, i32) {
    %c0_i32 = arith.constant 0 : i32
    %c0_i32_0 = arith.constant 0 : i32
    %c0_i32_1 = arith.constant 0 : i32
    return %c0_i32, %c0_i32_0 : i32, i32
  }
  func.func @transform_2(%arg0: i32, %arg1: i32) -> (i32, i32) {
    %c0_i32 = arith.constant 0 : i32
    %c0_i32_0 = arith.constant 0 : i32
    %c0_i32_1 = arith.constant 0 : i32
    return %c0_i32, %c0_i32_0 : i32, i32
  }
  func.func @transform_3(%arg0: i32, %arg1: i32) -> (i32, i32) {
    %c0_i32 = arith.constant 0 : i32
    %c0_i32_0 = arith.constant 0 : i32
    %c0_i32_1 = arith.constant 0 : i32
    return %c0_i32, %c0_i32_0 : i32, i32
  }
  func.func @transform_4(%arg0: i32, %arg1: i32) -> (i32, i32, i32) {
    %c0_i32 = arith.constant 0 : i32
    %c0_i32_0 = arith.constant 0 : i32
    return %arg0, %arg1, %c0_i32 : i32, i32, i32
  }
}

</mosaic_0001>

<bundles_post_ra>
// kernel: head_forward.1
= control target key start
LH: loop header
LB: loop body
LE: loop exit
PB: predicated region body
PF: predicated region fallthrough
CT: control target
= control target key end

     0   :  { %s5131_s15 = smov 0   ;;  %s5133_s16 = smov 0   ;;  %s6234_s0 = inlined_call_operand.vmem [shape: bf16[2,256,384], index: 0, kind: input, shape index: {}]   ;;  %s6235_s1 = inlined_call_operand.vmem [shape: bf16[384,64], index: 1, kind: input, shape index: {}]   ;;  %s6236_s2 = inlined_call_operand.vmem [shape: bf16[384,64], index: 2, kind: input, shape index: {}]   ;;  %s6237_s3 = inlined_call_operand.vmem [shape: bf16[384,64], index: 3, kind: input, shape index: {}]   ;;  %s6238_s4 = inlined_call_operand.vmem [shape: f32[2,256,64], index: 4, kind: output, shape index: {}]  }
   0x1   :  { %s5135_s17 = smov 0  }
   0x2 LB: > { %s26_s18 = sadd.s32 1, %s5100_s16  ;;  %p3774_p0 = scmp.ge.s32.totalorder %s5104_s17, 1  ;;  %s5104_s17 = sphi %s5135_s17, %s14_s17   ;;  %s5100_s16 = sphi %s5133_s16, %s6240_s16   ;;  %s5096_s15 = sphi %s5131_s15, %s6239_s15  }
   0x3   : > { %p28_p1 = scmp.ge.s32.totalorder %s26_s18, 2  ;;  %p176_p2 = scmp.lt.s32.totalorder %s5104_s17, 3 }
   0x5   : > { %s6242_s18 = smov (%p28_p1, %s26_s18), 0  ;;  %p177_p3 = pnand %p3774_p0, %p176_p2 }
   0x6   : > { %v4726_v0 = vld [vmem:[%s6236_s2 + $0x40] sm:$0xff] (!%p177_p3)   ;;  %v4728_v2 = vld [vmem:[%s6236_s2 + $0x48] sm:$0xff] (!%p177_p3)   ;;  %p206_p4 = scmp.lt.s32.totalorder (!%p177_p3), %s5096_s15, 1  ;;  %v4730_v4 = vld [vmem:[%s6236_s2 + $0x50] sm:$0xff] (!%p177_p3)   ;;  %vm1590_vm0 = vcmask (!%p177_p3), 523264  }
   0x7   : > { %180 = sbr.rel (%p177_p3) target bundleno = 1203 (0x4b3), region = 36  ;;  %v4727_v1 = vld [vmem:[%s6236_s2] sm:$0xff] (!%p177_p3)   ;;  %3965 = vmatprep.subr.bf16.mxu0 (!%p177_p3), %v4726_v0  ;;  %4677 = vmatprep.subr.bf16.mxu1 (!%p177_p3), %v4726_v0  ;;  %v4729_v3 = vld [vmem:[%s6236_s2 + $0x8] sm:$0xff] (!%p177_p3)   ;;  %v4731_v5 = vld [vmem:[%s6236_s2 + $0x10] sm:$0xff] (!%p177_p3)  }
   0x8   : > { %3966 = vmatpush3.bf16.msra.mxu0 (!%p177_p3), %v4727_v1  ;;  %4685 = vmatpush3.bf16.msra.mxu1 (!%p177_p3), %v4727_v1  ;;  %v4732_v6 = vld [vmem:[%s6236_s2 + $0x58] sm:$0xff] (!%p177_p3)   ;;  %v4734_v8 = vld [vmem:[%s6236_s2 + $0x60] sm:$0xff] (!%p177_p3)   ;;  %v4736_v10 = vld [vmem:[%s6236_s2 + $0x68] sm:$0xff] (!%p177_p3)  }
   0x9   : > { %3967 = vmatprep.subr.bf16.mxu0 (!%p177_p3), %v4728_v2  ;;  %4678 = vmatprep.subr.bf16.mxu1 (!%p177_p3), %v4728_v2  ;;  %v4733_v7 = vld [vmem:[%s6236_s2 + $0x18] sm:$0xff] (!%p177_p3)   ;;  %v4735_v9 = vld [vmem:[%s6236_s2 + $0x20] sm:$0xff] (!%p177_p3)   ;;  %v4737_v13 = vld [vmem:[%s6236_s2 + $0x28] sm:$0xff] (!%p177_p3)  }
   0xa   : > { %v4738_v14 = vld [vmem:[%s6236_s2 + $0x70] sm:$0xff] (!%p177_p3)   ;;  %v4740_v16 = vld [vmem:[%s6236_s2 + $0x78] sm:$0xff] (!%p177_p3)   ;;  %v4748_v18 = vld [vmem:[%s6236_s2 + $0x80] sm:$0xff] (!%p177_p3)  }
   0xb   : > { %v4739_v15 = vld [vmem:[%s6236_s2 + $0x30] sm:$0xff] (!%p177_p3)   ;;  %v4741_v17 = vld [vmem:[%s6236_s2 + $0x38] sm:$0xff] (!%p177_p3)   ;;  %v4749_v22 = vld [vmem:[%s6236_s2 + $0x88] sm:$0xff] (!%p177_p3)  }
   0xc   : > { %3968 = vmatpush3.bf16.msra.mxu0 (!%p177_p3), %v4729_v3  ;;  %4686 = vmatpush3.bf16.msra.mxu1 (!%p177_p3), %v4729_v3  ;;  %v4756_v25 = vld [vmem:[%s6236_s2 + $0x90] sm:$0xff] (!%p177_p3)   ;;  %v4757_v27 = vld [vmem:[%s6236_s2 + $0x98] sm:$0xff] (!%p177_p3)   ;;  %v4764_v30 = vld [vmem:[%s6236_s2 + $0xa0] sm:$0xff] (!%p177_p3)  }
   0xd   : > { %3969 = vmatprep.subr.bf16.mxu0 (!%p177_p3), %v4730_v4  ;;  %4679 = vmatprep.subr.bf16.mxu1 (!%p177_p3), %v4730_v4  ;;  %v4765_v33 = vld [vmem:[%s6236_s2 + $0xa8] sm:$0xff] (!%p177_p3)   ;;  %v4772_v37 = vld [vmem:[%s6236_s2 + $0xb0] sm:$0xff] (!%p177_p3)   ;;  %v4773_v39 = vld [vmem:[%s6236_s2 + $0xb8] sm:$0xff] (!%p177_p3)  }
   0xe   : > { %s6244_s15 = smov (!%p206_p4, %s5096_s15), 1  ;;  %v4802_v42 = vld [vmem:[%s6237_s3 + $0x80] sm:$0xff]   ;;  %v4810_v49 = vld [vmem:[%s6237_s3 + $0x88] sm:$0xff]   ;;  %v4793_v54 = vld [vmem:[%s6237_s3 + $0x50] sm:$0xff]  }
   0xf   : > { %s4701_s7 = smul.u32 384, %s6244_s15  ;;  %v4779_v45 = vld [vmem:[%s6237_s3 + $0x40] sm:$0xff]   ;;  %v4786_v50 = vld [vmem:[%s6237_s3 + $0x48] sm:$0xff]   ;;  %v4818_v55 = vld [vmem:[%s6237_s3 + $0x90] sm:$0xff]  }
  0x10   : > { %3970 = vmatpush3.bf16.msra.mxu0 %v4731_v5  ;;  %4687 = vmatpush3.bf16.msra.mxu1 %v4731_v5  ;;  %v4780_v46 = vld [vmem:[%s6237_s3] sm:$0xff]   ;;  %v4787_v51 = vld [vmem:[%s6237_s3 + $0x8] sm:$0xff]   ;;  %v4794_v58 = vld [vmem:[%s6237_s3 + $0x10] sm:$0xff]  }
  0x11   : > { %3971 = vmatprep.subr.bf16.mxu0 %v4732_v6  ;;  %4680 = vmatprep.subr.bf16.mxu1 %v4732_v6  ;;  %s5182_s14 = scalar_lea.vmem %s6234_s0, %s4701_s7  ;;  %v4819_v59 = vld [vmem:[%s6237_s3 + $0x98] sm:$0xff]   ;;  %v4827_v0 = vld [vmem:[%s6237_s3 + $0xa0] sm:$0xff]   ;;  %v4828_v5 = vld [vmem:[%s6237_s3 + $0xa8] sm:$0xff]  }
  0x12   : > { %v5191_v11 = vld [vmem:[%s5182_s14 + $0x4] ss:$12 sps:$4 sm:$0xff]   ;;  %v5217_v19 = vld [vmem:[%s5182_s14] ss:$12 sps:$4 sm:$0xff]   ;;  %v5223_v21 = vld [vmem:[%s5182_s14 + $0x1c] ss:$12 sps:$4 sm:$0xff]  }
  0x13   : > { %v5194_v12 = vld [vmem:[%s5182_s14 + $0x124] ss:$12 sps:$4 sm:$0xff]   ;;  %770 = vmatprep.mubr.bf16.mxu0 %v5191_v11  ;;  %v5220_v20 = vld [vmem:[%s5182_s14 + $0x120] ss:$12 sps:$4 sm:$0xff]   ;;  %v5229_v23 = vld [vmem:[%s5182_s14 + $0x13c] ss:$12 sps:$4 sm:$0xff]  }
  0x14   : > { %3972 = vmatpush3.bf16.msra.mxu0 %v4733_v7  ;;  %4688 = vmatpush3.bf16.msra.mxu1 %v4733_v7  ;;  %v5236_v24 = vld [vmem:[%s5182_s14 + $0x18] ss:$12 sps:$4 sm:$0xff]   ;;  %v5248_v28 = vld [vmem:[%s5182_s14 + $0x34] ss:$12 sps:$4 sm:$0xff]   ;;  %v5261_v31 = vld [vmem:[%s5182_s14 + $0x30] ss:$12 sps:$4 sm:$0xff]  }
  0x15   : > { %3973 = vmatprep.subr.bf16.mxu0 %v4734_v8  ;;  %4681 = vmatprep.subr.bf16.mxu1 %v4734_v8  ;;  %v5242_v26 = vld [vmem:[%s5182_s14 + $0x138] ss:$12 sps:$4 sm:$0xff]   ;;  %v5251_v29 = vld [vmem:[%s5182_s14 + $0x154] ss:$12 sps:$4 sm:$0xff]   ;;  %v5264_v32 = vld [vmem:[%s5182_s14 + $0x150] ss:$12 sps:$4 sm:$0xff]  }
  0x16   : > { %866 = vmatprep.mubr.bf16.mxu1 %v5194_v12  ;;  %v5270_v34 = vld [vmem:[%s5182_s14 + $0x4c] ss:$12 sps:$4 sm:$0xff]   ;;  %v5280_v36 = vld [vmem:[%s5182_s14 + $0x48] ss:$12 sps:$4 sm:$0xff]   ;;  %v5292_v40 = vld [vmem:[%s5182_s14 + $0x64] ss:$12 sps:$4 sm:$0xff]  }
  0x17   : > { %v5273_v35 = vld [vmem:[%s5182_s14 + $0x16c] ss:$12 sps:$4 sm:$0xff]   ;;  %v5286_v38 = vld [vmem:[%s5182_s14 + $0x168] ss:$12 sps:$4 sm:$0xff]   ;;  %v5339_v53 = vld [vmem:[%s5182_s14 + $0x50] ss:$12 sps:$4 sm:$0xff]  }
  0x18   : > { %3974 = vmatpush3.bf16.msra.mxu0 %v4735_v9  ;;  %4689 = vmatpush3.bf16.msra.mxu1 %v4735_v9  ;;  %v5295_v41 = vld [vmem:[%s5182_s14 + $0x8] ss:$12 sps:$4 sm:$0xff]   ;;  %v5305_v43 = vld [vmem:[%s5182_s14 + $0x60] ss:$12 sps:$4 sm:$0xff]   ;;  %v5320_v48 = vld [vmem:[%s5182_s14 + $0x38] ss:$12 sps:$4 sm:$0xff]  }
  0x19   : > { %3975 = vmatprep.subr.bf16.mxu0 %v4736_v10  ;;  %4682 = vmatprep.subr.bf16.mxu1 %v4736_v10  ;;  %v5308_v44 = vld [vmem:[%s5182_s14 + $0x20] ss:$12 sps:$4 sm:$0xff]   ;;  %v5317_v47 = vld [vmem:[%s5182_s14 + $0x7c] ss:$12 sps:$4 sm:$0xff]   ;;  %v5336_v52 = vld [vmem:[%s5182_s14 + $0x78] ss:$12 sps:$4 sm:$0xff]  }
  0x1a   : > { %v5348_v56 = vld [vmem:[%s5182_s14 + $0x94] ss:$12 sps:$4 sm:$0xff]   ;;  %v4800_v60 = vld [vmem:[%s6237_s3 + $0x58] sm:$0xff]   ;;  %v4816_v6 = vld [vmem:[%s6237_s3 + $0x68] sm:$0xff]  }
  0x1b   : > { %v5351_v57 = vld [vmem:[%s5182_s14 + $0x68] ss:$12 sps:$4 sm:$0xff]   ;;  %v4801_v61 = vld [vmem:[%s6237_s3 + $0x18] sm:$0xff]   ;;  %v5373_v63 = vld [vmem:[%s5182_s14 + $0x80] ss:$12 sps:$4 sm:$0xff]  }
  0x1c   : > { %3976 = vmatpush3.bf16.msra.mxu0 %v4737_v13  ;;  %4690 = vmatpush3.bf16.msra.mxu1 %v4737_v13  ;;  %v5370_v62 = vld [vmem:[%s5182_s14 + $0x90] ss:$12 sps:$4 sm:$0xff]   ;;  %v5379_v1 = vld [vmem:[%s5182_s14 + $0xac] ss:$12 sps:$4 sm:$0xff]   ;;  %v4808_v2 = vld [vmem:[%s6237_s3 + $0x60] sm:$0xff]  }
  0x1d   : > { %3977 = vmatprep.subr.bf16.mxu0 %v4738_v14  ;;  %4683 = vmatprep.subr.bf16.mxu1 %v4738_v14  ;;  %v5385_v3 = vld [vmem:[%s5182_s14 + $0x98] ss:$12 sps:$4 sm:$0xff]   ;;  %v4817_v7 = vld [vmem:[%s6237_s3 + $0x28] sm:$0xff]   ;;  %v5407_v9 = vld [vmem:[%s5182_s14 + $0xb0] ss:$12 sps:$4 sm:$0xff]  }
  0x1e   : > { %v4809_v4 = vld [vmem:[%s6237_s3 + $0x20] sm:$0xff]   ;;  %v5404_v8 = vld [vmem:[%s5182_s14 + $0xa8] ss:$12 sps:$4 sm:$0xff]  }
  0x1f   : > { %v4836_v10 = vld [vmem:[%s6237_s3 + $0xb0] sm:$0xff]  }
  0x20   : > { %3978 = vmatpush3.bf16.msra.mxu0 %v4739_v15  ;;  %4691 = vmatpush3.bf16.msra.mxu1 %v4739_v15  ;;  %v5413_v13 = vld [vmem:[%s5182_s14 + $0xc4] ss:$12 sps:$4 sm:$0xff]   ;;  %v5419_v15 = vld [vmem:[%s5182_s14 + $0xc8] ss:$12 sps:$4 sm:$0xff]  }
  0x21   : > { %3979 = vmatprep.subr.bf16.mxu0 %v4740_v16  ;;  %4684 = vmatprep.subr.bf16.mxu1 %v4740_v16  ;;  %v4825_v14 = vld [vmem:[%s6237_s3 + $0x70] sm:$0xff]  }
  0x22   : > { %v4826_v16 = vld [vmem:[%s6237_s3 + $0x30] sm:$0xff]  }
  0x24   : > { %3980 = vmatpush3.bf16.msra.mxu0 %v4741_v17  ;;  %4692 = vmatpush3.bf16.msra.mxu1 %v4741_v17  ;;  %v4837_v17 = vld [vmem:[%s6237_s3 + $0xb8] sm:$0xff]  }
  0x25   : > { %4533 = vmatprep.subr.bf16.mxu1 %v4748_v18  ;;  %4581 = vmatprep.subr.bf16.mxu0 %v4802_v42 }
  0x27   : > { %771 = vmatmul.mubr.bf16.vlgmr.msra.gmra.mrb[0].mxu0 %v5217_v19  ;;  %867 = vmatmul.mubr.bf16.vlgmr.msra.gmra.mrb[0].mxu1 %v5220_v20 }
  0x28   : > { %4534 = vmatpush3.bf16.msra.mxu1 %v4748_v18  ;;  %778 = vmatprep.mubr.bf16.mxu0 %v5223_v21  ;;  %v4834_v18 = vld [vmem:[%s6237_s3 + $0x78] sm:$0xff]  }
  0x29   : > { %4535 = vmatprep.subr.bf16.mxu1 %v4749_v22  ;;  %874 = vmatprep.mubr.bf16.mxu1 %v5229_v23 }
  0x2a   : > { %4582 = vmatpush3.bf16.msra.mxu0 %v4802_v42  ;;  %v5460_v42 = vld [vmem:[%s5182_s14 + $0xd8] ss:$12 sps:$4 sm:$0xff]  }
  0x2b   : > { %4583 = vmatprep.subr.bf16.mxu0 %v4810_v49 }
  0x2c   : > { %4536 = vmatpush3.bf16.msra.mxu1 %v4749_v22  ;;  %v4842_v22 = vld [vmem:[%s6235_s1 + $0x40] sm:$0xff]  }
  0x2d   : > { %4537 = vmatprep.subr.bf16.mxu1 %v4756_v25 }
  0x2e   : > { %4584 = vmatpush3.bf16.msra.mxu0 %v4810_v49  ;;  %v5469_v49 = vld [vmem:[%s5182_s14 + $0x128] ss:$12 sps:$4 sm:$0xff]  }
  0x2f   : > { %779 = vmatmul.mubr.bf16.gmra.mrb[4].mxu0 %v5236_v24  ;;  %875 = vmatmul.mubr.bf16.gmra.mrb[4].mxu1 %v5242_v26 }
  0x30   : > { %4538 = vmatpush3.bf16.msra.mxu1 %v4756_v25  ;;  %786 = vmatprep.mubr.bf16.mxu0 %v5248_v28  ;;  %v5438_v25 = vld [vmem:[%s5182_s14 + $0xc0] ss:$12 sps:$4 sm:$0xff]  }
  0x31   : > { %4539 = vmatprep.subr.bf16.mxu1 %v4757_v27  ;;  %882 = vmatprep.mubr.bf16.mxu1 %v5251_v29 }
  0x32   : > { %4585 = vmatprep.subr.bf16.mxu0 %v4818_v55 }
  0x33   : > { %4586 = vmatpush3.bf16.msra.mxu0 %v4818_v55  ;;  %v5485_v55 = vld [vmem:[%s5182_s14 + $0x158] ss:$12 sps:$4 sm:$0xff]  }
  0x34   : > { %4540 = vmatpush3.bf16.msra.mxu1 %v4757_v27  ;;  %4587 = vmatprep.subr.bf16.mxu0 %v4819_v59  ;;  %v5441_v27 = vld [vmem:[%s5182_s14 + $0xe0] ss:$12 sps:$4 sm:$0xff]  }
  0x35   : > { %4541 = vmatprep.subr.bf16.mxu1 %v4764_v30 }
  0x37   : > { %787 = vmatmul.mubr.bf16.gmra.mrb[8].mxu0 %v5261_v31  ;;  %883 = vmatmul.mubr.bf16.gmra.mrb[8].mxu1 %v5264_v32 }
  0x38   : > { %4542 = vmatpush3.bf16.msra.mxu1 %v4764_v30  ;;  %794 = vmatprep.mubr.bf16.mxu0 %v5270_v34  ;;  %v4835_v30 = vld [vmem:[%s6237_s3 + $0x38] sm:$0xff]  }
  0x39   : > { %4543 = vmatprep.subr.bf16.mxu1 %v4765_v33  ;;  %890 = vmatprep.mubr.bf16.mxu1 %v5273_v35 }
  0x3a   : > { %4588 = vmatpush3.bf16.msra.mxu0 %v4819_v59  ;;  %v5495_v59 = vld [vmem:[%s5182_s14 + $0x170] ss:$12 sps:$4 sm:$0xff]  }
  0x3b   : > { %4589 = vmatprep.subr.bf16.mxu0 %v4827_v0 }
  0x3c   : > { %4544 = vmatpush3.bf16.msra.mxu1 %v4765_v33  ;;  %v4838_v33 = vld [vmem:[%s6235_s1 + $0x80] sm:$0xff]  }
  0x3d   : > { %4545 = vmatprep.subr.bf16.mxu1 %v4772_v37 }
  0x3e   : > { %4590 = vmatpush3.bf16.msra.mxu0 %v4827_v0  ;;  %v4845_v0 = vld [vmem:[%s6235_s1 + $0x48] sm:$0xff]  }
  0x3f   : > { %795 = vmatmul.mubr.bf16.gmra.mrb[12].mxu0 %v5280_v36  ;;  %891 = vmatmul.mubr.bf16.gmra.mrb[12].mxu1 %v5286_v38 }
  0x40   : > { %4546 = vmatpush3.bf16.msra.mxu1 %v4772_v37  ;;  %802 = vmatprep.mubr.bf16.mxu0 %v5292_v40  ;;  %v5450_v37 = vld [vmem:[%s5182_s14 + $0xdc] ss:$12 sps:$4 sm:$0xff]  }
  0x41   : > { %4547 = vmatprep.subr.bf16.mxu1 %v4773_v39  ;;  %4549 = vmatprep.mubr.bf16.mxu1 %v5295_v41 }
  0x42   : > { %4591 = vmatprep.subr.bf16.mxu0 %v4828_v5 }
  0x43   : > { %4592 = vmatpush3.bf16.msra.mxu0 %v4828_v5  ;;  %v4850_v5 = vld [vmem:[%s6235_s1 + $0x58] sm:$0xff]  }
  0x44   : > { %4548 = vmatpush3.bf16.msra.mxu1 %v4773_v39  ;;  %4593 = vmatprep.subr.bf16.mxu0 %v4836_v10  ;;  %v5453_v39 = vld [vmem:[%s5182_s14 + $0xf8] ss:$12 sps:$4 sm:$0xff]  }
  0x45   : > { %4101 = vmatprep.subr.bf16.mxu1 %v4779_v45  ;;  %v5463_v45 = vld [vmem:[%s5182_s14 + $0x110] ss:$12 sps:$4 sm:$0xff]  }
  0x47   : > { %803 = vmatmul.mubr.bf16.gmra.mrb[16].mxu0 %v5305_v43  ;;  %4550 = vmatmul.mubr.bf16.vlgmr.msra.gmra.mrb[16].mxu1 %v5308_v44 }
  0x48   : > { %4102 = vmatpush3.bf16.msra.mxu1 %v4780_v46  ;;  %810 = vmatprep.mubr.bf16.mxu0 %v5317_v47  ;;  %v5466_v46 = vld [vmem:[%s5182_s14 + $0xf4] ss:$12 sps:$4 sm:$0xff]  }
  0x49   : > { %4553 = vmatprep.mubr.bf16.mxu1 %v5320_v48  ;;  %4103 = vmatprep.subr.bf16.mxu1 %v4786_v50  ;;  %v5476_v50 = vld [vmem:[%s5182_s14 + $0xf0] ss:$12 sps:$4 sm:$0xff]  }
  0x4a   : > { %4594 = vmatpush3.bf16.msra.mxu0 %v4836_v10  ;;  %v4853_v10 = vld [vmem:[%s6235_s1 + $0x20] sm:$0xff]  }
  0x4b   : > { %4595 = vmatprep.subr.bf16.mxu0 %v4837_v17 }
  0x4c   : > { %4104 = vmatpush3.bf16.msra.mxu1 %v4787_v51  ;;  %v5479_v51 = vld [vmem:[%s5182_s14 + $0x140] ss:$12 sps:$4 sm:$0xff]  }
  0x4d   : > { %4105 = vmatprep.subr.bf16.mxu1 %v4793_v54  ;;  %v5482_v54 = vld [vmem:[%s5182_s14 + $0x10c] ss:$12 sps:$4 sm:$0xff]  }
  0x4e   : > { %4596 = vmatpush3.bf16.msra.mxu0 %v4837_v17  ;;  %v4857_v17 = vld [vmem:[%s6235_s1 + $0x70] sm:$0xff]  }
  0x4f   : > { %811 = vmatmul.mubr.bf16.gmra.mrb[20].mxu0 %v5336_v52  ;;  %4554 = vmatmul.mubr.bf16.gmra.mrb[20].mxu1 %v5339_v53 }
  0x50   : > { %818 = vmatprep.mubr.bf16.mxu0 %v5348_v56  ;;  %4557 = vmatprep.mubr.bf16.mxu1 %v5351_v57 }
  0x51   : > { %4106 = vmatpush3.bf16.msra.mxu1 %v4794_v58  ;;  %4237 = vmatprep.subr.bf16.mxu0 %v4842_v22  ;;  %v5492_v58 = vld [vmem:[%s5182_s14 + $0x108] ss:$12 sps:$4 sm:$0xff]   ;;  %v4859_v22 = vld [vmem:[%s6235_s1 + $0x78] sm:$0xff]  }
  0x52   : > { %4107 = vmatprep.subr.bf16.mxu1 %v4800_v60  ;;  %v4839_v60 = vld [vmem:[%s6235_s1 + $0x88] sm:$0xff]  }
  0x55   : > { %4108 = vmatpush3.bf16.msra.mxu1 %v4801_v61  ;;  %v4843_v61 = vld [vmem:[%s6235_s1] sm:$0xff]  }
  0x56   : > { %4109 = vmatprep.subr.bf16.mxu1 %v4808_v2  ;;  %v4846_v2 = vld [vmem:[%s6235_s1 + $0x8] sm:$0xff]  }
  0x57   : > { %819 = vmatmul.mubr.bf16.gmra.mrb[24].mxu0 %v5370_v62  ;;  %4558 = vmatmul.mubr.bf16.gmra.mrb[24].mxu1 %v5373_v63 }
  0x58   : > { %826 = vmatprep.mubr.bf16.mxu0 %v5379_v1  ;;  %4561 = vmatprep.mubr.bf16.mxu1 %v5385_v3 }
  0x59   : > { %4110 = vmatpush3.bf16.msra.mxu1 %v4809_v4  ;;  %v4848_v4 = vld [vmem:[%s6235_s1 + $0x10] sm:$0xff]  }
  0x5a   : > { %4111 = vmatprep.subr.bf16.mxu1 %v4816_v6  ;;  %v4844_v6 = vld [vmem:[%s6235_s1 + $0xa0] sm:$0xff]  }
  0x5d   : > { %4112 = vmatpush3.bf16.msra.mxu1 %v4817_v7  ;;  %v4852_v7 = vld [vmem:[%s6235_s1 + $0x60] sm:$0xff]  }
  0x5e   : > { %4113 = vmatprep.subr.bf16.mxu1 %v4825_v14  ;;  %v4855_v14 = vld [vmem:[%s6235_s1 + $0x68] sm:$0xff]  }
  0x5f   : > { %827 = vmatmul.mubr.bf16.gmra.mrb[28].mxu0 %v5404_v8  ;;  %4562 = vmatmul.mubr.bf16.gmra.mrb[28].mxu1 %v5407_v9 }
  0x60   : > { %834 = vmatprep.mubr.bf16.mxu0 %v5413_v13  ;;  %4565 = vmatprep.mubr.bf16.mxu1 %v5419_v15 }
  0x61   : > { %4114 = vmatpush3.bf16.msra.mxu1 %v4826_v16  ;;  %v4854_v16 = vld [vmem:[%s6235_s1 + $0xb0] sm:$0xff]  }
  0x62   : > { %4115 = vmatprep.subr.bf16.mxu1 %v4834_v18  ;;  %v4860_v18 = vld [vmem:[%s6235_s1 + $0xb8] sm:$0xff]  }
  0x65   : > { %4116 = vmatpush3.bf16.msra.mxu1 %v4835_v30  ;;  %v4861_v30 = vld [vmem:[%s6235_s1 + $0x38] sm:$0xff]  }
  0x66   : > { %4629 = vmatprep.subr.bf16.mxu1 %v4838_v33 }
  0x67   : > { %835 = vmatmul.mubr.bf16.gmra.mrb[32].mxu0 %v5438_v25  ;;  %4566 = vmatmul.mubr.bf16.gmra.mrb[32].mxu1 %v5441_v27 }
  0x68   : > { %842 = vmatprep.mubr.bf16.mxu0 %v5450_v37  ;;  %4569 = vmatprep.mubr.bf16.mxu1 %v5453_v39 }
  0x6f   : > { %843 = vmatmul.mubr.bf16.gmra.mrb[36].mxu0 %v5460_v42  ;;  %4570 = vmatmul.mubr.bf16.gmra.mrb[36].mxu1 %v5463_v45 }
  0x70   : > { %850 = vmatprep.mubr.bf16.mxu0 %v5466_v46  ;;  %4573 = vmatprep.mubr.bf16.mxu1 %v5469_v49 }
  0x77   : > { %851 = vmatmul.mubr.bf16.gmra.mrb[40].mxu0 %v5476_v50  ;;  %4574 = vmatmul.mubr.bf16.gmra.mrb[40].mxu1 %v5479_v51 }
  0x78   : > { %858 = vmatprep.mubr.bf16.mxu0 %v5482_v54  ;;  %4577 = vmatprep.mubr.bf16.mxu1 %v5485_v55 }
  0x7f   : > { %859 = vmatmul.mubr.bf16.gmra.mrb[44].mxu0 %v5492_v58  ;;  %4578 = vmatmul.mubr.bf16.gmra.mrb[44].mxu1 %v5495_v59 }
  0x80   : > { %1284 = vmatprep.mubr.bf16.mxu1 %v5191_v11  ;;  %4597 = vmatprep.mubr.bf16.mxu0 %v5295_v41  ;;  %v4840_v41 = vld [vmem:[%s6235_s1 + $0x90] sm:$0xff]  }
  0x87   : > { %1285 = vmatmul.mubr.bf16.vlgmr.msra.gmra.mrb[48].mxu1 %v5217_v19  ;;  %4598 = vmatmul.mubr.bf16.vlgmr.msra.gmra.mrb[48].mxu0 %v5308_v44  ;;  %v4847_v44 = vld [vmem:[%s6235_s1 + $0x50] sm:$0xff]  }
  0x88   : > { %4630 = vmatpush3.bf16.msra.mxu1 %v4838_v33  ;;  %1292 = vmatprep.mubr.bf16.mxu1 %v5223_v21 }
  0x89   : > { %4631 = vmatprep.subr.bf16.mxu1 %v4839_v60  ;;  %4601 = vmatprep.mubr.bf16.mxu0 %v5320_v48  ;;  %v4841_v48 = vld [vmem:[%s6235_s1 + $0x98] sm:$0xff]  }
  0x8a   : > { %4238 = vmatpush3.bf16.msra.mxu0 %v4843_v61  ;;  %v4866_v61 = vld [vmem:[%s5182_s14 + $0x68] ss:$12 sps:$4 sm:$0xff]  }
  0x8b   : > { %4239 = vmatprep.subr.bf16.mxu0 %v4845_v0 }
  0x8c   : > { %4632 = vmatpush3.bf16.msra.mxu1 %v4839_v60 }
  0x8d   : > { %4633 = vmatprep.subr.bf16.mxu1 %v4840_v41 }
  0x8e   : > { %4240 = vmatpush3.bf16.msra.mxu0 %v4846_v2 }
  0x8f   : > { %1293 = vmatmul.mubr.bf16.gmra.mrb[52].mxu1 %v5236_v24  ;;  %4602 = vmatmul.mubr.bf16.gmra.mrb[52].mxu0 %v5339_v53  ;;  %v4851_v53 = vld [vmem:[%s6235_s1 + $0x18] sm:$0xff]  }
  0x90   : > { %1300 = vmatprep.mubr.bf16.mxu1 %v5248_v28  ;;  %4605 = vmatprep.mubr.bf16.mxu0 %v5351_v57  ;;  %v4849_v57 = vld [vmem:[%s6235_s1 + $0xa8] sm:$0xff]  }
  0x91   : > { %4634 = vmatpush3.bf16.msra.mxu1 %v4840_v41  ;;  %4241 = vmatprep.subr.bf16.mxu0 %v4847_v44 }
  0x92   : > { %4635 = vmatprep.subr.bf16.mxu1 %v4841_v48  ;;  %4242 = vmatpush3.bf16.msra.mxu0 %v4848_v4 }
  0x93   : > { %4243 = vmatprep.subr.bf16.mxu0 %v4850_v5  ;;  %v4867_v5 = vld [vmem:[%s5182_s14 + $0x80] ss:$12 sps:$4 sm:$0xff]  }
  0x95   : > { %4636 = vmatpush3.bf16.msra.mxu1 %v4841_v48 }
  0x96   : > { %4637 = vmatprep.subr.bf16.mxu1 %v4844_v6  ;;  %4244 = vmatpush3.bf16.msra.mxu0 %v4851_v53 }
  0x97   : > { %1301 = vmatmul.mubr.bf16.gmra.mrb[56].mxu1 %v5261_v31  ;;  %4606 = vmatmul.mubr.bf16.gmra.mrb[56].mxu0 %v5373_v63  ;;  %v4856_v63 = vld [vmem:[%s6235_s1 + $0x28] sm:$0xff]  }
  0x98   : > { %1308 = vmatprep.mubr.bf16.mxu1 %v5270_v34  ;;  %4609 = vmatprep.mubr.bf16.mxu0 %v5385_v3  ;;  %v4858_v3 = vld [vmem:[%s6235_s1 + $0x30] sm:$0xff]  }
  0x99   : > { %4638 = vmatpush3.bf16.msra.mxu1 %v4844_v6  ;;  %4245 = vmatprep.subr.bf16.mxu0 %v4852_v7 }
  0x9a   : > { %4639 = vmatprep.subr.bf16.mxu1 %v4849_v57  ;;  %4246 = vmatpush3.bf16.msra.mxu0 %v4853_v10  ;;  %v4868_v10 = vld [vmem:[%s5182_s14 + $0x98] ss:$12 sps:$4 sm:$0xff]  }
  0x9b   : > { %4247 = vmatprep.subr.bf16.mxu0 %v4855_v14 }
  0x9d   : > { %4640 = vmatpush3.bf16.msra.mxu1 %v4849_v57 }
  0x9e   : > { %4641 = vmatprep.subr.bf16.mxu1 %v4854_v16  ;;  %4248 = vmatpush3.bf16.msra.mxu0 %v4856_v63 }
  0x9f   : > { %1309 = vmatmul.mubr.bf16.gmra.mrb[60].mxu1 %v5280_v36  ;;  %4610 = vmatmul.mubr.bf16.gmra.mrb[60].mxu0 %v5407_v9 }
  0xa0   : > { %1316 = vmatprep.mubr.bf16.mxu1 %v5292_v40  ;;  %4613 = vmatprep.mubr.bf16.mxu0 %v5419_v15 }
  0xa1   : > { %4642 = vmatpush3.bf16.msra.mxu1 %v4854_v16  ;;  %4249 = vmatprep.subr.bf16.mxu0 %v4857_v17 }
  0xa2   : > { %4250 = vmatpush3.bf16.msra.mxu0 %v4858_v3  ;;  %4643 = vmatprep.subr.bf16.mxu1 %v4860_v18 }
  0xa3   : > { %4251 = vmatprep.subr.bf16.mxu0 %v4859_v22 }
  0xa5   : > { %4644 = vmatpush3.bf16.msra.mxu1 %v4860_v18 }
  0xa6   : > { %4252 = vmatpush3.bf16.msra.mxu0 %v4861_v30  ;;  %v4869_v30 = vld [vmem:[%s5182_s14 + $0xb0] ss:$12 sps:$4 sm:$0xff]  }
  0xa7   : > { %1317 = vmatmul.mubr.bf16.gmra.mrb[64].mxu1 %v5305_v43  ;;  %4614 = vmatmul.mubr.bf16.gmra.mrb[64].mxu0 %v5441_v27 }
  0xa8   : > { %1324 = vmatprep.mubr.bf16.mxu1 %v5317_v47  ;;  %4617 = vmatprep.mubr.bf16.mxu0 %v5453_v39 }
  0xaf   : > { %1325 = vmatmul.mubr.bf16.gmra.mrb[68].mxu1 %v5336_v52  ;;  %4618 = vmatmul.mubr.bf16.gmra.mrb[68].mxu0 %v5463_v45  ;;  %v4865_v45 = vld [vmem:[%s5182_s14 + $0x50] ss:$12 sps:$4 sm:$0xff]  }
  0xb0   : > { %1332 = vmatprep.mubr.bf16.mxu1 %v5348_v56  ;;  %4621 = vmatprep.mubr.bf16.mxu0 %v5469_v49 }
  0xb7   : > { %1333 = vmatmul.mubr.bf16.gmra.mrb[72].mxu1 %v5370_v62  ;;  %4622 = vmatmul.mubr.bf16.gmra.mrb[72].mxu0 %v5479_v51 }
  0xb8   : > { %1340 = vmatprep.mubr.bf16.mxu1 %v5379_v1  ;;  %4625 = vmatprep.mubr.bf16.mxu0 %v5485_v55 }
  0xbf   : > { %1341 = vmatmul.mubr.bf16.gmra.mrb[76].mxu1 %v5404_v8  ;;  %4626 = vmatmul.mubr.bf16.gmra.mrb[76].mxu0 %v5495_v59 }
  0xc0   : > { %1348 = vmatprep.mubr.bf16.mxu1 %v5413_v13  ;;  %2189 = vmatprep.mubr.bf16.mxu0 %v5191_v11 }
  0xc7   : > { %1349 = vmatmul.mubr.bf16.gmra.mrb[80].mxu1 %v5438_v25  ;;  %2190 = vmatmul.mubr.bf16.vlgmr.msra.gmra.mrb[80].mxu0 %v5217_v19 }
  0xc8   : > { %1356 = vmatprep.mubr.bf16.mxu1 %v5450_v37  ;;  %2197 = vmatprep.mubr.bf16.mxu0 %v5223_v21 }
  0xcf   : > { %1357 = vmatmul.mubr.bf16.gmra.mrb[84].mxu1 %v5460_v42  ;;  %2198 = vmatmul.mubr.bf16.gmra.mrb[84].mxu0 %v5236_v24  ;;  %v4862_v24 = vld [vmem:[%s5182_s14 + $0x8] ss:$12 sps:$4 sm:$0xff]  }
  0xd0   : > { %1364 = vmatprep.mubr.bf16.mxu1 %v5466_v46  ;;  %2205 = vmatprep.mubr.bf16.mxu0 %v5248_v28 }
  0xd7   : > { %1365 = vmatmul.mubr.bf16.gmra.mrb[88].mxu1 %v5476_v50  ;;  %2206 = vmatmul.mubr.bf16.gmra.mrb[88].mxu0 %v5261_v31 }
  0xd8   : > { %1372 = vmatprep.mubr.bf16.mxu1 %v5482_v54  ;;  %2213 = vmatprep.mubr.bf16.mxu0 %v5270_v34 }
  0xdf   : > { %1373 = vmatmul.mubr.bf16.gmra.mrb[92].mxu1 %v5492_v58  ;;  %2214 = vmatmul.mubr.bf16.gmra.mrb[92].mxu0 %v5280_v36 }
  0xe0   : > { %1380 = vmatprep.mubr.bf16.mxu1 %v5194_v12  ;;  %2221 = vmatprep.mubr.bf16.mxu0 %v5292_v40 }
  0xe7   : > { %1381 = vmatmul.mubr.bf16.gmra.mrb[96].mxu1 %v5220_v20  ;;  %2222 = vmatmul.mubr.bf16.gmra.mrb[96].mxu0 %v5305_v43  ;;  %v4863_v43 = vld [vmem:[%s5182_s14 + $0x20] ss:$12 sps:$4 sm:$0xff]  }
  0xe8   : > { %1388 = vmatprep.mubr.bf16.mxu1 %v5229_v23  ;;  %2229 = vmatprep.mubr.bf16.mxu0 %v5317_v47 }
  0xef   : > { %1389 = vmatmul.mubr.bf16.gmra.mrb[100].mxu1 %v5242_v26  ;;  %2230 = vmatmul.mubr.bf16.gmra.mrb[100].mxu0 %v5336_v52 }
  0xf0   : > { %1396 = vmatprep.mubr.bf16.mxu1 %v5251_v29  ;;  %2237 = vmatprep.mubr.bf16.mxu0 %v5348_v56 }
  0xf7   : > { %1397 = vmatmul.mubr.bf16.gmra.mrb[104].mxu1 %v5264_v32  ;;  %2238 = vmatmul.mubr.bf16.gmra.mrb[104].mxu0 %v5370_v62  ;;  %v4864_v62 = vld [vmem:[%s5182_s14 + $0x38] ss:$12 sps:$4 sm:$0xff]  }
  0xf8   : > { %1404 = vmatprep.mubr.bf16.mxu1 %v5273_v35  ;;  %2245 = vmatprep.mubr.bf16.mxu0 %v5379_v1 }
  0xfa   : > { %v4053_v11 = vpop.f32.mrb[0].mxu1  ;;  %v3981_v12 = vpop.f32.mrb[0].mxu0 }
  0xfb   : > { %v4054_v19 = vpop.f32.mrb[1].mxu1  ;;  %v3982_v20 = vpop.f32.mrb[1].mxu0 }
  0xfc   : > { %v5627_v21 = vadd.f32 %v4054_v19, %v4053_v11  ;;  %v4056_v23 = vpop.f32.mrb[2].mxu1  ;;  %v5630_v26 = vadd.f32 %v3982_v20, %v3981_v12  ;;  %v3984_v28 = vpop.f32.mrb[2].mxu0 }
  0xfd   : > { %v4057_v29 = vpop.f32.mrb[3].mxu1  ;;  %v3985_v31 = vpop.f32.mrb[3].mxu0 }
  0xfe   : > { %v5632_v32 = vadd.f32 %v4057_v29, %v4056_v23  ;;  %v5634_v34 = vadd.f32 %v3985_v31, %v3984_v28  ;;  %v4870_v23 = vld [vmem:[%s5182_s14 + $0xc8] ss:$12 sps:$4 sm:$0xff]  }
  0xff   : > { %1405 = vmatmul.mubr.bf16.gmra.mrb[108].mxu1 %v5286_v38  ;;  %2246 = vmatmul.mubr.bf16.gmra.mrb[108].mxu0 %v5404_v8 }
 0x100   : > { %4645 = vmatprep.mubr.bf16.mxu1 %v4862_v24  ;;  %2253 = vmatprep.mubr.bf16.mxu0 %v5413_v13  ;;  %v4874_v24 = vld [vmem:[%s5182_s14 + $0x124] ss:$12 sps:$4 sm:$0xff]  }
 0x102   : > { %v4059_v35 = vpop.f32.mrb[4].mxu1  ;;  %v3987_v36 = vpop.f32.mrb[4].mxu0 }
 0x103   : > { %v4060_v40 = vpop.f32.mrb[5].mxu1  ;;  %v3988_v47 = vpop.f32.mrb[5].mxu0 }
 0x104   : > { %v5640_v52 = vadd.f32 %v4060_v40, %v4059_v35  ;;  %v4062_v56 = vpop.f32.mrb[6].mxu1  ;;  %v3989_v1 = vadd.f32 %v3988_v47, %v3987_v36  ;;  %v3990_v9 = vpop.f32.mrb[6].mxu0 }
 0x105   : > { %v4063_v15 = vpop.f32.mrb[7].mxu1  ;;  %v3991_v27 = vpop.f32.mrb[7].mxu0 }
 0x106   : > { %v5643_v38 = vadd.f32 %v4063_v15, %v4062_v56  ;;  %v3992_v8 = vadd.f32 %v3991_v27, %v3990_v9  ;;  %v4871_v56 = vld [vmem:[%s5182_s14 + $0xe0] ss:$12 sps:$4 sm:$0xff]   ;;  %v4872_v27 = vld [vmem:[%s5182_s14 + $0xf8] ss:$12 sps:$4 sm:$0xff]  }
 0x107   : > { %4646 = vmatmul.mubr.bf16.vlgmr.msra.gmra.mrb[112].mxu1 %v4863_v43  ;;  %2254 = vmatmul.mubr.bf16.gmra.mrb[112].mxu0 %v5438_v25 }
 0x108   : > { %4649 = vmatprep.mubr.bf16.mxu1 %v4864_v62  ;;  %2261 = vmatprep.mubr.bf16.mxu0 %v5450_v37  ;;  %v4876_v62 = vld [vmem:[%s5182_s14 + $0x120] ss:$12 sps:$4 sm:$0xff]  }
 0x10a   : > { %v4065_v13 = vpop.f32.mrb[8].mxu1  ;;  %v3993_v33 = vpop.f32.mrb[8].mxu0 }
 0x10b   : > { %v4066_v39 = vpop.f32.mrb[9].mxu1  ;;  %v3994_v49 = vpop.f32.mrb[9].mxu0 }
 0x10c   : > { %v5648_v51 = vadd.f32 %v4066_v39, %v4065_v13  ;;  %v4068_v55 = vpop.f32.mrb[10].mxu1  ;;  %v3995_v59 = vadd.f32 %v3994_v49, %v3993_v33  ;;  %v3996_v60 = vpop.f32.mrb[10].mxu0 }
 0x10d   : > { %v4069_v0 = vpop.f32.mrb[11].mxu1  ;;  %v3997_v41 = vpop.f32.mrb[11].mxu0 }
 0x10e   : > { %v5651_v2 = vadd.f32 %v4069_v0, %v4068_v55  ;;  %v5653_v25 = vadd.f32 %v3997_v41, %v3996_v60 }
 0x10f   : > { %4650 = vmatmul.mubr.bf16.gmra.mrb[116].mxu1 %v4865_v45  ;;  %2262 = vmatmul.mubr.bf16.gmra.mrb[116].mxu0 %v5460_v42 }
 0x110   : > { %4653 = vmatprep.mubr.bf16.mxu1 %v4866_v61  ;;  %2269 = vmatprep.mubr.bf16.mxu0 %v5466_v46 }
 0x112   : > { %v4071_v37 = vpop.f32.mrb[12].mxu1  ;;  %v3999_v44 = vpop.f32.mrb[12].mxu0 }
 0x113   : > { %v4072_v48 = vpop.f32.mrb[13].mxu1  ;;  %v4000_v4 = vpop.f32.mrb[13].mxu0 }
 0x114   : > { %v5658_v6 = vadd.f32 %v4072_v48, %v4071_v37  ;;  %v4074_v53 = vpop.f32.mrb[14].mxu1  ;;  %v4001_v7 = vadd.f32 %v4000_v4, %v3999_v44  ;;  %v4002_v57 = vpop.f32.mrb[14].mxu0  ;;  %v4879_v44 = vld [vmem:[%s5182_s14 + $0x138] ss:$12 sps:$4 sm:$0xff]  }
 0x115   : > { %v4075_v14 = vpop.f32.mrb[15].mxu1  ;;  %v4003_v16 = vpop.f32.mrb[15].mxu0 }
 0x116   : > { %v5661_v63 = vadd.f32 %v4075_v14, %v4074_v53  ;;  %v4004_v42 = vadd.f32 %v4003_v16, %v4002_v57  ;;  %v4882_v57 = vld [vmem:[%s5182_s14 + $0x154] ss:$12 sps:$4 sm:$0xff]  }
 0x117   : > { %4654 = vmatmul.mubr.bf16.gmra.mrb[120].mxu1 %v4867_v5  ;;  %2270 = vmatmul.mubr.bf16.gmra.mrb[120].mxu0 %v5476_v50 }
 0x118   : > { %4657 = vmatprep.mubr.bf16.mxu1 %v4868_v10  ;;  %2277 = vmatprep.mubr.bf16.mxu0 %v5482_v54 }
 0x11a   : > { %v4551_v46 = vpop.f32.mrb[16].mxu1  ;;  %v4005_v17 = vpop.f32.mrb[16].mxu0 }
 0x11b   : > { %v942_v3 = vadd.f32 %v4551_v46, %v3989_v1  ;;  %v933_v18 = vpop.f32.mrb[17].mxu1  ;;  %v4006_v22 = vpop.f32.mrb[17].mxu0 }
 0x11c   : > { %v934_v11 = vadd.f32 %v5630_v26, %v933_v18  ;;  %v4552_v12 = vpop.f32.mrb[18].mxu1  ;;  %v4007_v19 = vadd.f32 %v4006_v22, %v4005_v17  ;;  %v4008_v20 = vpop.f32.mrb[18].mxu0 }
 0x11d   : > { %v945_v28 = vadd.f32 %v4552_v12, %v3992_v8  ;;  %v936_v29 = vpop.f32.mrb[19].mxu1  ;;  %v4009_v31 = vpop.f32.mrb[19].mxu0  ;;  %v4877_v8 = vld [vmem:[%s5182_s14 + $0x13c] ss:$12 sps:$4 sm:$0xff]   ;;  %v4881_v12 = vld [vmem:[%s5182_s14 + $0x140] ss:$12 sps:$4 sm:$0xff]  }
 0x11e   : > { %v937_v50 = vadd.f32 %v5634_v34, %v936_v29  ;;  %v4010_v54 = vadd.f32 %v4009_v31, %v4008_v20  ;;  %v4885_v29 = vld [vmem:[%s5182_s14 + $0x16c] ss:$12 sps:$4 sm:$0xff]  }
 0x11f   : > { %v1575_v35 = vpack.c.bf16 %v945_v28, %v942_v3  ;;  %4658 = vmatmul.mubr.bf16.gmra.mrb[124].mxu1 %v4869_v30  ;;  %2278 = vmatmul.mubr.bf16.gmra.mrb[124].mxu0 %v5492_v58  ;;  %v4888_v31 = vld [vmem:[%s5182_s14 + $0x158] ss:$12 sps:$4 sm:$0xff]  }
 0x120   : > { %v1574_v36 = vpack.c.bf16 %v937_v50, %v934_v11  ;;  %4661 = vmatprep.mubr.bf16.mxu1 %v4870_v23  ;;  %2285 = vmatprep.mubr.bf16.mxu0 %v4874_v24 }
 0x121   : > { %1592 = vst.msk [vmem:[#allocation2 + $0x8] sm:$0xff] %vm1590_vm0, %v1575_v35 }
 0x122   : > { %1591 = vst.msk [vmem:[#allocation2] sm:$0xff] %vm1590_vm0, %v1574_v36  ;;  %v4555_v26 = vpop.f32.mrb[20].mxu1  ;;  %v4011_v40 = vpop.f32.mrb[20].mxu0 }
 0x123   : > { %v958_v43 = vadd.f32 %v4555_v26, %v4001_v7  ;;  %v949_v47 = vpop.f32.mrb[21].mxu1  ;;  %v4012_v34 = vpop.f32.mrb[21].mxu0  ;;  %v4880_v7 = vld [vmem:[%s5182_s14 + $0x128] ss:$12 sps:$4 sm:$0xff]  }
 0x124   : > { %v950_v1 = vadd.f32 %v3995_v59, %v949_v47  ;;  %v4556_v9 = vpop.f32.mrb[22].mxu1  ;;  %v4013_v15 = vadd.f32 %v4012_v34, %v4011_v40  ;;  %v4014_v58 = vpop.f32.mrb[22].mxu0 }
 0x125   : > { %v961_v13 = vadd.f32 %v4556_v9, %v4004_v42  ;;  %v952_v33 = vpop.f32.mrb[23].mxu1  ;;  %v4015_v39 = vpop.f32.mrb[23].mxu0  ;;  %v4887_v9 = vld [vmem:[%s5182_s14 + $0x168] ss:$12 sps:$4 sm:$0xff]  }
 0x126   : > { %v953_v45 = vadd.f32 %v5653_v25, %v952_v33  ;;  %v4016_v49 = vadd.f32 %v4015_v39, %v4014_v58  ;;  %v4873_v25 = vld [vmem:[%s5182_s14 + $0x110] ss:$12 sps:$4 sm:$0xff]  }
 0x127   : > { %v1577_v55 = vpack.c.bf16 %v961_v13, %v958_v43  ;;  %4662 = vmatmul.mubr.bf16.gmra.mrb[128].mxu1 %v4871_v56  ;;  %2286 = vmatmul.mubr.bf16.gmra.mrb[128].mxu0 %v4876_v62 }
 0x128   : > { %v1576_v60 = vpack.c.bf16 %v953_v45, %v950_v1  ;;  %4665 = vmatprep.mubr.bf16.mxu1 %v4872_v27  ;;  %2293 = vmatprep.mubr.bf16.mxu0 %v4877_v8 }
 0x129   : > { %1594 = vst.msk [vmem:[#allocation2 + $0x18] sm:$0xff] %vm1590_vm0, %v1577_v55 }
 0x12a   : > { %1593 = vst.msk [vmem:[#allocation2 + $0x10] sm:$0xff] %vm1590_vm0, %v1576_v60  ;;  %v4559_v59 = vpop.f32.mrb[24].mxu1  ;;  %v4017_v61 = vpop.f32.mrb[24].mxu0 }
 0x12b   : > { %v974_v0 = vadd.f32 %v4559_v59, %v4013_v15  ;;  %v965_v41 = vpop.f32.mrb[25].mxu1  ;;  %v4018_v37 = vpop.f32.mrb[25].mxu0  ;;  %v4889_v15 = vld [vmem:[%s5182_s14 + $0x170] ss:$12 sps:$4 sm:$0xff]  }
 0x12c   : > { %v966_v48 = vadd.f32 %v4007_v19, %v965_v41  ;;  %v4560_v4 = vpop.f32.mrb[26].mxu1  ;;  %v4019_v5 = vadd.f32 %v4018_v37, %v4017_v61  ;;  %v4020_v53 = vpop.f32.mrb[26].mxu0  ;;  %v4884_v19 = vld [vmem:[%s5182_s14 + $0x150] ss:$12 sps:$4 sm:$0xff]   ;;  %s3964_s14 = sshll.u32 %s6244_s15, 8 }
 0x12d   : > { %v977_v10 = vadd.f32 %v4560_v4, %v4016_v49  ;;  %v968_v14 = vpop.f32.mrb[27].mxu1  ;;  %v4021_v16 = vpop.f32.mrb[27].mxu0  ;;  %s6159_s21 = scalar_lea.vmem %s6238_s4, %s3964_s14 }
 0x12e   : > { %v969_v42 = vadd.f32 %v4010_v54, %v968_v14  ;;  %v4022_v46 = vadd.f32 %v4021_v16, %v4020_v53 }
 0x12f   : > { %v1579_v17 = vpack.c.bf16 %v977_v10, %v974_v0  ;;  %4666 = vmatmul.mubr.bf16.gmra.mrb[132].mxu1 %v4873_v25  ;;  %2294 = vmatmul.mubr.bf16.gmra.mrb[132].mxu0 %v4879_v44 }
 0x130   : > { %v1578_v3 = vpack.c.bf16 %v969_v42, %v966_v48  ;;  %4669 = vmatprep.mubr.bf16.mxu1 %v4880_v7  ;;  %2301 = vmatprep.mubr.bf16.mxu0 %v4882_v57  ;;  %v2495_v7 = vld [vmem:[#allocation2] sm:$0xff] }
 0x131   : > { %1596 = vst.msk [vmem:[#allocation2 + $0x28] sm:$0xff] %vm1590_vm0, %v1579_v17 }
 0x132   : > { %1595 = vst.msk [vmem:[#allocation2 + $0x20] sm:$0xff] %vm1590_vm0, %v1578_v3  ;;  %v4023_v18 = vpop.f32.mrb[28].mxu0  ;;  %v4563_v22 = vpop.f32.mrb[28].mxu1 }
 0x133   : > { %v4024_v30 = vpop.f32.mrb[29].mxu0  ;;  %v981_v11 = vpop.f32.mrb[29].mxu1 }
 0x134   : > { %v4025_v20 = vadd.f32 %v4024_v30, %v4023_v18  ;;  %v982_v23 = vadd.f32 %v4019_v5, %v981_v11  ;;  %v4026_v24 = vpop.f32.mrb[30].mxu0  ;;  %v4564_v28 = vpop.f32.mrb[30].mxu1  ;;  %v2561_v11 = vsel %vm1590_vm0, %v2495_v7, 0 }
 0x135   : > { %v4027_v50 = vpop.f32.mrb[31].mxu0  ;;  %v984_v54 = vpop.f32.mrb[31].mxu1 }
 0x136   : > { %v990_v35 = vadd.f32 %v4563_v22, %v4025_v20  ;;  %v4028_v36 = vadd.f32 %v4027_v50, %v4026_v24  ;;  %v985_v26 = vadd.f32 %v4022_v46, %v984_v54 }
 0x137   : > { %4670 = vmatmul.mubr.bf16.gmra.mrb[136].mxu1 %v4881_v12  ;;  %2302 = vmatmul.mubr.bf16.gmra.mrb[136].mxu0 %v4884_v19 }
 0x138   : > { %v993_v40 = vadd.f32 %v4564_v28, %v4028_v36  ;;  %v1580_v43 = vpack.c.bf16 %v985_v26, %v982_v23  ;;  %2309 = vmatprep.mubr.bf16.mxu0 %v4885_v29  ;;  %4673 = vmatprep.mubr.bf16.mxu1 %v4888_v31 }
 0x13a   : > { %v1581_v47 = vpack.c.bf16 %v993_v40, %v990_v35  ;;  %1597 = vst.msk [vmem:[#allocation2 + $0x30] sm:$0xff] %vm1590_vm0, %v1580_v43  ;;  %v4029_v34 = vpop.f32.mrb[32].mxu0  ;;  %v4567_v56 = vpop.f32.mrb[32].mxu1 }
 0x13b   : > { %v4030_v62 = vpop.f32.mrb[33].mxu0  ;;  %v997_v1 = vpop.f32.mrb[33].mxu1 }
 0x13c   : > { %1598 = vst.msk [vmem:[#allocation2 + $0x38] sm:$0xff] %vm1590_vm0, %v1581_v47  ;;  %v4031_v58 = vadd.f32 %v4030_v62, %v4029_v34  ;;  %v4032_v27 = vpop.f32.mrb[34].mxu0  ;;  %v4568_v8 = vpop.f32.mrb[34].mxu1 }
 0x13d   : > { %v4033_v13 = vpop.f32.mrb[35].mxu0  ;;  %v1000_v33 = vpop.f32.mrb[35].mxu1 }
 0x13e   : > { %v998_v39 = vadd.f32 %v4031_v58, %v997_v1  ;;  %v4034_v45 = vadd.f32 %v4033_v13, %v4032_v27 }
 0x13f   : > { %2310 = vmatmul.mubr.bf16.gmra.mrb[140].mxu0 %v4887_v9  ;;  %4674 = vmatmul.mubr.bf16.gmra.mrb[140].mxu1 %v4889_v15 }
 0x140   : > { %v1001_v49 = vadd.f32 %v4034_v45, %v1000_v33 }
 0x142   : > { %v1582_v55 = vpack.c.bf16 %v1001_v49, %v998_v39  ;;  %v4035_v60 = vpop.f32.mrb[36].mxu0  ;;  %v4571_v59 = vpop.f32.mrb[36].mxu1 }
 0x143   : > { %v4036_v61 = vpop.f32.mrb[37].mxu0  ;;  %v1013_v0 = vpop.f32.mrb[37].mxu1 }
 0x144   : > { %1599 = vst.msk [vmem:[#allocation2 + $0x40] sm:$0xff] %vm1590_vm0, %v1582_v55  ;;  %v4037_v41 = vadd.f32 %v4036_v61, %v4035_v60  ;;  %v4038_v37 = vpop.f32.mrb[38].mxu0  ;;  %v4572_v25 = vpop.f32.mrb[38].mxu1 }
 0x145   : > { %v4039_v44 = vpop.f32.mrb[39].mxu0  ;;  %v1016_v48 = vpop.f32.mrb[39].mxu1 }
 0x146   : > { %v1006_v4 = vadd.f32 %v4567_v56, %v4037_v41  ;;  %v4040_v5 = vadd.f32 %v4039_v44, %v4038_v37 }
 0x148   : > { %v1009_v53 = vadd.f32 %v4568_v8, %v4040_v5 }
 0x14a   : > { %v1583_v57 = vpack.c.bf16 %v1009_v53, %v1006_v4  ;;  %v4041_v10 = vpop.f32.mrb[40].mxu0  ;;  %v4575_v14 = vpop.f32.mrb[40].mxu1 }
 0x14b   : > { %v1038_v16 = vadd.f32 %v4575_v14, %v5640_v52  ;;  %v4042_v42 = vpop.f32.mrb[41].mxu0  ;;  %v1029_v46 = vpop.f32.mrb[41].mxu1  ;;  %v2503_v17 = vld [vmem:[#allocation2 + $0x40] sm:$0xff] }
 0x14c   : > { %1600 = vst.msk [vmem:[#allocation2 + $0x48] sm:$0xff] %vm1590_vm0, %v1583_v57  ;;  %v4043_v3 = vadd.f32 %v4042_v42, %v4041_v10  ;;  %v1030_v18 = vadd.f32 %v5627_v21, %v1029_v46  ;;  %v4044_v22 = vpop.f32.mrb[42].mxu0  ;;  %v4576_v30 = vpop.f32.mrb[42].mxu1  ;;  %4693 = vmatprep.subr.msk.bf16.mxu1 %vm1590_vm0, %v2503_v17  ;;  %v2496_v21 = vld [vmem:[#allocation2 + $0x8] sm:$0xff] }
 0x14d   : > { %v1041_v12 = vadd.f32 %v4576_v30, %v5643_v38  ;;  %v4045_v19 = vpop.f32.mrb[43].mxu0  ;;  %v1032_v20 = vpop.f32.mrb[43].mxu1  ;;  %4374 = vmatpush3.bf16.xpose.msra.mxu1 %v2561_v11  ;;  %v2564_v56 = vsel %vm1590_vm0, %v2496_v21, 0 }
 0x14e   : > { %v1014_v52 = vadd.f32 %v4043_v3, %v1013_v0  ;;  %v4046_v23 = vadd.f32 %v4045_v19, %v4044_v22  ;;  %v1033_v24 = vadd.f32 %v5632_v32, %v1032_v20 }
 0x14f   : > { %v1587_v28 = vpack.c.bf16 %v1041_v12, %v1038_v16  ;;  %v2499_v12 = vld [vmem:[#allocation2 + $0x20] sm:$0xff] }
 0x150   : > { %v1017_v29 = vadd.f32 %v4046_v23, %v1016_v48  ;;  %v1586_v31 = vpack.c.bf16 %v1033_v24, %v1030_v18  ;;  %v2498_v48 = vld [vmem:[#allocation2 + $0x18] sm:$0xff] }
 0x151   : > { %1604 = vst.msk [vmem:[#allocation2 + $0x68] sm:$0xff] %vm1590_vm0, %v1587_v28  ;;  %v2570_v42 = vsel %vm1590_vm0, %v2498_v48, 0 }
 0x152   : > { %v1584_v50 = vpack.c.bf16 %v1017_v29, %v1014_v52  ;;  %1603 = vst.msk [vmem:[#allocation2 + $0x60] sm:$0xff] %vm1590_vm0, %v1586_v31  ;;  %v4047_v54 = vpop.f32.mrb[44].mxu0  ;;  %v4579_v35 = vpop.f32.mrb[44].mxu1  ;;  %v2573_v31 = vsel %vm1590_vm0, %v2499_v12, 0 }
 0x153   : > { %v1054_v38 = vadd.f32 %v4579_v35, %v5658_v6  ;;  %v4048_v36 = vpop.f32.mrb[45].mxu0  ;;  %v1045_v26 = vpop.f32.mrb[45].mxu1  ;;  %v2504_v40 = vld [vmem:[#allocation2 + $0x48] sm:$0xff] }
 0x154   : > { %1601 = vst.msk [vmem:[#allocation2 + $0x50] sm:$0xff] %vm1590_vm0, %v1584_v50  ;;  %v4049_v43 = vadd.f32 %v4048_v36, %v4047_v54  ;;  %v1046_v32 = vadd.f32 %v5648_v51, %v1045_v26  ;;  %v4050_v47 = vpop.f32.mrb[46].mxu0  ;;  %v4580_v34 = vpop.f32.mrb[46].mxu1  ;;  %4694 = vmatprep.subr.msk.bf16.mxu1 %vm1590_vm0, %v2504_v40  ;;  %v2497_v51 = vld [vmem:[#allocation2 + $0x10] sm:$0xff]  ;;  %v2500_v40 = vld [vmem:[#allocation2 + $0x28] sm:$0xff] }
 0x155   : > { %v1057_v62 = vadd.f32 %v4580_v34, %v5661_v63  ;;  %v4051_v1 = vpop.f32.mrb[47].mxu0  ;;  %v1048_v9 = vpop.f32.mrb[47].mxu1  ;;  %4376 = vmatpush3.bf16.xpose.msra.mxu1 %v2564_v56 }
 0x156   : > { %v1022_v6 = vadd.f32 %v4571_v59, %v4049_v43  ;;  %v4052_v15 = vadd.f32 %v4051_v1, %v4050_v47  ;;  %v1049_v58 = vadd.f32 %v5651_v2, %v1048_v9  ;;  %v2567_v2 = vsel %vm1590_vm0, %v2497_v51, 0 }
 0x157   : > { %v1589_v27 = vpack.c.bf16 %v1057_v62, %v1054_v38  ;;  %v2576_v9 = vsel %vm1590_vm0, %v2500_v40, 0 }
 0x158   : > { %v1025_v8 = vadd.f32 %v4572_v25, %v4052_v15  ;;  %v1588_v13 = vpack.c.bf16 %v1049_v58, %v1046_v32  ;;  %v2508_v54 = vld [vmem:[#allocation2 + $0x68] sm:$0xff] }
 0x159   : > { %1606 = vst.msk [vmem:[#allocation2 + $0x78] sm:$0xff] %vm1590_vm0, %v1589_v27  ;;  %v2507_v3 = vld [vmem:[#allocation2 + $0x60] sm:$0xff] }
 0x15a   : > { %v1585_v33 = vpack.c.bf16 %v1025_v8, %v1022_v6  ;;  %1605 = vst.msk [vmem:[#allocation2 + $0x70] sm:$0xff] %vm1590_vm0, %v1588_v13  ;;  %v4117_v39 = vpop.f32.mrb[48].mxu1  ;;  %v4599_v45 = vpop.f32.mrb[48].mxu0 }
 0x15b   : > { %v4118_v49 = vpop.f32.mrb[49].mxu1  ;;  %v2505_v63 = vld [vmem:[#allocation2 + $0x50] sm:$0xff]  ;;  %v1447_v55 = vpop.f32.mrb[49].mxu0 }
 0x15c   : > { %1602 = vst.msk [vmem:[#allocation2 + $0x58] sm:$0xff] %vm1590_vm0, %v1585_v33  ;;  %v4119_v60 = vadd.f32 %v4118_v49, %v4117_v39  ;;  %v4120_v59 = vpop.f32.mrb[50].mxu1  ;;  %4695 = vmatprep.subr.msk.bf16.mxu1 %vm1590_vm0, %v2505_v63  ;;  %v4600_v61 = vpop.f32.mrb[50].mxu0  ;;  %v2501_v33 = vld [vmem:[#allocation2 + $0x30] sm:$0xff] }
 0x15d   : > { %v4121_v0 = vpop.f32.mrb[51].mxu1  ;;  %4378 = vmatpush3.bf16.xpose.msra.mxu1 %v2567_v2  ;;  %v1450_v41 = vpop.f32.mrb[51].mxu0  ;;  %v2579_v2 = vsel %vm1590_vm0, %v2501_v33, 0 }
 0x15e   : > { %v4122_v37 = vadd.f32 %v4121_v0, %v4120_v59  ;;  %v1448_v25 = vadd.f32 %v4119_v60, %v1447_v55 }
 0x160   : > { %v1451_v44 = vadd.f32 %v4122_v37, %v1450_v41  ;;  %v2510_v41 = vld [vmem:[#allocation2 + $0x78] sm:$0xff] }
 0x161   : > { %v2509_v58 = vld [vmem:[#allocation2 + $0x70] sm:$0xff] }
 0x162   : > { %v1607_v4 = vpack.c.bf16 %v1451_v44, %v1448_v25  ;;  %v4123_v5 = vpop.f32.mrb[52].mxu1  ;;  %v4603_v53 = vpop.f32.mrb[52].mxu0 }
 0x163   : > { %v4124_v7 = vpop.f32.mrb[53].mxu1  ;;  %v2506_v57 = vld [vmem:[#allocation2 + $0x58] sm:$0xff]  ;;  %v1463_v10 = vpop.f32.mrb[53].mxu0 }
 0x164   : > { %1623 = vst.msk [vmem:[#allocation3] sm:$0xff] %vm1590_vm0, %v1607_v4  ;;  %v4125_v14 = vadd.f32 %v4124_v7, %v4123_v5  ;;  %v4126_v16 = vpop.f32.mrb[54].mxu1  ;;  %4696 = vmatprep.subr.msk.bf16.mxu1 %vm1590_vm0, %v2506_v57  ;;  %v4604_v46 = vpop.f32.mrb[54].mxu0  ;;  %v2502_v4 = vld [vmem:[#allocation2 + $0x38] sm:$0xff] }
 0x165   : > { %v4127_v17 = vpop.f32.mrb[55].mxu1  ;;  %4380 = vmatpush3.bf16.xpose.msra.mxu1 %v2570_v42  ;;  %v1466_v18 = vpop.f32.mrb[55].mxu0  ;;  %v2582_v42 = vsel %vm1590_vm0, %v2502_v4, 0 }
 0x166   : > { %v1456_v22 = vadd.f32 %v4599_v45, %v4125_v14  ;;  %v4128_v30 = vadd.f32 %v4127_v17, %v4126_v16  ;;  %4697 = vmatprep.subr.msk.bf16.mxu1 %vm1590_vm0, %v2507_v3 }
 0x168   : > { %v1459_v11 = vadd.f32 %v4600_v61, %v4128_v30 }
 0x16a   : > { %v1608_v19 = vpack.c.bf16 %v1459_v11, %v1456_v22  ;;  %v4129_v20 = vpop.f32.mrb[56].mxu1  ;;  %v5720_v52 = vpop.f32.mrb[56].mxu0 }
 0x16b   : > { %v4130_v23 = vpop.f32.mrb[57].mxu1  ;;  %v1479_v24 = vpop.f32.mrb[57].mxu0 }
 0x16c   : > { %1624 = vst.msk [vmem:[#allocation3 + $0x8] sm:$0xff] %vm1590_vm0, %v1608_v19  ;;  %v4131_v28 = vadd.f32 %v4130_v23, %v4129_v20  ;;  %v4132_v29 = vpop.f32.mrb[58].mxu1  ;;  %v5724_v21 = vpop.f32.mrb[58].mxu0 }
 0x16d   : > { %v4133_v50 = vpop.f32.mrb[59].mxu1  ;;  %4382 = vmatpush3.bf16.xpose.msra.mxu1 %v2573_v31  ;;  %v1482_v35 = vpop.f32.mrb[59].mxu0 }
 0x16e   : > { %v4134_v38 = vadd.f32 %v4133_v50, %v4132_v29  ;;  %v1464_v36 = vadd.f32 %v4131_v28, %v1463_v10  ;;  %4698 = vmatprep.subr.msk.bf16.mxu1 %vm1590_vm0, %v2508_v54 }
 0x170   : > { %v1467_v26 = vadd.f32 %v4134_v38, %v1466_v18 }
 0x172   : > { %v1609_v43 = vpack.c.bf16 %v1467_v26, %v1464_v36  ;;  %v4135_v32 = vpop.f32.mrb[60].mxu1  ;;  %v5727_v47 = vpop.f32.mrb[60].mxu0 }
 0x173   : > { %v4136_v34 = vpop.f32.mrb[61].mxu1  ;;  %v1495_v56 = vpop.f32.mrb[61].mxu0 }
 0x174   : > { %1625 = vst.msk [vmem:[#allocation3 + $0x10] sm:$0xff] %vm1590_vm0, %v1609_v43  ;;  %v4137_v62 = vadd.f32 %v4136_v34, %v4135_v32  ;;  %v4138_v1 = vpop.f32.mrb[62].mxu1  ;;  %v5731_v6 = vpop.f32.mrb[62].mxu0 }
 0x175   : > { %v4139_v15 = vpop.f32.mrb[63].mxu1  ;;  %4384 = vmatpush3.bf16.xpose.msra.mxu1 %v2576_v9  ;;  %v1498_v27 = vpop.f32.mrb[63].mxu0 }
 0x176   : > { %v1472_v8 = vadd.f32 %v4603_v53, %v4137_v62  ;;  %v4140_v13 = vadd.f32 %v4139_v15, %v4138_v1  ;;  %4699 = vmatprep.subr.msk.bf16.mxu1 %vm1590_vm0, %v2509_v58 }
 0x178   : > { %v1475_v51 = vadd.f32 %v4604_v46, %v4140_v13 }
 0x17a   : > { %v1610_v39 = vpack.c.bf16 %v1475_v51, %v1472_v8  ;;  %v4141_v45 = vpop.f32.mrb[64].mxu1  ;;  %v5734_v49 = vpop.f32.mrb[64].mxu0 }
 0x17b   : > { %v4142_v63 = vpop.f32.mrb[65].mxu1  ;;  %v5736_v55 = vpop.f32.mrb[65].mxu0 }
 0x17c   : > { %1626 = vst.msk [vmem:[#allocation3 + $0x18] sm:$0xff] %vm1590_vm0, %v1610_v39  ;;  %v4143_v60 = vadd.f32 %v4142_v63, %v4141_v45  ;;  %v4144_v59 = vpop.f32.mrb[66].mxu1  ;;  %v5740_v61 = vpop.f32.mrb[66].mxu0 }
 0x17d   : > { %v4145_v0 = vpop.f32.mrb[67].mxu1  ;;  %4386 = vmatpush3.bf16.xpose.msra.mxu1 %v2579_v2  ;;  %v5742_v37 = vpop.f32.mrb[67].mxu0 }
 0x17e   : > { %v4146_v25 = vadd.f32 %v4145_v0, %v4144_v59  ;;  %v1480_v44 = vadd.f32 %v4143_v60, %v1479_v24  ;;  %4700 = vmatprep.subr.msk.bf16.mxu1 %vm1590_vm0, %v2510_v41 }
 0x180   : > { %v1483_v48 = vadd.f32 %v4146_v25, %v1482_v35 }
 0x182   : > { %v1611_v5 = vpack.c.bf16 %v1483_v48, %v1480_v44  ;;  %v4147_v53 = vpop.f32.mrb[68].mxu1  ;;  %v5745_v7 = vpop.f32.mrb[68].mxu0 }
 0x183   : > { %v4148_v57 = vpop.f32.mrb[69].mxu1  ;;  %v5747_v10 = vpop.f32.mrb[69].mxu0 }
 0x184   : > { %1627 = vst.msk [vmem:[#allocation3 + $0x20] sm:$0xff] %vm1590_vm0, %v1611_v5  ;;  %v4149_v14 = vadd.f32 %v4148_v57, %v4147_v53  ;;  %v4150_v16 = vpop.f32.mrb[70].mxu1  ;;  %v5751_v46 = vpop.f32.mrb[70].mxu0 }
 0x185   : > { %v4151_v17 = vpop.f32.mrb[71].mxu1  ;;  %4388 = vmatpush3.bf16.xpose.msra.mxu1 %v2582_v42  ;;  %v5753_v3 = vpop.f32.mrb[71].mxu0 }
 0x186   : > { %v1488_v18 = vadd.f32 %v5720_v52, %v4149_v14  ;;  %v4152_v22 = vadd.f32 %v4151_v17, %v4150_v16 }
 0x188   : > { %v1491_v30 = vadd.f32 %v5724_v21, %v4152_v22 }
 0x18a   : > { %v1612_v11 = vpack.c.bf16 %v1491_v30, %v1488_v18  ;;  %v4153_v12 = vpop.f32.mrb[72].mxu1  ;;  %v5757_v19 = vpop.f32.mrb[72].mxu0 }
 0x18b   : > { %v4154_v20 = vpop.f32.mrb[73].mxu1  ;;  %v5759_v23 = vpop.f32.mrb[73].mxu0 }
 0x18c   : > { %1628 = vst.msk [vmem:[#allocation3 + $0x28] sm:$0xff] %vm1590_vm0, %v1612_v11  ;;  %v4155_v24 = vadd.f32 %v4154_v20, %v4153_v12  ;;  %v4156_v28 = vpop.f32.mrb[74].mxu1  ;;  %v5762_v29 = vpop.f32.mrb[74].mxu0 }
 0x18d   : > { %v4157_v31 = vpop.f32.mrb[75].mxu1  ;;  %v5764_v50 = vpop.f32.mrb[75].mxu0 }
 0x18e   : > { %v4158_v52 = vadd.f32 %v4157_v31, %v4156_v28  ;;  %v1496_v54 = vadd.f32 %v4155_v24, %v1495_v56 }
 0x190   : > { %v1499_v35 = vadd.f32 %v4158_v52, %v1498_v27  ;;  %v3414_v52 = vld [vmem:[#allocation3] sm:$0xff] }
 0x192   : > { %v1613_v21 = vpack.c.bf16 %v1499_v35, %v1496_v54  ;;  %v4159_v38 = vpop.f32.mrb[76].mxu1  ;;  %v5766_v36 = vpop.f32.mrb[76].mxu0 }
 0x193   : > { %v4160_v26 = vpop.f32.mrb[77].mxu1  ;;  %v5768_v40 = vpop.f32.mrb[77].mxu0 }
 0x194   : > { %1629 = vst.msk [vmem:[#allocation3 + $0x30] sm:$0xff] %vm1590_vm0, %v1613_v21  ;;  %v4161_v43 = vadd.f32 %v4160_v26, %v4159_v38  ;;  %v4162_v32 = vpop.f32.mrb[78].mxu1  ;;  %v5771_v34 = vpop.f32.mrb[78].mxu0 }
 0x195   : > { %v4163_v62 = vpop.f32.mrb[79].mxu1  ;;  %v5773_v1 = vpop.f32.mrb[79].mxu0 }
 0x196   : > { %v1504_v9 = vadd.f32 %v5727_v47, %v4161_v43  ;;  %v4164_v56 = vadd.f32 %v4163_v62, %v4162_v32 }
 0x198   : > { %v1507_v15 = vadd.f32 %v5731_v6, %v4164_v56 }
 0x19a   : > { %v1614_v58 = vpack.c.bf16 %v1507_v15, %v1504_v9  ;;  %v4165_v27 = vpop.f32.mrb[80].mxu1  ;;  %v4253_v8 = vpop.f32.mrb[80].mxu0 }
 0x19b   : > { %v4166_v13 = vpop.f32.mrb[81].mxu1  ;;  %v4254_v51 = vpop.f32.mrb[81].mxu0 }
 0x19c   : > { %1630 = vst.msk [vmem:[#allocation3 + $0x38] sm:$0xff] %vm1590_vm0, %v1614_v58  ;;  %v4167_v33 = vadd.f32 %v4166_v13, %v4165_v27  ;;  %v4168_v39 = vpop.f32.mrb[82].mxu1  ;;  %v5778_v45 = vadd.f32 %v4254_v51, %v4253_v8  ;;  %v4256_v63 = vpop.f32.mrb[82].mxu0  ;;  %v3415_v13 = vld [vmem:[#allocation3 + $0x8] sm:$0xff] }
 0x19d   : > { %v4169_v60 = vpop.f32.mrb[83].mxu1  ;;  %v4257_v59 = vpop.f32.mrb[83].mxu0 }
 0x19e   : > { %v4170_v2 = vadd.f32 %v4169_v60, %v4168_v39  ;;  %v1512_v47 = vadd.f32 %v4167_v33, %v5736_v55  ;;  %v5781_v0 = vadd.f32 %v4257_v59, %v4256_v63 }
 0x1a0   : > { %v1515_v6 = vadd.f32 %v4170_v2, %v5742_v37 }
 0x1a2   : > { %v1615_v41 = vpack.c.bf16 %v1515_v6, %v1512_v47  ;;  %v4171_v25 = vpop.f32.mrb[84].mxu1  ;;  %v4259_v44 = vpop.f32.mrb[84].mxu0 }
 0x1a3   : > { %v4172_v48 = vpop.f32.mrb[85].mxu1  ;;  %v4260_v4 = vpop.f32.mrb[85].mxu0 }
 0x1a4   : > { %1631 = vst.msk [vmem:[#allocation3 + $0x40] sm:$0xff] %vm1590_vm0, %v1615_v41  ;;  %v4173_v5 = vadd.f32 %v4172_v48, %v4171_v25  ;;  %v4174_v53 = vpop.f32.mrb[86].mxu1  ;;  %v5785_v57 = vadd.f32 %v4260_v4, %v4259_v44  ;;  %v4262_v14 = vpop.f32.mrb[86].mxu0 }
 0x1a5   : > { %v4175_v16 = vpop.f32.mrb[87].mxu1  ;;  %v4263_v42 = vpop.f32.mrb[87].mxu0 }
 0x1a6   : > { %v1520_v55 = vadd.f32 %v5734_v49, %v4173_v5  ;;  %v4176_v17 = vadd.f32 %v4175_v16, %v4174_v53  ;;  %v5788_v18 = vadd.f32 %v4263_v42, %v4262_v14  ;;  %v3416_v5 = vld [vmem:[#allocation3 + $0x10] sm:$0xff] }
 0x1a8   : > { %v1523_v37 = vadd.f32 %v5740_v61, %v4176_v17 }
 0x1aa   : > { %v1616_v22 = vpack.c.bf16 %v1523_v37, %v1520_v55  ;;  %v4177_v30 = vpop.f32.mrb[88].mxu1  ;;  %v4265_v11 = vpop.f32.mrb[88].mxu0 }
 0x1ab   : > { %v4178_v12 = vpop.f32.mrb[89].mxu1  ;;  %v3422_v20 = vld [vmem:[#allocation3 + $0x40] sm:$0xff]  ;;  %v4266_v24 = vpop.f32.mrb[89].mxu0 }
 0x1ac   : > { %1632 = vst.msk [vmem:[#allocation3 + $0x48] sm:$0xff] %vm1590_vm0, %v1616_v22  ;;  %v4179_v28 = vadd.f32 %v4178_v12, %v4177_v30  ;;  %v4180_v31 = vpop.f32.mrb[90].mxu1  ;;  %4421 = vmatprep.subr.bf16.mxu0 %v3422_v20  ;;  %v5792_v54 = vadd.f32 %v4266_v24, %v4265_v11  ;;  %v4268_v49 = vpop.f32.mrb[90].mxu0 }
 0x1ad   : > { %v4181_v35 = vpop.f32.mrb[91].mxu1  ;;  %4422 = vmatpush3.bf16.msra.mxu0 %v3414_v52  ;;  %v4269_v21 = vpop.f32.mrb[91].mxu0 }
 0x1ae   : > { %v4182_v38 = vadd.f32 %v4181_v35, %v4180_v31  ;;  %v1528_v61 = vadd.f32 %v4179_v28, %v5747_v10  ;;  %v5795_v26 = vadd.f32 %v4269_v21, %v4268_v49  ;;  %v3417_v31 = vld [vmem:[#allocation3 + $0x18] sm:$0xff] }
 0x1b0   : > { %v1531_v43 = vadd.f32 %v4182_v38, %v5753_v3 }
 0x1b2   : > { %v1617_v32 = vpack.c.bf16 %v1531_v43, %v1528_v61  ;;  %v4183_v62 = vpop.f32.mrb[92].mxu1  ;;  %v4271_v9 = vpop.f32.mrb[92].mxu0 }
 0x1b3   : > { %v4184_v56 = vpop.f32.mrb[93].mxu1  ;;  %v3423_v15 = vld [vmem:[#allocation3 + $0x48] sm:$0xff]  ;;  %v4272_v58 = vpop.f32.mrb[93].mxu0 }
 0x1b4   : > { %1633 = vst.msk [vmem:[#allocation3 + $0x50] sm:$0xff] %vm1590_vm0, %v1617_v32  ;;  %v4185_v27 = vadd.f32 %v4184_v56, %v4183_v62  ;;  %v4186_v8 = vpop.f32.mrb[94].mxu1  ;;  %4423 = vmatprep.subr.bf16.mxu0 %v3423_v15  ;;  %v5799_v51 = vadd.f32 %v4272_v58, %v4271_v9  ;;  %v4274_v33 = vpop.f32.mrb[94].mxu0 }
 0x1b5   : > { %v4187_v10 = vpop.f32.mrb[95].mxu1  ;;  %4424 = vmatpush3.bf16.msra.mxu0 %v3415_v13  ;;  %v4275_v39 = vpop.f32.mrb[95].mxu0 }
 0x1b6   : > { %v1536_v3 = vadd.f32 %v5745_v7, %v4185_v27  ;;  %v4188_v63 = vadd.f32 %v4187_v10, %v4186_v8  ;;  %v5802_v60 = vadd.f32 %v4275_v39, %v4274_v33  ;;  %v3418_v8 = vld [vmem:[#allocation3 + $0x20] sm:$0xff] }
 0x1b8   : > { %v1539_v59 = vadd.f32 %v5751_v46, %v4188_v63 }
 0x1ba   : > { %v1618_v2 = vpack.c.bf16 %v1539_v59, %v1536_v3  ;;  %v4189_v47 = vpop.f32.mrb[96].mxu1  ;;  %v4277_v6 = vpop.f32.mrb[96].mxu0 }
 0x1bb   : > { %v4190_v41 = vpop.f32.mrb[97].mxu1  ;;  %v3424_v25 = vld [vmem:[#allocation3 + $0x50] sm:$0xff]  ;;  %v4278_v44 = vpop.f32.mrb[97].mxu0 }
 0x1bc   : > { %1634 = vst.msk [vmem:[#allocation3 + $0x58] sm:$0xff] %vm1590_vm0, %v1618_v2  ;;  %v4191_v48 = vadd.f32 %v4190_v41, %v4189_v47  ;;  %v4192_v4 = vpop.f32.mrb[98].mxu1  ;;  %4425 = vmatprep.subr.bf16.mxu0 %v3424_v25  ;;  %v5806_v53 = vadd.f32 %v4278_v44, %v4277_v6  ;;  %v4280_v7 = vpop.f32.mrb[98].mxu0 }
 0x1bd   : > { %v4193_v14 = vpop.f32.mrb[99].mxu1  ;;  %4426 = vmatpush3.bf16.msra.mxu0 %v3416_v5  ;;  %v4281_v16 = vpop.f32.mrb[99].mxu0 }
 0x1be   : > { %v4194_v42 = vadd.f32 %v4193_v14, %v4192_v4  ;;  %v1544_v46 = vadd.f32 %v4191_v48, %v5759_v23  ;;  %v5809_v55 = vadd.f32 %v4281_v16, %v4280_v7  ;;  %v3419_v4 = vld [vmem:[#allocation3 + $0x28] sm:$0xff] }
 0x1c0   : > { %v1547_v17 = vadd.f32 %v4194_v42, %v5764_v50 }
 0x1c2   : > { %v1619_v37 = vpack.c.bf16 %v1547_v17, %v1544_v46  ;;  %v4195_v22 = vpop.f32.mrb[100].mxu1  ;;  %v4283_v30 = vpop.f32.mrb[100].mxu0 }
 0x1c3   : > { %v4196_v11 = vpop.f32.mrb[101].mxu1  ;;  %v3425_v12 = vld [vmem:[#allocation3 + $0x58] sm:$0xff]  ;;  %v4284_v20 = vpop.f32.mrb[101].mxu0 }
 0x1c4   : > { %1635 = vst.msk [vmem:[#allocation3 + $0x60] sm:$0xff] %vm1590_vm0, %v1619_v37  ;;  %v4197_v24 = vadd.f32 %v4196_v11, %v4195_v22  ;;  %v4198_v28 = vpop.f32.mrb[102].mxu1  ;;  %4427 = vmatprep.subr.bf16.mxu0 %v3425_v12  ;;  %v5813_v52 = vadd.f32 %v4284_v20, %v4283_v30  ;;  %v4286_v49 = vpop.f32.mrb[102].mxu0 }
 0x1c5   : > { %v4199_v23 = vpop.f32.mrb[103].mxu1  ;;  %4428 = vmatpush3.bf16.msra.mxu0 %v3417_v31  ;;  %v4287_v35 = vpop.f32.mrb[103].mxu0 }
 0x1c6   : > { %v1552_v50 = vadd.f32 %v5757_v19, %v4197_v24  ;;  %v4200_v21 = vadd.f32 %v4199_v23, %v4198_v28  ;;  %v5816_v38 = vadd.f32 %v4287_v35, %v4286_v49 }
 0x1c8   : > { %v1555_v61 = vadd.f32 %v5762_v29, %v4200_v21 }
 0x1ca   : > { %v1620_v43 = vpack.c.bf16 %v1555_v61, %v1552_v50  ;;  %v4201_v32 = vpop.f32.mrb[104].mxu1  ;;  %v4289_v62 = vpop.f32.mrb[104].mxu0 }
 0x1cb   : > { %v4202_v9 = vpop.f32.mrb[105].mxu1  ;;  %v3426_v56 = vld [vmem:[#allocation3 + $0x60] sm:$0xff]  ;;  %v4290_v15 = vpop.f32.mrb[105].mxu0 }
 0x1cc   : > { %1636 = vst.msk [vmem:[#allocation3 + $0x68] sm:$0xff] %vm1590_vm0, %v1620_v43  ;;  %v4203_v58 = vadd.f32 %v4202_v9, %v4201_v32  ;;  %v4204_v27 = vpop.f32.mrb[106].mxu1  ;;  %4429 = vmatprep.subr.bf16.mxu0 %v3426_v56  ;;  %v5820_v13 = vadd.f32 %v4290_v15, %v4289_v62  ;;  %v4292_v19 = vpop.f32.mrb[106].mxu0  ;;  %v3421_v56 = vld [vmem:[#allocation3 + $0x38] sm:$0xff] }
 0x1cd   : > { %v4205_v33 = vpop.f32.mrb[107].mxu1  ;;  %4430 = vmatpush3.bf16.msra.mxu0 %v3418_v8  ;;  %v4293_v10 = vpop.f32.mrb[107].mxu0 }
 0x1ce   : > { %v4206_v39 = vadd.f32 %v4205_v33, %v4204_v27  ;;  %v1560_v29 = vadd.f32 %v4203_v58, %v5768_v40  ;;  %v5823_v3 = vadd.f32 %v4293_v10, %v4292_v19 }
 0x1d0   : > { %v1563_v63 = vadd.f32 %v4206_v39, %v5773_v1 }
 0x1d2   : > { %v1621_v59 = vpack.c.bf16 %v1563_v63, %v1560_v29  ;;  %v4207_v2 = vpop.f32.mrb[108].mxu1  ;;  %v4295_v47 = vpop.f32.mrb[108].mxu0 }
 0x1d3   : > { %v4208_v6 = vpop.f32.mrb[109].mxu1  ;;  %v3427_v41 = vld [vmem:[#allocation3 + $0x68] sm:$0xff]  ;;  %v4296_v25 = vpop.f32.mrb[109].mxu0 }
 0x1d4   : > { %1637 = vst.msk [vmem:[#allocation3 + $0x70] sm:$0xff] %vm1590_vm0, %v1621_v59  ;;  %v4209_v44 = vadd.f32 %v4208_v6, %v4207_v2  ;;  %v4210_v48 = vpop.f32.mrb[110].mxu1  ;;  %4431 = vmatprep.subr.bf16.mxu0 %v3427_v41  ;;  %v5827_v5 = vadd.f32 %v4296_v25, %v4295_v47  ;;  %v4298_v7 = vpop.f32.mrb[110].mxu0 }
 0x1d5   : > { %v4211_v40 = vpop.f32.mrb[111].mxu1  ;;  %4432 = vmatpush3.bf16.msra.mxu0 %v3419_v4  ;;  %v4299_v14 = vpop.f32.mrb[111].mxu0 }
 0x1d6   : > { %v1568_v1 = vadd.f32 %v5766_v36, %v4209_v44  ;;  %v4212_v16 = vadd.f32 %v4211_v40, %v4210_v48  ;;  %v5830_v42 = vadd.f32 %v4299_v14, %v4298_v7  ;;  %v3420_v36 = vld [vmem:[#allocation3 + $0x30] sm:$0xff] }
 0x1d8   : > { %v1571_v46 = vadd.f32 %v5771_v34, %v4212_v16 }
 0x1da   : > { %v1622_v17 = vpack.c.bf16 %v1571_v46, %v1568_v1  ;;  %v4647_v37 = vpop.f32.mrb[112].mxu1  ;;  %v4301_v22 = vpop.f32.mrb[112].mxu0 }
 0x1db   : > { %v2361_v30 = vadd.f32 %v4647_v37, %v5785_v57  ;;  %v2352_v11 = vpop.f32.mrb[113].mxu1  ;;  %v3428_v12 = vld [vmem:[#allocation3 + $0x70] sm:$0xff]  ;;  %v4302_v20 = vpop.f32.mrb[113].mxu0 }
 0x1dc   : > { %1638 = vst.msk [vmem:[#allocation3 + $0x78] sm:$0xff] %vm1590_vm0, %v1622_v17  ;;  %v2353_v24 = vadd.f32 %v5778_v45, %v2352_v11  ;;  %v4648_v28 = vpop.f32.mrb[114].mxu1  ;;  %4433 = vmatprep.subr.bf16.mxu0 %v3428_v12  ;;  %v5836_v31 = vadd.f32 %v4302_v20, %v4301_v22  ;;  %v4304_v49 = vpop.f32.mrb[114].mxu0 }
 0x1dd   : > { %v2364_v34 = vadd.f32 %v4648_v28, %v5788_v18  ;;  %v2355_v23 = vpop.f32.mrb[115].mxu1  ;;  %4434 = vmatpush3.bf16.msra.mxu0 %v3420_v36  ;;  %v4305_v35 = vpop.f32.mrb[115].mxu0 }
 0x1de   : > { %v2356_v57 = vadd.f32 %v5781_v0, %v2355_v23  ;;  %v5840_v50 = vadd.f32 %v4305_v35, %v4304_v49 }
 0x1df   : > { %v2480_v21 = vpack.c.bf16 %v2364_v34, %v2361_v30 }
 0x1e0   : > { %v2479_v61 = vpack.c.bf16 %v2356_v57, %v2353_v24 }
 0x1e2   : > { %4389 = vmatprep.mubr.msk.bf16.mxu1 %vm1590_vm0, %v2479_v61  ;;  %v4651_v45 = vpop.f32.mrb[116].mxu1  ;;  %v4307_v43 = vpop.f32.mrb[116].mxu0 }
 0x1e3   : > { %4390 = vmatmul.mubr.msk.bf16.vlgmr.msra.gmra.mrb[144].mxu1 %vm1590_vm0, %v2479_v61  ;;  %v3429_v32 = vld [vmem:[#allocation3 + $0x78] sm:$0xff]  ;;  %v2377_v62 = vadd.f32 %v4651_v45, %v5799_v51  ;;  %v2368_v9 = vpop.f32.mrb[117].mxu1  ;;  %v4308_v18 = vpop.f32.mrb[117].mxu0 }
 0x1e4   : > { %4391 = vmatprep.mubr.msk.bf16.mxu1 %vm1590_vm0, %v2480_v21  ;;  %4435 = vmatprep.subr.bf16.mxu0 %v3429_v32  ;;  %v2369_v0 = vadd.f32 %v5792_v54, %v2368_v9  ;;  %v4652_v15 = vpop.f32.mrb[118].mxu1  ;;  %v4309_v58 = vadd.f32 %v4308_v18, %v4307_v43  ;;  %v4310_v27 = vpop.f32.mrb[118].mxu0 }
 0x1e5   : > { %4436 = vmatpush3.bf16.msra.mxu0 %v3421_v56  ;;  %v2380_v8 = vadd.f32 %v4652_v15, %v5802_v60  ;;  %v2371_v19 = vpop.f32.mrb[119].mxu1  ;;  %v4311_v33 = vpop.f32.mrb[119].mxu0 }
 0x1e6   : > { %v2372_v10 = vadd.f32 %v5795_v26, %v2371_v19  ;;  %v4312_v39 = vadd.f32 %v4311_v33, %v4310_v27 }
 0x1e7   : > { %v2482_v51 = vpack.c.bf16 %v2380_v8, %v2377_v62 }
 0x1e8   : > { %v2481_v29 = vpack.c.bf16 %v2372_v10, %v2369_v0 }
 0x1ea   : > { %v4655_v63 = vpop.f32.mrb[120].mxu1  ;;  %v4313_v59 = vpop.f32.mrb[120].mxu0 }
 0x1eb   : > { %4392 = vmatmul.mubr.msk.bf16.gmra.mrb[148].mxu1 %vm1590_vm0, %v2480_v21  ;;  %v2393_v2 = vadd.f32 %v4655_v63, %v5813_v52  ;;  %v2384_v54 = vpop.f32.mrb[121].mxu1  ;;  %v4314_v47 = vpop.f32.mrb[121].mxu0 }
 0x1ec   : > { %4393 = vmatprep.mubr.msk.bf16.mxu1 %vm1590_vm0, %v2481_v29  ;;  %v2385_v6 = vadd.f32 %v5806_v53, %v2384_v54  ;;  %v4656_v60 = vpop.f32.mrb[122].mxu1  ;;  %v4315_v41 = vadd.f32 %v4314_v47, %v4313_v59  ;;  %v4316_v25 = vpop.f32.mrb[122].mxu0 }
 0x1ed   : > { %v2396_v26 = vadd.f32 %v4656_v60, %v5816_v38  ;;  %v2387_v44 = vpop.f32.mrb[123].mxu1  ;;  %v4317_v48 = vpop.f32.mrb[123].mxu0 }
 0x1ee   : > { %v2388_v4 = vadd.f32 %v5809_v55, %v2387_v44  ;;  %v4318_v7 = vadd.f32 %v4317_v48, %v4316_v25 }
 0x1ef   : > { %v2484_v40 = vpack.c.bf16 %v2396_v26, %v2393_v2 }
 0x1f0   : > { %v2483_v14 = vpack.c.bf16 %v2388_v4, %v2385_v6 }
 0x1f2   : > { %v4659_v1 = vpop.f32.mrb[124].mxu1  ;;  %v4319_v52 = vpop.f32.mrb[124].mxu0 }
 0x1f3   : > { %4394 = vmatmul.mubr.msk.bf16.gmra.mrb[152].mxu1 %vm1590_vm0, %v2481_v29  ;;  %v2409_v16 = vadd.f32 %v4659_v1, %v5827_v5  ;;  %v2400_v46 = vpop.f32.mrb[125].mxu1  ;;  %v4320_v53 = vpop.f32.mrb[125].mxu0 }
 0x1f4   : > { %4395 = vmatprep.mubr.msk.bf16.mxu1 %vm1590_vm0, %v2482_v51  ;;  %v2401_v17 = vadd.f32 %v5820_v13, %v2400_v46  ;;  %v4660_v38 = vpop.f32.mrb[126].mxu1  ;;  %v4321_v37 = vadd.f32 %v4320_v53, %v4319_v52  ;;  %v4322_v22 = vpop.f32.mrb[126].mxu0 }
 0x1f5   : > { %v2412_v55 = vadd.f32 %v4660_v38, %v5830_v42  ;;  %v2403_v30 = vpop.f32.mrb[127].mxu1  ;;  %v4323_v11 = vpop.f32.mrb[127].mxu0 }
 0x1f6   : > { %v2404_v12 = vadd.f32 %v5823_v3, %v2403_v30  ;;  %v4324_v20 = vadd.f32 %v4323_v11, %v4322_v22 }
 0x1f7   : > { %v5861_v24 = vpack.c.bf16 %v2412_v55, %v2409_v16 }
 0x1f8   : > { %v2485_v28 = vpack.c.bf16 %v2404_v12, %v2401_v17 }
 0x1fa   : > { %v4663_v5 = vpop.f32.mrb[128].mxu1  ;;  %v4325_v36 = vpop.f32.mrb[128].mxu0 }
 0x1fb   : > { %4396 = vmatmul.mubr.msk.bf16.gmra.mrb[156].mxu1 %vm1590_vm0, %v2482_v51  ;;  %v2425_v49 = vadd.f32 %v4663_v5, %v4309_v58  ;;  %v2416_v34 = vpop.f32.mrb[129].mxu1  ;;  %v4326_v13 = vpop.f32.mrb[129].mxu0 }
 0x1fc   : > { %4397 = vmatprep.mubr.msk.bf16.mxu1 %vm1590_vm0, %v2483_v14  ;;  %v2417_v23 = vadd.f32 %v5836_v31, %v2416_v34  ;;  %v4664_v42 = vpop.f32.mrb[130].mxu1  ;;  %v4327_v35 = vadd.f32 %v4326_v13, %v4325_v36  ;;  %v4328_v57 = vpop.f32.mrb[130].mxu0 }
 0x1fd   : > { %v2428_v21 = vadd.f32 %v4664_v42, %v4312_v39  ;;  %v2419_v3 = vpop.f32.mrb[131].mxu1  ;;  %v4329_v61 = vpop.f32.mrb[131].mxu0 }
 0x1fe   : > { %v2420_v45 = vadd.f32 %v5840_v50, %v2419_v3  ;;  %v4330_v43 = vadd.f32 %v4329_v61, %v4328_v57 }
 0x1ff   : > { %v2488_v32 = vpack.c.bf16 %v2428_v21, %v2425_v49 }
 0x200   : > { %v2487_v62 = vpack.c.bf16 %v2420_v45, %v2417_v23 }
 0x202   : > { %v4667_v9 = vpop.f32.mrb[132].mxu1  ;;  %v4331_v18 = vpop.f32.mrb[132].mxu0 }
 0x203   : > { %4398 = vmatmul.mubr.msk.bf16.gmra.mrb[160].mxu1 %vm1590_vm0, %v2483_v14  ;;  %v2441_v56 = vadd.f32 %v4667_v9, %v4321_v37  ;;  %v2432_v0 = vpop.f32.mrb[133].mxu1  ;;  %v4332_v15 = vpop.f32.mrb[133].mxu0 }
 0x204   : > { %4399 = vmatprep.mubr.msk.bf16.mxu1 %vm1590_vm0, %v2484_v40  ;;  %v2433_v31 = vadd.f32 %v4315_v41, %v2432_v0  ;;  %v4668_v58 = vpop.f32.mrb[134].mxu1  ;;  %v4333_v27 = vadd.f32 %v4332_v15, %v4331_v18  ;;  %v4334_v8 = vpop.f32.mrb[134].mxu0 }
 0x205   : > { %v2444_v19 = vadd.f32 %v4668_v58, %v4324_v20  ;;  %v2435_v33 = vpop.f32.mrb[135].mxu1  ;;  %v4335_v10 = vpop.f32.mrb[135].mxu0 }
 0x206   : > { %v2436_v50 = vadd.f32 %v4318_v7, %v2435_v33  ;;  %v4336_v39 = vadd.f32 %v4335_v10, %v4334_v8 }
 0x207   : > { %v2490_v51 = vpack.c.bf16 %v2444_v19, %v2441_v56 }
 0x208   : > { %v2489_v29 = vpack.c.bf16 %v2436_v50, %v2433_v31 }
 0x20a   : > { %v4671_v63 = vpop.f32.mrb[136].mxu1  ;;  %v4337_v59 = vpop.f32.mrb[136].mxu0 }
 0x20b   : > { %4400 = vmatmul.mubr.msk.bf16.gmra.mrb[164].mxu1 %vm1590_vm0, %v2484_v40  ;;  %v2457_v2 = vadd.f32 %v4671_v63, %v4333_v27  ;;  %v2448_v54 = vpop.f32.mrb[137].mxu1  ;;  %v4338_v47 = vpop.f32.mrb[137].mxu0 }
 0x20c   : > { %4401 = vmatprep.mubr.msk.bf16.mxu1 %vm1590_vm0, %v2485_v28  ;;  %v2449_v6 = vadd.f32 %v4327_v35, %v2448_v54  ;;  %v4672_v60 = vpop.f32.mrb[138].mxu1  ;;  %v4339_v41 = vadd.f32 %v4338_v47, %v4337_v59  ;;  %v4340_v25 = vpop.f32.mrb[138].mxu0 }
 0x20d   : > { %v2460_v26 = vadd.f32 %v4672_v60, %v4336_v39  ;;  %v2451_v44 = vpop.f32.mrb[139].mxu1  ;;  %v4341_v48 = vpop.f32.mrb[139].mxu0 }
 0x20e   : > { %v2452_v4 = vadd.f32 %v4330_v43, %v2451_v44  ;;  %v4342_v7 = vadd.f32 %v4341_v48, %v4340_v25 }
 0x20f   : > { %v2492_v14 = vpack.c.bf16 %v2460_v26, %v2457_v2 }
 0x210   : > { %v2491_v1 = vpack.c.bf16 %v2452_v4, %v2449_v6 }
 0x212   : > { %v4343_v52 = vpop.f32.mrb[140].mxu0  ;;  %v4675_v16 = vpop.f32.mrb[140].mxu1 }
 0x213   : > { %4402 = vmatmul.mubr.msk.bf16.gmra.mrb[168].mxu1 %vm1590_vm0, %v2485_v28  ;;  %v4344_v40 = vpop.f32.mrb[141].mxu0  ;;  %v2464_v46 = vpop.f32.mrb[141].mxu1 }
 0x214   : > { %4403 = vmatprep.mubr.msk.bf16.mxu1 %vm1590_vm0, %v5861_v24  ;;  %v4345_v53 = vadd.f32 %v4344_v40, %v4343_v52  ;;  %v4346_v17 = vpop.f32.mrb[142].mxu0  ;;  %v2465_v38 = vadd.f32 %v4339_v41, %v2464_v46  ;;  %v4676_v37 = vpop.f32.mrb[142].mxu1 }
 0x215   : > { %v4347_v22 = vpop.f32.mrb[143].mxu0  ;;  %v2467_v55 = vpop.f32.mrb[143].mxu1 }
 0x216   : > { %v2473_v30 = vadd.f32 %v4675_v16, %v4345_v53  ;;  %v4348_v11 = vadd.f32 %v4347_v22, %v4346_v17  ;;  %v2468_v12 = vadd.f32 %v4342_v7, %v2467_v55 }
 0x218   : > { %v2476_v20 = vadd.f32 %v4676_v37, %v4348_v11  ;;  %v2493_v5 = vpack.c.bf16 %v2468_v12, %v2465_v38 }
 0x21a   : > { %v2494_v36 = vpack.c.bf16 %v2476_v20, %v2473_v30 }
 0x21b   : > { %4404 = vmatmul.mubr.msk.bf16.gmra.mrb[172].mxu1 %vm1590_vm0, %v5861_v24  ;;  %v2801_v24 = vlaneseq }
 0x21c   : > { %4405 = vmatprep.mubr.msk.bf16.mxu1 %vm1590_vm0, %v2487_v62 }
 0x21d   : > { %v5892_v28 = vshrl.u32 %v2801_v24, 7  ;;  %v5894_v49 = vand.u32 127, %v2801_v24 }
 0x21f   : > { %vm2870_vm1 = vcmp.le.s32.totalorder %v5894_v49, %v5892_v28  ;;  %v2803_v34 = vadd.s32 8, %v5892_v28  ;;  %v2804_v57 = vadd.s32 16, %v5892_v28  ;;  %v2805_v61 = vadd.s32 24, %v5892_v28 }
 0x220   : > { %v2806_v9 = vadd.s32 32, %v5892_v28  ;;  %v2807_v56 = vadd.s32 40, %v5892_v28  ;;  %v2808_v8 = vadd.s32 48, %v5892_v28  ;;  %v2809_v10 = vadd.s32 56, %v5892_v28 }
 0x221   : > { %vm2872_vm2 = vcmp.le.s32.totalorder %v5894_v49, %v2803_v34  ;;  %vm2874_vm3 = vcmp.le.s32.totalorder %v5894_v49, %v2804_v57  ;;  %vm2876_vm4 = vcmp.le.s32.totalorder %v5894_v49, %v2805_v61  ;;  %v2810_v63 = vadd.s32 64, %v5892_v28 }
 0x222   : > { %vm2878_vm5 = vcmp.le.s32.totalorder %v5894_v49, %v2806_v9  ;;  %vm2880_vm6 = vcmp.le.s32.totalorder %v5894_v49, %v2807_v56  ;;  %vm2882_vm7 = vcmp.le.s32.totalorder %v5894_v49, %v2808_v8  ;;  %vm2884_vm8 = vcmp.le.s32.totalorder %v5894_v49, %v2809_v10 }
 0x223   : > { %4406 = vmatmul.mubr.msk.bf16.gmra.mrb[176].mxu1 %vm1590_vm0, %v2487_v62  ;;  %v2811_v54 = vadd.s32 72, %v5892_v28  ;;  %vm2886_vm9 = vcmp.le.s32.totalorder %v5894_v49, %v2810_v63  ;;  %v2812_v25 = vadd.s32 80, %v5892_v28  ;;  %v2813_v48 = vadd.s32 88, %v5892_v28 }
 0x224   : > { %4407 = vmatprep.mubr.msk.bf16.mxu1 %vm1590_vm0, %v2488_v32  ;;  %v2814_v52 = vadd.s32 96, %v5892_v28  ;;  %v2815_v46 = vadd.s32 104, %v5892_v28  ;;  %v2816_v22 = vadd.s32 112, %v5892_v28  ;;  %v2817_v11 = vadd.s32 120, %v5892_v28 }
 0x225   : > { %vm2888_vm10 = vcmp.le.s32.totalorder %v5894_v49, %v2811_v54  ;;  %vm2890_vm11 = vcmp.le.s32.totalorder %v5894_v49, %v2812_v25  ;;  %vm2892_vm12 = vcmp.le.s32.totalorder %v5894_v49, %v2813_v48  ;;  %v2821_v56 = vadd.s32 152, %v5892_v28 }
 0x226   : > { %vm2894_vm13 = vcmp.le.s32.totalorder %v5894_v49, %v2814_v52  ;;  %vm2896_vm14 = vcmp.le.s32.totalorder %v5894_v49, %v2815_v46  ;;  %vm2898_vm15 = vcmp.le.s32.totalorder %v5894_v49, %v2816_v22  ;;  %v2823_v63 = vadd.s32 168, %v5892_v28 }
 0x22b   : > { %4408 = vmatmul.mubr.msk.bf16.gmra.mrb[180].mxu1 %vm1590_vm0, %v2488_v32 }
 0x22c   : > { %4409 = vmatprep.mubr.msk.bf16.mxu1 %vm1590_vm0, %v2489_v29 }
 0x233   : > { %4410 = vmatmul.mubr.msk.bf16.gmra.mrb[184].mxu1 %vm1590_vm0, %v2489_v29 }
 0x234   : > { %4411 = vmatprep.mubr.msk.bf16.mxu1 %vm1590_vm0, %v2490_v51 }
 0x23b   : > { %4412 = vmatmul.mubr.msk.bf16.gmra.mrb[188].mxu1 %vm1590_vm0, %v2490_v51 }
 0x23c   : > { %4413 = vmatprep.mubr.msk.bf16.mxu1 %vm1590_vm0, %v2491_v1 }
 0x243   : > { %4414 = vmatmul.mubr.msk.bf16.gmra.mrb[192].mxu1 %vm1590_vm0, %v2491_v1 }
 0x244   : > { %4415 = vmatprep.mubr.msk.bf16.mxu1 %vm1590_vm0, %v2492_v14 }
 0x24b   : > { %4416 = vmatmul.mubr.msk.bf16.gmra.mrb[196].mxu1 %vm1590_vm0, %v2492_v14 }
 0x24c   : > { %4417 = vmatprep.mubr.msk.bf16.mxu1 %vm1590_vm0, %v2493_v5 }
 0x253   : > { %4418 = vmatmul.mubr.msk.bf16.gmra.mrb[200].mxu1 %vm1590_vm0, %v2493_v5 }
 0x254   : > { %4419 = vmatprep.mubr.msk.bf16.mxu1 %vm1590_vm0, %v2494_v36 }
 0x25b   : > { %4420 = vmatmul.mubr.msk.bf16.gmra.mrb[204].mxu1 %vm1590_vm0, %v2494_v36 }
 0x2b6   : > { %v2642_v13 = vpop.f32.mrb[144].mxu1 }
 0x2b7   : > { %v2644_v23 = vpop.f32.mrb[145].mxu1  ;;  %v5899_v42 = vsel %vm2870_vm1, %v2642_v13, -inf  ;;  %vm2900_vm1 = vcmp.le.s32.totalorder %v5894_v49, %v2817_v11  ;;  %v2818_v13 = vadd.s32 128, %v5892_v28  ;;  %v2827_v11 = vadd.s32 200, %v5892_v28 }
 0x2b8   : > { %2999 = vmax.xlane.f32.xlu0 %v5899_v42  ;;  %v2646_v35 = vpop.f32.mrb[146].mxu1  ;;  %v5977_v23 = vadd.s32 128, %v5894_v49 }
 0x2b9   : > { %v2648_v21 = vpop.f32.mrb[147].mxu1  ;;  %v5904_v3 = vsel %vm2872_vm2, %v2646_v35, -inf  ;;  %v2819_v35 = vadd.s32 136, %v5892_v28 }
 0x2ba   : > { %vm2903_vm2 = vcmp.le.s32.totalorder %v5977_v23, %v2818_v13 }
 0x2bc   : > { %3002 = vmax.xlane.f32.xlu0 %v5904_v3 }
 0x2be   : > { %v2652_v45 = vpop.f32.mrb[148].mxu1 }
 0x2bf   : > { %v2654_v43 = vpop.f32.mrb[149].mxu1  ;;  %v5909_v32 = vsel %vm2874_vm3, %v2652_v45, -inf  ;;  %vm2905_vm3 = vcmp.le.s32.totalorder %v5977_v23, %v2819_v35 }
 0x2c0   : > { %3005 = vmax.xlane.f32.xlu1 %v5909_v32  ;;  %v2656_v62 = vpop.f32.mrb[150].mxu1 }
 0x2c1   : > { %v2658_v18 = vpop.f32.mrb[151].mxu1  ;;  %v5915_v0 = vsel %vm2876_vm4, %v2656_v62, -inf  ;;  %v2820_v62 = vadd.s32 144, %v5892_v28 }
 0x2c3   : > { %vm2907_vm4 = vcmp.le.s32.totalorder %v5977_v23, %v2820_v62  ;;  %v2829_v62 = vadd.s32 216, %v5892_v28 }
 0x2c4   : > { %3008 = vmax.xlane.f32.xlu1 %v5915_v0 }
 0x2c6   : > { %v2662_v15 = vpop.f32.mrb[152].mxu1 }
 0x2c7   : > { %v2664_v31 = vpop.f32.mrb[153].mxu1  ;;  %v5920_v58 = vsel %vm2878_vm5, %v2662_v15, -inf  ;;  %vm2909_vm5 = vcmp.le.s32.totalorder %v5977_v23, %v2821_v56 }
 0x2c8   : > { %3011 = vmax.xlane.f32.xlu0 %v5920_v58  ;;  %v2666_v27 = vpop.f32.mrb[154].mxu1 }
 0x2c9   : > { %v2668_v19 = vpop.f32.mrb[155].mxu1  ;;  %v5924_v33 = vsel %vm2880_vm6, %v2666_v27, -inf }
 0x2ca   : > { %3014 = vmax.xlane.f32.xlu1 %v5924_v33 }
 0x2ce   : > { %v2672_v50 = vpop.f32.mrb[156].mxu1 }
 0x2cf   : > { %v2674_v39 = vpop.f32.mrb[157].mxu1  ;;  %v5930_v51 = vsel %vm2882_vm7, %v2672_v50, -inf  ;;  %v2822_v50 = vadd.s32 160, %v5892_v28  ;;  %vm2913_vm7 = vcmp.le.s32.totalorder %v5977_v23, %v2823_v63 }
 0x2d0   : > { %3017 = vmax.xlane.f32.xlu0 %v5930_v51  ;;  %v2676_v29 = vpop.f32.mrb[158].mxu1 }
 0x2d1   : > { %v2678_v59 = vpop.f32.mrb[159].mxu1  ;;  %v5934_v2 = vsel %vm2884_vm8, %v2676_v29, -inf  ;;  %vm2911_vm6 = vcmp.le.s32.totalorder %v5977_v23, %v2822_v50 }
 0x2d2   : > { %3020 = vmax.xlane.f32.xlu1 %v5934_v2 }
 0x2d6   : > { %v2682_v47 = vpop.f32.mrb[160].mxu1 }
 0x2d7   : > { %v2684_v6 = vpop.f32.mrb[161].mxu1  ;;  %v5940_v60 = vsel %vm2886_vm9, %v2682_v47, -inf }
 0x2d8   : > { %3023 = vmax.xlane.f32.xlu0 %v5940_v60  ;;  %v2686_v41 = vpop.f32.mrb[162].mxu1 }
 0x2d9   : > { %v2688_v26 = vpop.f32.mrb[163].mxu1  ;;  %v5944_v44 = vsel %vm2888_vm10, %v2686_v41, -inf }
 0x2da   : > { %3026 = vmax.xlane.f32.xlu1 %v5944_v44  ;;  %v2824_v26 = vadd.s32 176, %v5892_v28 }
 0x2dc   : > { %vm2915_vm8 = vcmp.le.s32.totalorder %v5977_v23, %v2824_v26 }
 0x2de   : > { %v2692_v4 = vpop.f32.mrb[164].mxu1 }
 0x2df   : > { %v2694_v7 = vpop.f32.mrb[165].mxu1  ;;  %v5950_v14 = vsel %vm2890_vm11, %v2692_v4, -inf  ;;  %vm2921_vm11 = vcmp.le.s32.totalorder %v5977_v23, %v2827_v11  ;;  %v2833_v11 = vadd.s32 248, %v5892_v28 }
 0x2e0   : > { %3029 = vmax.xlane.f32.xlu0 %v5950_v14  ;;  %v2696_v1 = vpop.f32.mrb[166].mxu1  ;;  %v2825_v7 = vadd.s32 184, %v5892_v28 }
 0x2e1   : > { %v2698_v16 = vpop.f32.mrb[167].mxu1  ;;  %v5954_v40 = vsel %vm2892_vm12, %v2696_v1, -inf }
 0x2e2   : > { %3032 = vmax.xlane.f32.xlu1 %v5954_v40  ;;  %vm2917_vm9 = vcmp.le.s32.totalorder %v5977_v23, %v2825_v7 }
 0x2e6   : > { %v2702_v53 = vpop.f32.mrb[168].mxu1 }
 0x2e7   : > { %v2704_v17 = vpop.f32.mrb[169].mxu1  ;;  %v5960_v38 = vsel %vm2894_vm13, %v2702_v53, -inf  ;;  %vm2925_vm13 = vcmp.le.s32.totalorder %v5977_v23, %v2829_v62 }
 0x2e8   : > { %3035 = vmax.xlane.f32.xlu0 %v5960_v38  ;;  %v2706_v37 = vpop.f32.mrb[170].mxu1 }
 0x2e9   : > { %v2708_v55 = vpop.f32.mrb[171].mxu1  ;;  %v5964_v30 = vsel %vm2896_vm14, %v2706_v37, -inf  ;;  %v2826_v37 = vadd.s32 192, %v5892_v28 }
 0x2ea   : > { %3038 = vmax.xlane.f32.xlu1 %v5964_v30 }
 0x2eb   : > { %vm2919_vm10 = vcmp.le.s32.totalorder %v5977_v23, %v2826_v37 }
 0x2ee   : > { %v2712_v12 = vpop.f32.mrb[172].mxu1 }
 0x2ef   : > { %v2714_v20 = vpop.f32.mrb[173].mxu1  ;;  %v5970_v5 = vsel %vm2898_vm15, %v2712_v12, -inf }
 0x2f0   : > { %3041 = vmax.xlane.f32.xlu0 %v5970_v5  ;;  %v2716_v36 = vpop.f32.mrb[174].mxu1 }
 0x2f1   : > { %v2718_v24 = vpop.f32.mrb[175].mxu1  ;;  %v5973_v34 = vsel %vm2900_vm1, %v2716_v36, -inf }
 0x2f2   : > { %3044 = vmax.xlane.f32.xlu1 %v5973_v34 }
 0x2f6   : > { %v5982_v57 = vpop.f32.mrb[176].mxu1 }
 0x2f7   : > { %v2724_v21 = vpop.f32.mrb[177].mxu1 }
 0x2f8   : > { %v5985_v61 = vsel %vm2903_vm2, %v2724_v21, -inf  ;;  %v5987_v45 = vpop.f32.mrb[178].mxu1  ;;  %v2828_v21 = vadd.s32 208, %v5892_v28  ;;  %vm2933_vm2 = vcmp.le.s32.totalorder %v5977_v23, %v2833_v11 }
 0x2f9   : > { %v2728_v43 = vpop.f32.mrb[179].mxu1  ;;  %v3046_v49 = vmax.f32 %v5982_v57, %v5985_v61 }
 0x2fa   : > { %v5992_v9 = vsel %vm2905_vm3, %v2728_v43, -inf  ;;  %vm2923_vm12 = vcmp.le.s32.totalorder %v5977_v23, %v2828_v21 }
 0x2fb   : > { %3047 = vmax.xlane.f32.xlu0 %v3046_v49  ;;  %v3049_v18 = vmax.f32 %v5987_v45, %v5992_v9 }
 0x2fd   : > { %3050 = vmax.xlane.f32.xlu1 %v3049_v18 }
 0x2fe   : > { %v5998_v15 = vpop.f32.mrb[180].mxu1 }
 0x2ff   : > { %v2734_v31 = vpop.f32.mrb[181].mxu1 }
 0x300   : > { %v6001_v27 = vsel %vm2907_vm4, %v2734_v31, -inf  ;;  %v6003_v8 = vpop.f32.mrb[182].mxu1 }
 0x301   : > { %v2738_v19 = vpop.f32.mrb[183].mxu1  ;;  %v3052_v10 = vmax.f32 %v5998_v15, %v6001_v27 }
 0x302   : > { %v6008_v39 = vsel %vm2909_vm5, %v2738_v19, -inf }
 0x303   : > { %3053 = vmax.xlane.f32.xlu0 %v3052_v10  ;;  %v3055_v29 = vmax.f32 %v6003_v8, %v6008_v39 }
 0x305   : > { %3056 = vmax.xlane.f32.xlu1 %v3055_v29  ;;  %v2830_v29 = vadd.s32 224, %v5892_v28 }
 0x306   : > { %v6014_v59 = vpop.f32.mrb[184].mxu1 }
 0x307   : > { %v2744_v54 = vpop.f32.mrb[185].mxu1  ;;  %vm2927_vm14 = vcmp.le.s32.totalorder %v5977_v23, %v2830_v29 }
 0x308   : > { %v6017_v47 = vsel %vm2911_vm6, %v2744_v54, -inf  ;;  %v6019_v6 = vpop.f32.mrb[186].mxu1 }
 0x309   : > { %v2748_v41 = vpop.f32.mrb[187].mxu1  ;;  %v3058_v25 = vmax.f32 %v6014_v59, %v6017_v47 }
 0x30a   : > { %v6024_v48 = vsel %vm2913_vm7, %v2748_v41, -inf  ;;  %v2831_v41 = vadd.s32 232, %v5892_v28 }
 0x30b   : > { %3059 = vmax.xlane.f32.xlu0 %v3058_v25  ;;  %v3061_v4 = vmax.f32 %v6019_v6, %v6024_v48 }
 0x30c   : > { %vm2929_vm15 = vcmp.le.s32.totalorder %v5977_v23, %v2831_v41 }
 0x30d   : > { %3062 = vmax.xlane.f32.xlu1 %v3061_v4 }
 0x30e   : > { %v6030_v1 = vpop.f32.mrb[188].mxu1 }
 0x30f   : > { %v2754_v52 = vpop.f32.mrb[189].mxu1 }
 0x310   : > { %v6033_v16 = vsel %vm2915_vm8, %v2754_v52, -inf  ;;  %v6035_v46 = vpop.f32.mrb[190].mxu1 }
 0x311   : > { %v2758_v53 = vpop.f32.mrb[191].mxu1  ;;  %v3064_v17 = vmax.f32 %v6030_v1, %v6033_v16 }
 0x312   : > { %v6040_v22 = vsel %vm2917_vm9, %v2758_v53, -inf }
 0x313   : > { %3065 = vmax.xlane.f32.xlu0 %v3064_v17  ;;  %v3067_v55 = vmax.f32 %v6035_v46, %v6040_v22  ;;  %v2832_v17 = vadd.s32 240, %v5892_v28 }
 0x315   : > { %3068 = vmax.xlane.f32.xlu1 %v3067_v55  ;;  %vm2931_vm1 = vcmp.le.s32.totalorder %v5977_v23, %v2832_v17 }
 0x316   : > { %v6046_v12 = vpop.f32.mrb[192].mxu1 }
 0x317   : > { %v2764_v20 = vpop.f32.mrb[193].mxu1 }
 0x318   : > { %v6049_v36 = vsel %vm2919_vm10, %v2764_v20, -inf  ;;  %v6051_v24 = vpop.f32.mrb[194].mxu1 }
 0x319   : > { %v2768_v13 = vpop.f32.mrb[195].mxu1  ;;  %v3070_v35 = vmax.f32 %v6046_v12, %v6049_v36 }
 0x31a   : > { %v6056_v43 = vsel %vm2921_vm11, %v2768_v13, -inf }
 0x31b   : > { %3071 = vmax.xlane.f32.xlu0 %v3070_v35  ;;  %v3073_v49 = vmax.f32 %v6051_v24, %v6056_v43 }
 0x31d   : > { %3074 = vmax.xlane.f32.xlu1 %v3073_v49 }
 0x31e   : > { %v6062_v18 = vpop.f32.mrb[196].mxu1 }
 0x31f   : > { %v2774_v56 = vpop.f32.mrb[197].mxu1 }
 0x320   : > { %v6065_v31 = vsel %vm2923_vm12, %v2774_v56, -inf  ;;  %v6067_v19 = vpop.f32.mrb[198].mxu1 }
 0x321   : > { %v2778_v10 = vpop.f32.mrb[199].mxu1  ;;  %v3076_v50 = vmax.f32 %v6062_v18, %v6065_v31 }
 0x322   : > { %v6072_v63 = vsel %vm2925_vm13, %v2778_v10, -inf }
 0x323   : > { %3077 = vmax.xlane.f32.xlu0 %v3076_v50  ;;  %v3079_v54 = vmax.f32 %v6067_v19, %v6072_v63 }
 0x325   : > { %3080 = vmax.xlane.f32.xlu1 %v3079_v54 }
 0x326   : > { %v6078_v25 = vpop.f32.mrb[200].mxu1 }
 0x327   : > { %v2784_v26 = vpop.f32.mrb[201].mxu1 }
 0x328   : > { %v6081_v4 = vsel %vm2927_vm14, %v2784_v26, -inf  ;;  %v6083_v7 = vpop.f32.mrb[202].mxu1 }
 0x329   : > { %v2788_v52 = vpop.f32.mrb[203].mxu1  ;;  %v3082_v53 = vmax.f32 %v6078_v25, %v6081_v4 }
 0x32a   : > { %v6088_v37 = vsel %vm2929_vm15, %v2788_v52, -inf }
 0x32b   : > { %3083 = vmax.xlane.f32.xlu0 %v3082_v53  ;;  %v3085_v55 = vmax.f32 %v6083_v7, %v6088_v37 }
 0x32d   : > { %3086 = vmax.xlane.f32.xlu1 %v3085_v55 }
 0x32e   : > { %v6094_v20 = vpop.f32.mrb[204].mxu1 }
 0x32f   : > { %v2794_v13 = vpop.f32.mrb[205].mxu1 }
 0x330   : > { %v6097_v35 = vsel %vm2931_vm1, %v2794_v13, -inf  ;;  %v6099_v21 = vpop.f32.mrb[206].mxu1 }
 0x331   : > { %v2798_v49 = vpop.f32.mrb[207].mxu1  ;;  %v3088_v62 = vmax.f32 %v6094_v20, %v6097_v35 }
 0x332   : > { %v6103_v56 = vsel %vm2933_vm2, %v2798_v49, -inf }
 0x333   : > { %3089 = vmax.xlane.f32.xlu0 %v3088_v62  ;;  %v3091_v28 = vmax.f32 %v6099_v21, %v6103_v56 }
 0x335   : > { %3092 = vmax.xlane.f32.xlu1 %v3091_v28 }
 0x345   : > { %v3000_v10 = vpop.xlane.xlu0 %2999 }
 0x346   : > { %v3094_v50 = vsub.f32 %v5899_v42, %v3000_v10  ;;  %v3095_v29 = vsub.f32 -inf, %v3000_v10 }
 0x348   : > { %v3158_v23 = vmul.f32 1.442695, %v3094_v50  ;;  %v3160_v54 = vmul.f32 1.442695, %v3095_v29 }
 0x349   : > { %v3003_v41 = vpop.xlane.xlu0 %3002 }
 0x34a   : > { %4890 = vpow2.f32 %v3158_v23  ;;  %v3096_v26 = vsub.f32 %v5904_v3, %v3003_v41  ;;  %v3097_v52 = vsub.f32 -inf, %v3003_v41 }
 0x34b   : > { %4892 = vpow2.f32 %v3160_v54 }
 0x34c   : > { %v3162_v53 = vmul.f32 1.442695, %v3096_v26  ;;  %v3164_v17 = vmul.f32 1.442695, %v3097_v52 }
 0x34d   : > { %v3006_v55 = vpop.xlane.xlu1 %3005 }
 0x34e   : > { %4894 = vpow2.f32 %v3162_v53  ;;  %v3098_v11 = vsub.f32 %v5909_v32, %v3006_v55  ;;  %v3099_v13 = vsub.f32 -inf, %v3006_v55 }
 0x34f   : > { %4896 = vpow2.f32 %v3164_v17 }
 0x350   : > { %v3166_v49 = vmul.f32 1.442695, %v3098_v11  ;;  %v3168_v62 = vmul.f32 1.442695, %v3099_v13 }
 0x351   : > { %v3009_v42 = vpop.xlane.xlu1 %3008 }
 0x352   : > { %4898 = vpow2.f32 %v3166_v49  ;;  %v3100_v28 = vsub.f32 %v5915_v0, %v3009_v42  ;;  %v3101_v10 = vsub.f32 -inf, %v3009_v42 }
 0x353   : > { %4900 = vpow2.f32 %v3168_v62 }
 0x354   : > { %v4891_v50 = vpop.eup %4890  ;;  %v3170_v3 = vmul.f32 1.442695, %v3100_v28  ;;  %v3172_v29 = vmul.f32 1.442695, %v3101_v10 }
 0x355   : > { %v4893_v23 = vpop.eup %4892  ;;  %v3012_v54 = vpop.xlane.xlu0 %3011 }
 0x356   : > { %4902 = vpow2.f32 %v3170_v3  ;;  %v3102_v41 = vsub.f32 %v5920_v58, %v3012_v54  ;;  %v3103_v26 = vsub.f32 -inf, %v3012_v54  ;;  %v3286_v32 = vadd.f32 %v4893_v23, %v4891_v50 }
 0x357   : > { %4904 = vpow2.f32 %v3172_v29  ;;  %v3015_v52 = vpop.xlane.xlu1 %3014 }
 0x358   : > { %v4895_v53 = vpop.eup %4894  ;;  %v3174_v17 = vmul.f32 1.442695, %v3102_v41  ;;  %v3176_v55 = vmul.f32 1.442695, %v3103_v26  ;;  %v3104_v11 = vsub.f32 %v5924_v33, %v3015_v52  ;;  %v3105_v0 = vsub.f32 -inf, %v3015_v52  ;;  %3287 = vadd.xlane.f32.xlu0 %v3286_v32 }
 0x359   : > { %v4897_v13 = vpop.eup %4896  ;;  %v3382_v49 = vpack.c.bf16 %v4895_v53, %v4891_v50 }
 0x35a   : > { %4906 = vpow2.f32 %v3174_v17  ;;  %v3178_v62 = vmul.f32 1.442695, %v3104_v11  ;;  %v3180_v42 = vmul.f32 1.442695, %v3105_v0  ;;  %v3383_v28 = vpack.c.bf16 %v4897_v13, %v4893_v23 }
 0x35b   : > { %4908 = vpow2.f32 %v3176_v55  ;;  %v3289_v10 = vadd.f32 %v4897_v13, %v4895_v53 }
 0x35c   : > { %v4899_v58 = vpop.eup %4898  ;;  %4910 = vpow2.f32 %v3178_v62  ;;  %3462 = vmatprep.mubr.bf16.mxu0 %v3383_v28 }
 0x35d   : > { %v4901_v3 = vpop.eup %4900  ;;  %4912 = vpow2.f32 %v3180_v42  ;;  %3290 = vadd.xlane.f32.xlu1 %v3289_v10  ;;  %3463 = vmatmul.mubr.bf16.vlgmr.msra.gmra.mrb[144].mxu0 %v3382_v49  ;;  %v3018_v29 = vpop.xlane.xlu0 %3017 }
 0x35e   : > { %v3106_v33 = vsub.f32 %v5930_v51, %v3018_v29  ;;  %v3107_v54 = vsub.f32 -inf, %v3018_v29  ;;  %v3292_v41 = vadd.f32 %v4901_v3, %v4899_v58 }
 0x35f   : > { %v3021_v26 = vpop.xlane.xlu1 %3020 }
 0x360   : > { %v4903_v50 = vpop.eup %4902  ;;  %v3182_v32 = vmul.f32 1.442695, %v3106_v33  ;;  %v3184_v52 = vmul.f32 1.442695, %v3107_v54  ;;  %v3108_v23 = vsub.f32 %v5934_v2, %v3021_v26  ;;  %v3109_v17 = vsub.f32 -inf, %v3021_v26  ;;  %3293 = vadd.xlane.f32.xlu0 %v3292_v41 }
 0x361   : > { %v4905_v53 = vpop.eup %4904  ;;  %v3384_v55 = vpack.c.bf16 %v4903_v50, %v4899_v58 }
 0x362   : > { %4914 = vpow2.f32 %v3182_v32  ;;  %v3186_v11 = vmul.f32 1.442695, %v3108_v23  ;;  %v3188_v0 = vmul.f32 1.442695, %v3109_v17  ;;  %v3385_v13 = vpack.c.bf16 %v4905_v53, %v4901_v3 }
 0x363   : > { %4916 = vpow2.f32 %v3184_v52  ;;  %v3295_v49 = vadd.f32 %v4905_v53, %v4903_v50 }
 0x364   : > { %v4907_v62 = vpop.eup %4906  ;;  %4918 = vpow2.f32 %v3186_v11  ;;  %3470 = vmatprep.mubr.bf16.mxu0 %v3385_v13 }
 0x365   : > { %v4909_v51 = vpop.eup %4908  ;;  %4920 = vpow2.f32 %v3188_v0  ;;  %3296 = vadd.xlane.f32.xlu1 %v3295_v49  ;;  %3471 = vmatmul.mubr.bf16.gmra.mrb[148].mxu0 %v3384_v55  ;;  %v3024_v42 = vpop.xlane.xlu0 %3023 }
 0x366   : > { %v4911_v28 = vpop.eup %4910  ;;  %v3110_v2 = vsub.f32 %v5940_v60, %v3024_v42  ;;  %v3111_v10 = vsub.f32 -inf, %v3024_v42  ;;  %v3298_v29 = vadd.f32 %v4909_v51, %v4907_v62 }
 0x367   : > { %v4913_v58 = vpop.eup %4912  ;;  %v3027_v33 = vpop.xlane.xlu1 %3026  ;;  %v3386_v17 = vpack.c.bf16 %v4911_v28, %v4907_v62 }
 0x368   : > { %v3190_v54 = vmul.f32 1.442695, %v3110_v2  ;;  %v3192_v41 = vmul.f32 1.442695, %v3111_v10  ;;  %v3112_v3 = vsub.f32 %v5944_v44, %v3027_v33  ;;  %v3113_v26 = vsub.f32 -inf, %v3027_v33  ;;  %3299 = vadd.xlane.f32.xlu0 %v3298_v29 }
 0x369   : > { %v3387_v50 = vpack.c.bf16 %v4913_v58, %v4909_v51  ;;  %v3301_v32 = vadd.f32 %v4913_v58, %v4911_v28 }
 0x36a   : > { %4922 = vpow2.f32 %v3190_v54  ;;  %v3194_v52 = vmul.f32 1.442695, %v3112_v3  ;;  %v3196_v23 = vmul.f32 1.442695, %v3113_v26 }
 0x36b   : > { %4924 = vpow2.f32 %v3192_v41  ;;  %3478 = vmatprep.mubr.bf16.mxu0 %v3387_v50  ;;  %3302 = vadd.xlane.f32.xlu1 %v3301_v32 }
 0x36c   : > { %v4915_v60 = vpop.eup %4914  ;;  %4926 = vpow2.f32 %v3194_v52 }
 0x36d   : > { %v4917_v53 = vpop.eup %4916  ;;  %4928 = vpow2.f32 %v3196_v23  ;;  %3479 = vmatmul.mubr.bf16.gmra.mrb[152].mxu0 %v3386_v17  ;;  %v3030_v55 = vpop.xlane.xlu0 %3029 }
 0x36e   : > { %v4919_v11 = vpop.eup %4918  ;;  %v3114_v44 = vsub.f32 %v5950_v14, %v3030_v55  ;;  %v3115_v0 = vsub.f32 -inf, %v3030_v55  ;;  %v3304_v13 = vadd.f32 %v4917_v53, %v4915_v60 }
 0x36f   : > { %v4921_v49 = vpop.eup %4920  ;;  %v3033_v51 = vpop.xlane.xlu1 %3032  ;;  %v3388_v54 = vpack.c.bf16 %v4919_v11, %v4915_v60 }
 0x370   : > { %v3198_v42 = vmul.f32 1.442695, %v3114_v44  ;;  %v3200_v2 = vmul.f32 1.442695, %v3115_v0  ;;  %v3116_v10 = vsub.f32 %v5954_v40, %v3033_v51  ;;  %v3117_v29 = vsub.f32 -inf, %v3033_v51  ;;  %3305 = vadd.xlane.f32.xlu0 %v3304_v13 }
 0x371   : > { %v3389_v62 = vpack.c.bf16 %v4921_v49, %v4917_v53  ;;  %v3307_v28 = vadd.f32 %v4921_v49, %v4919_v11 }
 0x372   : > { %4930 = vpow2.f32 %v3198_v42  ;;  %v3202_v58 = vmul.f32 1.442695, %v3116_v10  ;;  %v3204_v33 = vmul.f32 1.442695, %v3117_v29 }
 0x373   : > { %4932 = vpow2.f32 %v3200_v2  ;;  %3486 = vmatprep.mubr.bf16.mxu0 %v3389_v62  ;;  %3308 = vadd.xlane.f32.xlu1 %v3307_v28 }
 0x374   : > { %v4923_v14 = vpop.eup %4922  ;;  %4934 = vpow2.f32 %v3202_v58 }
 0x375   : > { %v4925_v41 = vpop.eup %4924  ;;  %4936 = vpow2.f32 %v3204_v33  ;;  %3487 = vmatmul.mubr.bf16.gmra.mrb[156].mxu0 %v3388_v54  ;;  %v3036_v3 = vpop.xlane.xlu0 %3035 }
 0x376   : > { %v4927_v26 = vpop.eup %4926  ;;  %v3118_v40 = vsub.f32 %v5960_v38, %v3036_v3  ;;  %v3119_v50 = vsub.f32 -inf, %v3036_v3  ;;  %v3310_v32 = vadd.f32 %v4925_v41, %v4923_v14 }
 0x377   : > { %v4929_v52 = vpop.eup %4928  ;;  %v3039_v23 = vpop.xlane.xlu1 %3038  ;;  %v3390_v49 = vpack.c.bf16 %v4927_v26, %v4923_v14 }
 0x378   : > { %v3206_v17 = vmul.f32 1.442695, %v3118_v40  ;;  %v3208_v53 = vmul.f32 1.442695, %v3119_v50  ;;  %v3120_v55 = vsub.f32 %v5964_v30, %v3039_v23  ;;  %v3121_v44 = vsub.f32 -inf, %v3039_v23  ;;  %3311 = vadd.xlane.f32.xlu0 %v3310_v32 }
 0x379   : > { %v3391_v60 = vpack.c.bf16 %v4929_v52, %v4925_v41  ;;  %v3313_v11 = vadd.f32 %v4929_v52, %v4927_v26 }
 0x37a   : > { %4938 = vpow2.f32 %v3206_v17  ;;  %v3210_v0 = vmul.f32 1.442695, %v3120_v55  ;;  %v3212_v13 = vmul.f32 1.442695, %v3121_v44 }
 0x37b   : > { %4940 = vpow2.f32 %v3208_v53  ;;  %3494 = vmatprep.mubr.bf16.mxu0 %v3391_v60  ;;  %3314 = vadd.xlane.f32.xlu1 %v3313_v11 }
 0x37c   : > { %v4931_v38 = vpop.eup %4930  ;;  %4942 = vpow2.f32 %v3210_v0 }
 0x37d   : > { %v4933_v51 = vpop.eup %4932  ;;  %4944 = vpow2.f32 %v3212_v13  ;;  %3495 = vmatmul.mubr.bf16.gmra.mrb[160].mxu0 %v3390_v49  ;;  %v3042_v42 = vpop.xlane.xlu0 %3041 }
 0x37e   : > { %v4935_v2 = vpop.eup %4934  ;;  %v3122_v30 = vsub.f32 %v5970_v5, %v3042_v42  ;;  %v3123_v10 = vsub.f32 -inf, %v3042_v42  ;;  %v3316_v29 = vadd.f32 %v4933_v51, %v4931_v38 }
 0x37f   : > { %v4937_v62 = vpop.eup %4936  ;;  %v3045_v28 = vpop.xlane.xlu1 %3044  ;;  %v3392_v50 = vpack.c.bf16 %v4935_v2, %v4931_v38 }
 0x380   : > { %v3214_v58 = vmul.f32 1.442695, %v3122_v30  ;;  %v3216_v33 = vmul.f32 1.442695, %v3123_v10  ;;  %v3124_v54 = vsub.f32 %v5973_v34, %v3045_v28  ;;  %v3125_v41 = vsub.f32 -inf, %v3045_v28  ;;  %3317 = vadd.xlane.f32.xlu0 %v3316_v29 }
 0x381   : > { %v3393_v14 = vpack.c.bf16 %v4937_v62, %v4933_v51  ;;  %v3319_v3 = vadd.f32 %v4937_v62, %v4935_v2 }
 0x382   : > { %4946 = vpow2.f32 %v3214_v58  ;;  %v3218_v26 = vmul.f32 1.442695, %v3124_v54  ;;  %v3220_v40 = vmul.f32 1.442695, %v3125_v41 }
 0x383   : > { %4948 = vpow2.f32 %v3216_v33  ;;  %3502 = vmatprep.mubr.bf16.mxu0 %v3393_v14  ;;  %3320 = vadd.xlane.f32.xlu1 %v3319_v3 }
 0x384   : > { %v4939_v5 = vpop.eup %4938  ;;  %4950 = vpow2.f32 %v3218_v26 }
 0x385   : > { %v4941_v32 = vpop.eup %4940  ;;  %4952 = vpow2.f32 %v3220_v40  ;;  %3503 = vmatmul.mubr.bf16.gmra.mrb[164].mxu0 %v3392_v50 }
 0x386   : > { %v4943_v52 = vpop.eup %4942  ;;  %v3322_v23 = vadd.f32 %v4941_v32, %v4939_v5 }
 0x387   : > { %v4945_v17 = vpop.eup %4944  ;;  %v3394_v0 = vpack.c.bf16 %v4943_v52, %v4939_v5 }
 0x388   : > { %3323 = vadd.xlane.f32.xlu0 %v3322_v23  ;;  %v3048_v34 = vpop.xlane.xlu0 %3047  ;;  %v3395_v53 = vpack.c.bf16 %v4945_v17, %v4941_v32  ;;  %v3325_v55 = vadd.f32 %v4945_v17, %v4943_v52 }
 0x389   : > { %v3126_v44 = vsub.f32 %v5982_v57, %v3048_v34  ;;  %v3127_v60 = vsub.f32 %v5985_v61, %v3048_v34 }
 0x38a   : > { %3510 = vmatprep.mubr.bf16.mxu0 %v3395_v53  ;;  %3326 = vadd.xlane.f32.xlu1 %v3325_v55  ;;  %v3051_v11 = vpop.xlane.xlu1 %3050 }
 0x38b   : > { %v3222_v13 = vmul.f32 1.442695, %v3126_v44  ;;  %v3224_v49 = vmul.f32 1.442695, %v3127_v60  ;;  %v3128_v38 = vsub.f32 %v5987_v45, %v3051_v11  ;;  %v3129_v51 = vsub.f32 %v5992_v9, %v3051_v11 }
 0x38c   : > { %v4947_v42 = vpop.eup %4946 }
 0x38d   : > { %v4949_v2 = vpop.eup %4948  ;;  %4954 = vpow2.f32 %v3222_v13  ;;  %v3226_v30 = vmul.f32 1.442695, %v3128_v38  ;;  %v3228_v10 = vmul.f32 1.442695, %v3129_v51  ;;  %3511 = vmatmul.mubr.bf16.gmra.mrb[168].mxu0 %v3394_v0 }
 0x38e   : > { %v4951_v29 = vpop.eup %4950  ;;  %4956 = vpow2.f32 %v3224_v49  ;;  %v3328_v57 = vadd.f32 %v4949_v2, %v4947_v42 }
 0x38f   : > { %v4953_v61 = vpop.eup %4952  ;;  %4958 = vpow2.f32 %v3226_v30  ;;  %v3396_v54 = vpack.c.bf16 %v4951_v29, %v4947_v42 }
 0x390   : > { %4960 = vpow2.f32 %v3228_v10  ;;  %3329 = vadd.xlane.f32.xlu0 %v3328_v57  ;;  %v3054_v62 = vpop.xlane.xlu0 %3053  ;;  %v3397_v28 = vpack.c.bf16 %v4953_v61, %v4949_v2  ;;  %v3331_v58 = vadd.f32 %v4953_v61, %v4951_v29 }
 0x391   : > { %v3130_v45 = vsub.f32 %v5998_v15, %v3054_v62  ;;  %v3131_v9 = vsub.f32 %v6001_v27, %v3054_v62 }
 0x392   : > { %3518 = vmatprep.mubr.bf16.mxu0 %v3397_v28  ;;  %3332 = vadd.xlane.f32.xlu1 %v3331_v58  ;;  %v3057_v33 = vpop.xlane.xlu1 %3056 }
 0x393   : > { %v3230_v41 = vmul.f32 1.442695, %v3130_v45  ;;  %v3232_v14 = vmul.f32 1.442695, %v3131_v9  ;;  %v3132_v3 = vsub.f32 %v6003_v8, %v3057_v33  ;;  %v3133_v26 = vsub.f32 %v6008_v39, %v3057_v33 }
 0x395   : > { %4962 = vpow2.f32 %v3230_v41  ;;  %v3234_v40 = vmul.f32 1.442695, %v3132_v3  ;;  %v3236_v50 = vmul.f32 1.442695, %v3133_v26  ;;  %3519 = vmatmul.mubr.bf16.gmra.mrb[172].mxu0 %v3396_v54 }
 0x396   : > { %4964 = vpow2.f32 %v3232_v14 }
 0x397   : > { %v4955_v5 = vpop.eup %4954  ;;  %4966 = vpow2.f32 %v3234_v40 }
 0x398   : > { %v4957_v15 = vpop.eup %4956  ;;  %4968 = vpow2.f32 %v3236_v50  ;;  %v3060_v27 = vpop.xlane.xlu0 %3059 }
 0x399   : > { %v4959_v32 = vpop.eup %4958  ;;  %v3134_v52 = vsub.f32 %v6014_v59, %v3060_v27  ;;  %v3135_v23 = vsub.f32 %v6017_v47, %v3060_v27  ;;  %v3334_v17 = vadd.f32 %v4957_v15, %v4955_v5 }
 0x39a   : > { %v4961_v34 = vpop.eup %4960  ;;  %v3063_v8 = vpop.xlane.xlu1 %3062  ;;  %v3398_v53 = vpack.c.bf16 %v4959_v32, %v4955_v5 }
 0x39b   : > { %v3238_v39 = vmul.f32 1.442695, %v3134_v52  ;;  %v3240_v55 = vmul.f32 1.442695, %v3135_v23  ;;  %v3136_v44 = vsub.f32 %v6019_v6, %v3063_v8  ;;  %v3137_v60 = vsub.f32 %v6024_v48, %v3063_v8  ;;  %3335 = vadd.xlane.f32.xlu0 %v3334_v17 }
 0x39c   : > { %v3399_v11 = vpack.c.bf16 %v4961_v34, %v4957_v15  ;;  %v3337_v0 = vadd.f32 %v4961_v34, %v4959_v32 }
 0x39d   : > { %4970 = vpow2.f32 %v3238_v39  ;;  %v3242_v13 = vmul.f32 1.442695, %v3136_v44  ;;  %v3244_v49 = vmul.f32 1.442695, %v3137_v60 }
 0x39e   : > { %4972 = vpow2.f32 %v3240_v55  ;;  %3526 = vmatprep.mubr.bf16.mxu0 %v3399_v11  ;;  %3338 = vadd.xlane.f32.xlu1 %v3337_v0 }
 0x39f   : > { %v4963_v59 = vpop.eup %4962  ;;  %4974 = vpow2.f32 %v3242_v13  ;;  %3527 = vmatmul.mubr.bf16.gmra.mrb[176].mxu0 %v3398_v53 }
 0x3a0   : > { %v4965_v47 = vpop.eup %4964  ;;  %4976 = vpow2.f32 %v3244_v49  ;;  %v3066_v38 = vpop.xlane.xlu0 %3065 }
 0x3a1   : > { %v4967_v51 = vpop.eup %4966  ;;  %v3138_v6 = vsub.f32 %v6030_v1, %v3066_v38  ;;  %v3139_v48 = vsub.f32 %v6033_v16, %v3066_v38  ;;  %v3340_v42 = vadd.f32 %v4965_v47, %v4963_v59 }
 0x3a2   : > { %v4969_v2 = vpop.eup %4968  ;;  %v3069_v30 = vpop.xlane.xlu1 %3068  ;;  %v3400_v10 = vpack.c.bf16 %v4967_v51, %v4963_v59 }
 0x3a3   : > { %v3246_v29 = vmul.f32 1.442695, %v3138_v6  ;;  %v3248_v57 = vmul.f32 1.442695, %v3139_v48  ;;  %v3140_v61 = vsub.f32 %v6035_v46, %v3069_v30  ;;  %v3141_v62 = vsub.f32 %v6040_v22, %v3069_v30  ;;  %3341 = vadd.xlane.f32.xlu0 %v3340_v42 }
 0x3a4   : > { %v3401_v28 = vpack.c.bf16 %v4969_v2, %v4965_v47  ;;  %v3343_v58 = vadd.f32 %v4969_v2, %v4967_v51 }
 0x3a5   : > { %4978 = vpow2.f32 %v3246_v29  ;;  %v3250_v45 = vmul.f32 1.442695, %v3140_v61  ;;  %v3252_v9 = vmul.f32 1.442695, %v3141_v62 }
 0x3a6   : > { %4980 = vpow2.f32 %v3248_v57  ;;  %3534 = vmatprep.mubr.bf16.mxu0 %v3401_v28  ;;  %3344 = vadd.xlane.f32.xlu1 %v3343_v58 }
 0x3a7   : > { %v4971_v1 = vpop.eup %4970  ;;  %4982 = vpow2.f32 %v3250_v45  ;;  %3535 = vmatmul.mubr.bf16.gmra.mrb[180].mxu0 %v3400_v10 }
 0x3a8   : > { %v4973_v16 = vpop.eup %4972  ;;  %4984 = vpow2.f32 %v3252_v9  ;;  %v3072_v33 = vpop.xlane.xlu0 %3071 }
 0x3a9   : > { %v4975_v54 = vpop.eup %4974  ;;  %v3142_v46 = vsub.f32 %v6046_v12, %v3072_v33  ;;  %v3143_v22 = vsub.f32 %v6049_v36, %v3072_v33  ;;  %v3346_v41 = vadd.f32 %v4973_v16, %v4971_v1 }
 0x3aa   : > { %v4977_v14 = vpop.eup %4976  ;;  %v3075_v3 = vpop.xlane.xlu1 %3074  ;;  %v3402_v26 = vpack.c.bf16 %v4975_v54, %v4971_v1 }
 0x3ab   : > { %v3254_v40 = vmul.f32 1.442695, %v3142_v46  ;;  %v3256_v50 = vmul.f32 1.442695, %v3143_v22  ;;  %v3144_v5 = vsub.f32 %v6051_v24, %v3075_v3  ;;  %v3145_v15 = vsub.f32 %v6056_v43, %v3075_v3  ;;  %3347 = vadd.xlane.f32.xlu0 %v3346_v41 }
 0x3ac   : > { %v3403_v27 = vpack.c.bf16 %v4977_v14, %v4973_v16  ;;  %v3349_v32 = vadd.f32 %v4977_v14, %v4975_v54 }
 0x3ad   : > { %4986 = vpow2.f32 %v3254_v40  ;;  %v3258_v52 = vmul.f32 1.442695, %v3144_v5  ;;  %v3260_v23 = vmul.f32 1.442695, %v3145_v15 }
 0x3ae   : > { %4988 = vpow2.f32 %v3256_v50  ;;  %3542 = vmatprep.mubr.bf16.mxu0 %v3403_v27  ;;  %3350 = vadd.xlane.f32.xlu1 %v3349_v32 }
 0x3af   : > { %v4979_v12 = vpop.eup %4978  ;;  %4990 = vpow2.f32 %v3258_v52  ;;  %3543 = vmatmul.mubr.bf16.gmra.mrb[184].mxu0 %v3402_v26 }
 0x3b0   : > { %v4981_v36 = vpop.eup %4980  ;;  %4992 = vpow2.f32 %v3260_v23  ;;  %v3078_v17 = vpop.xlane.xlu0 %3077 }
 0x3b1   : > { %v4983_v34 = vpop.eup %4982  ;;  %v3146_v24 = vsub.f32 %v6062_v18, %v3078_v17  ;;  %v3147_v43 = vsub.f32 %v6065_v31, %v3078_v17  ;;  %v3352_v8 = vadd.f32 %v4981_v36, %v4979_v12 }
 0x3b2   : > { %v4985_v53 = vpop.eup %4984  ;;  %v3081_v39 = vpop.xlane.xlu1 %3080  ;;  %v3404_v55 = vpack.c.bf16 %v4983_v34, %v4979_v12 }
 0x3b3   : > { %v3262_v44 = vmul.f32 1.442695, %v3146_v24  ;;  %v3264_v60 = vmul.f32 1.442695, %v3147_v43  ;;  %v3148_v11 = vsub.f32 %v6067_v19, %v3081_v39  ;;  %v3149_v0 = vsub.f32 %v6072_v63, %v3081_v39  ;;  %3353 = vadd.xlane.f32.xlu0 %v3352_v8 }
 0x3b4   : > { %v3405_v13 = vpack.c.bf16 %v4985_v53, %v4981_v36  ;;  %v3355_v49 = vadd.f32 %v4985_v53, %v4983_v34 }
 0x3b5   : > { %4994 = vpow2.f32 %v3262_v44  ;;  %v3266_v59 = vmul.f32 1.442695, %v3148_v11  ;;  %v3268_v47 = vmul.f32 1.442695, %v3149_v0 }
 0x3b6   : > { %4996 = vpow2.f32 %v3264_v60  ;;  %3550 = vmatprep.mubr.bf16.mxu0 %v3405_v13  ;;  %3356 = vadd.xlane.f32.xlu1 %v3355_v49 }
 0x3b7   : > { %v4987_v18 = vpop.eup %4986  ;;  %4998 = vpow2.f32 %v3266_v59  ;;  %3551 = vmatmul.mubr.bf16.gmra.mrb[188].mxu0 %v3404_v55 }
 0x3b8   : > { %v4989_v31 = vpop.eup %4988  ;;  %5000 = vpow2.f32 %v3268_v47  ;;  %v3084_v38 = vpop.xlane.xlu0 %3083 }
 0x3b9   : > { %v4991_v51 = vpop.eup %4990  ;;  %v3150_v19 = vsub.f32 %v6078_v25, %v3084_v38  ;;  %v3151_v63 = vsub.f32 %v6081_v4, %v3084_v38  ;;  %v3358_v6 = vadd.f32 %v4989_v31, %v4987_v18 }
 0x3ba   : > { %v4993_v48 = vpop.eup %4992  ;;  %v3087_v42 = vpop.xlane.xlu1 %3086  ;;  %v3406_v2 = vpack.c.bf16 %v4991_v51, %v4987_v18 }
 0x3bb   : > { %v3270_v30 = vmul.f32 1.442695, %v3150_v19  ;;  %v3272_v10 = vmul.f32 1.442695, %v3151_v63  ;;  %v3152_v29 = vsub.f32 %v6083_v7, %v3087_v42  ;;  %v3153_v57 = vsub.f32 %v6088_v37, %v3087_v42  ;;  %3359 = vadd.xlane.f32.xlu0 %v3358_v6 }
 0x3bc   : > { %v3407_v61 = vpack.c.bf16 %v4993_v48, %v4989_v31  ;;  %v3361_v62 = vadd.f32 %v4993_v48, %v4991_v51 }
 0x3bd   : > { %5002 = vpow2.f32 %v3270_v30  ;;  %v3274_v28 = vmul.f32 1.442695, %v3152_v29  ;;  %v3276_v58 = vmul.f32 1.442695, %v3153_v57 }
 0x3be   : > { %5004 = vpow2.f32 %v3272_v10  ;;  %3558 = vmatprep.mubr.bf16.mxu0 %v3407_v61  ;;  %3362 = vadd.xlane.f32.xlu1 %v3361_v62 }
 0x3bf   : > { %v4995_v25 = vpop.eup %4994  ;;  %5006 = vpow2.f32 %v3274_v28  ;;  %3559 = vmatmul.mubr.bf16.gmra.mrb[192].mxu0 %v3406_v2 }
 0x3c0   : > { %v4997_v4 = vpop.eup %4996  ;;  %5008 = vpow2.f32 %v3276_v58  ;;  %v3090_v45 = vpop.xlane.xlu0 %3089 }
 0x3c1   : > { %v4999_v9 = vpop.eup %4998  ;;  %v3154_v7 = vsub.f32 %v6094_v20, %v3090_v45  ;;  %v3155_v37 = vsub.f32 %v6097_v35, %v3090_v45  ;;  %v3364_v1 = vadd.f32 %v4997_v4, %v4995_v25 }
 0x3c2   : > { %v5001_v16 = vpop.eup %5000  ;;  %v3093_v33 = vpop.xlane.xlu1 %3092  ;;  %v3408_v54 = vpack.c.bf16 %v4999_v9, %v4995_v25 }
 0x3c3   : > { %v3278_v46 = vmul.f32 1.442695, %v3154_v7  ;;  %v3280_v22 = vmul.f32 1.442695, %v3155_v37  ;;  %3365 = vadd.xlane.f32.xlu0 %v3364_v1  ;;  %v3156_v41 = vsub.f32 %v6099_v21, %v3093_v33  ;;  %v3157_v14 = vsub.f32 %v6103_v56, %v3093_v33 }
 0x3c4   : > { %v3409_v3 = vpack.c.bf16 %v5001_v16, %v4997_v4  ;;  %v3367_v26 = vadd.f32 %v5001_v16, %v4999_v9 }
 0x3c5   : > { %5010 = vpow2.f32 %v3278_v46  ;;  %v3282_v40 = vmul.f32 1.442695, %v3156_v41  ;;  %v3284_v50 = vmul.f32 1.442695, %v3157_v14 }
 0x3c6   : > { %5012 = vpow2.f32 %v3280_v22  ;;  %3566 = vmatprep.mubr.bf16.mxu0 %v3409_v3  ;;  %3368 = vadd.xlane.f32.xlu1 %v3367_v26 }
 0x3c7   : > { %v5003_v20 = vpop.eup %5002  ;;  %5014 = vpow2.f32 %v3282_v40  ;;  %3567 = vmatmul.mubr.bf16.gmra.mrb[196].mxu0 %v3408_v54 }
 0x3c8   : > { %v5005_v35 = vpop.eup %5004  ;;  %5016 = vpow2.f32 %v3284_v50 }
 0x3c9   : > { %v5007_v5 = vpop.eup %5006  ;;  %v3370_v15 = vadd.f32 %v5005_v35, %v5003_v20 }
 0x3ca   : > { %v5009_v27 = vpop.eup %5008  ;;  %v3410_v32 = vpack.c.bf16 %v5007_v5, %v5003_v20 }
 0x3cb   : > { %3371 = vadd.xlane.f32.xlu0 %v3370_v15  ;;  %v3411_v21 = vpack.c.bf16 %v5009_v27, %v5005_v35  ;;  %v3373_v56 = vadd.f32 %v5009_v27, %v5007_v5 }
 0x3cd   : > { %3574 = vmatprep.mubr.bf16.mxu0 %v3411_v21  ;;  %3374 = vadd.xlane.f32.xlu1 %v3373_v56 }
 0x3cf   : > { %v5011_v52 = vpop.eup %5010  ;;  %3575 = vmatmul.mubr.bf16.gmra.mrb[200].mxu0 %v3410_v32 }
 0x3d0   : > { %v5013_v23 = vpop.eup %5012 }
 0x3d1   : > { %v5015_v12 = vpop.eup %5014  ;;  %v3376_v36 = vadd.f32 %v5013_v23, %v5011_v52 }
 0x3d2   : > { %v5017_v17 = vpop.eup %5016  ;;  %v3412_v34 = vpack.c.bf16 %v5015_v12, %v5011_v52 }
 0x3d3   : > { %3377 = vadd.xlane.f32.xlu0 %v3376_v36  ;;  %v3413_v24 = vpack.c.bf16 %v5017_v17, %v5013_v23  ;;  %v3379_v43 = vadd.f32 %v5017_v17, %v5015_v12 }
 0x3d5   : > { %3582 = vmatprep.mubr.bf16.mxu0 %v3413_v24  ;;  %3380 = vadd.xlane.f32.xlu1 %v3379_v43 }
 0x3d7   : > { %3583 = vmatmul.mubr.bf16.gmra.mrb[204].mxu0 %v3412_v34 }
 0x3e5   : > { %v3288_v8 = vpop.xlane.xlu0 %3287 }
 0x3e6   : > { %5018 = vrcp.f32 %v3288_v8 }
 0x3ea   : > { %v3291_v53 = vpop.xlane.xlu1 %3290 }
 0x3eb   : > { %5020 = vrcp.f32 %v3291_v53 }
 0x3ed   : > { %v3294_v39 = vpop.xlane.xlu0 %3293 }
 0x3ee   : > { %5022 = vrcp.f32 %v3294_v39 }
 0x3f0   : > { %v5019_v13 = vpop.eup %5018 }
 0x3f2   : > { %v3297_v55 = vpop.xlane.xlu1 %3296 }
 0x3f3   : > { %5024 = vrcp.f32 %v3297_v55 }
 0x3f5   : > { %v5021_v18 = vpop.eup %5020  ;;  %v3300_v31 = vpop.xlane.xlu0 %3299 }
 0x3f6   : > { %5026 = vrcp.f32 %v3300_v31 }
 0x3f8   : > { %v3303_v51 = vpop.xlane.xlu1 %3302  ;;  %v5023_v42 = vpop.eup %5022 }
 0x3f9   : > { %5028 = vrcp.f32 %v3303_v51 }
 0x3fd   : > { %v5025_v29 = vpop.eup %5024  ;;  %v3306_v57 = vpop.xlane.xlu0 %3305 }
 0x3fe   : > { %5030 = vrcp.f32 %v3306_v57 }
 0x400   : > { %v3309_v62 = vpop.xlane.xlu1 %3308  ;;  %v5027_v45 = vpop.eup %5026 }
 0x401   : > { %5032 = vrcp.f32 %v3309_v62 }
 0x403   : > { %v5029_v1 = vpop.eup %5028 }
 0x405   : > { %v3312_v16 = vpop.xlane.xlu0 %3311 }
 0x406   : > { %5034 = vrcp.f32 %v3312_v16 }
 0x408   : > { %v3315_v54 = vpop.xlane.xlu1 %3314  ;;  %v5031_v3 = vpop.eup %5030 }
 0x409   : > { %5036 = vrcp.f32 %v3315_v54 }
 0x40b   : > { %v5033_v20 = vpop.eup %5032 }
 0x40d   : > { %v3318_v35 = vpop.xlane.xlu0 %3317 }
 0x40e   : > { %5038 = vrcp.f32 %v3318_v35 }
 0x410   : > { %v3321_v15 = vpop.xlane.xlu1 %3320  ;;  %v5035_v52 = vpop.eup %5034 }
 0x411   : > { %5040 = vrcp.f32 %v3321_v15 }
 0x413   : > { %v5037_v17 = vpop.eup %5036 }
 0x415   : > { %v3324_v34 = vpop.xlane.xlu0 %3323 }
 0x416   : > { %5042 = vrcp.f32 %v3324_v34 }
 0x417   : > { %v3327_v43 = vpop.xlane.xlu1 %3326 }
 0x418   : > { %5044 = vrcp.f32 %v3327_v43 }
 0x430   : > { %v4437_v44 = vpop.f32.mrb[144].mxu0 }
 0x431   : > { %v4438_v60 = vpop.f32.mrb[145].mxu0 }
 0x432   : > { %v4439_v11 = vadd.f32 %v4438_v60, %v4437_v44  ;;  %v4440_v0 = vpop.f32.mrb[146].mxu0  ;;  %v5039_v44 = vpop.eup %5038 }
 0x433   : > { %v4441_v49 = vpop.f32.mrb[147].mxu0 }
 0x434   : > { %v3623_v59 = vmul.f32 %v5019_v13, %v4439_v11  ;;  %v4442_v47 = vadd.f32 %v4441_v49, %v4440_v0  ;;  %v5041_v13 = vpop.eup %5040  ;;  %v3330_v49 = vpop.xlane.xlu0 %3329 }
 0x435   : > { %5046 = vrcp.f32 %v3330_v49 }
 0x436   : > { %3655 = vst.msk [vmem:[%s6159_s21] sm:$0xff] %vm1590_vm0, %v3623_v59  ;;  %v3624_v38 = vmul.f32 %v5021_v18, %v4442_v47  ;;  %v3333_v47 = vpop.xlane.xlu1 %3332 }
 0x437   : > { %5048 = vrcp.f32 %v3333_v47 }
 0x438   : > { %3656 = vst.msk [vmem:[%s6159_s21 + $0x8] sm:$0xff] %vm1590_vm0, %v3624_v38  ;;  %v4443_v19 = vpop.f32.mrb[148].mxu0 }
 0x439   : > { %v4444_v63 = vpop.f32.mrb[149].mxu0 }
 0x43a   : > { %v4445_v6 = vadd.f32 %v4444_v63, %v4443_v19  ;;  %v4446_v48 = vpop.f32.mrb[150].mxu0  ;;  %v5043_v19 = vpop.eup %5042 }
 0x43b   : > { %v4447_v2 = vpop.f32.mrb[151].mxu0  ;;  %v3339_v57 = vpop.xlane.xlu1 %3338 }
 0x43c   : > { %v3625_v30 = vmul.f32 %v5023_v42, %v4445_v6  ;;  %v4448_v10 = vadd.f32 %v4447_v2, %v4446_v48  ;;  %v5045_v42 = vpop.eup %5044 }
 0x43e   : > { %3657 = vst.msk [vmem:[%s6159_s21 + $0x10] sm:$0xff] %vm1590_vm0, %v3625_v30  ;;  %v3626_v61 = vmul.f32 %v5025_v29, %v4448_v10  ;;  %v3336_v30 = vpop.xlane.xlu0 %3335 }
 0x43f   : > { %5050 = vrcp.f32 %v3336_v30 }
 0x440   : > { %3658 = vst.msk [vmem:[%s6159_s21 + $0x18] sm:$0xff] %vm1590_vm0, %v3626_v61  ;;  %v4449_v28 = vpop.f32.mrb[152].mxu0  ;;  %5052 = vrcp.f32 %v3339_v57 }
 0x441   : > { %v4450_v58 = vpop.f32.mrb[153].mxu0 }
 0x442   : > { %v4451_v25 = vadd.f32 %v4450_v58, %v4449_v28  ;;  %v4452_v4 = vpop.f32.mrb[154].mxu0  ;;  %v5047_v28 = vpop.eup %5046 }
 0x443   : > { %v4453_v9 = vpop.f32.mrb[155].mxu0 }
 0x444   : > { %v3627_v7 = vmul.f32 %v5027_v45, %v4451_v25  ;;  %v4454_v37 = vadd.f32 %v4453_v9, %v4452_v4  ;;  %v5049_v45 = vpop.eup %5048 }
 0x446   : > { %3659 = vst.msk [vmem:[%s6159_s21 + $0x20] sm:$0xff] %vm1590_vm0, %v3627_v7  ;;  %v3628_v33 = vmul.f32 %v5029_v1, %v4454_v37  ;;  %v3342_v7 = vpop.xlane.xlu0 %3341  ;;  %v3345_v37 = vpop.xlane.xlu1 %3344 }
 0x447   : > { %5054 = vrcp.f32 %v3342_v7 }
 0x448   : > { %3660 = vst.msk [vmem:[%s6159_s21 + $0x28] sm:$0xff] %vm1590_vm0, %v3628_v33  ;;  %v4455_v46 = vpop.f32.mrb[156].mxu0  ;;  %5056 = vrcp.f32 %v3345_v37 }
 0x449   : > { %v4456_v22 = vpop.f32.mrb[157].mxu0 }
 0x44a   : > { %v4457_v41 = vadd.f32 %v4456_v22, %v4455_v46  ;;  %v4458_v14 = vpop.f32.mrb[158].mxu0  ;;  %v5051_v46 = vpop.eup %5050 }
 0x44b   : > { %v4459_v26 = vpop.f32.mrb[159].mxu0 }
 0x44c   : > { %v3629_v40 = vmul.f32 %v5031_v3, %v4457_v41  ;;  %v4460_v50 = vadd.f32 %v4459_v26, %v4458_v14  ;;  %v5053_v3 = vpop.eup %5052  ;;  %v3348_v26 = vpop.xlane.xlu0 %3347 }
 0x44d   : > { %5058 = vrcp.f32 %v3348_v26 }
 0x44e   : > { %3661 = vst.msk [vmem:[%s6159_s21 + $0x30] sm:$0xff] %vm1590_vm0, %v3629_v40  ;;  %v3630_v5 = vmul.f32 %v5033_v20, %v4460_v50  ;;  %v3351_v50 = vpop.xlane.xlu1 %3350 }
 0x44f   : > { %5060 = vrcp.f32 %v3351_v50 }
 0x450   : > { %3662 = vst.msk [vmem:[%s6159_s21 + $0x38] sm:$0xff] %vm1590_vm0, %v3630_v5  ;;  %v4461_v27 = vpop.f32.mrb[160].mxu0 }
 0x451   : > { %v4462_v32 = vpop.f32.mrb[161].mxu0 }
 0x452   : > { %v4463_v21 = vadd.f32 %v4462_v32, %v4461_v27  ;;  %v4464_v56 = vpop.f32.mrb[162].mxu0  ;;  %v5055_v27 = vpop.eup %5054 }
 0x453   : > { %v4465_v23 = vpop.f32.mrb[163].mxu0 }
 0x454   : > { %v3631_v12 = vmul.f32 %v5035_v52, %v4463_v21  ;;  %v4466_v36 = vadd.f32 %v4465_v23, %v4464_v56  ;;  %v5057_v52 = vpop.eup %5056  ;;  %v3354_v23 = vpop.xlane.xlu0 %3353 }
 0x455   : > { %5062 = vrcp.f32 %v3354_v23 }
 0x456   : > { %3663 = vst.msk [vmem:[%s6159_s21 + $0x40] sm:$0xff] %vm1590_vm0, %v3631_v12  ;;  %v3632_v24 = vmul.f32 %v5037_v17, %v4466_v36  ;;  %v3357_v36 = vpop.xlane.xlu1 %3356 }
 0x457   : > { %5064 = vrcp.f32 %v3357_v36 }
 0x458   : > { %3664 = vst.msk [vmem:[%s6159_s21 + $0x48] sm:$0xff] %vm1590_vm0, %v3632_v24  ;;  %v4467_v8 = vpop.f32.mrb[164].mxu0 }
 0x459   : > { %v4468_v53 = vpop.f32.mrb[165].mxu0 }
 0x45a   : > { %v4469_v39 = vadd.f32 %v4468_v53, %v4467_v8  ;;  %v4470_v55 = vpop.f32.mrb[166].mxu0  ;;  %v5059_v8 = vpop.eup %5058 }
 0x45b   : > { %v4471_v60 = vpop.f32.mrb[167].mxu0 }
 0x45c   : > { %v3633_v11 = vmul.f32 %v5039_v44, %v4469_v39  ;;  %v4472_v0 = vadd.f32 %v4471_v60, %v4470_v55  ;;  %v5061_v44 = vpop.eup %5060  ;;  %v3360_v60 = vpop.xlane.xlu0 %3359 }
 0x45d   : > { %5066 = vrcp.f32 %v3360_v60 }
 0x45e   : > { %3665 = vst.msk [vmem:[%s6159_s21 + $0x50] sm:$0xff] %vm1590_vm0, %v3633_v11  ;;  %v3634_v59 = vmul.f32 %v5041_v13, %v4472_v0  ;;  %v3363_v0 = vpop.xlane.xlu1 %3362 }
 0x45f   : > { %5068 = vrcp.f32 %v3363_v0 }
 0x460   : > { %3666 = vst.msk [vmem:[%s6159_s21 + $0x58] sm:$0xff] %vm1590_vm0, %v3634_v59  ;;  %v4473_v18 = vpop.f32.mrb[168].mxu0 }
 0x461   : > { %v4474_v31 = vpop.f32.mrb[169].mxu0 }
 0x462   : > { %v4475_v38 = vadd.f32 %v4474_v31, %v4473_v18  ;;  %v4476_v51 = vpop.f32.mrb[170].mxu0  ;;  %v5063_v18 = vpop.eup %5062 }
 0x463   : > { %v4477_v63 = vpop.f32.mrb[171].mxu0 }
 0x464   : > { %v3635_v6 = vmul.f32 %v5043_v19, %v4475_v38  ;;  %v4478_v48 = vadd.f32 %v4477_v63, %v4476_v51  ;;  %v5065_v19 = vpop.eup %5064  ;;  %v3366_v63 = vpop.xlane.xlu0 %3365 }
 0x465   : > { %5070 = vrcp.f32 %v3366_v63 }
 0x466   : > { %3667 = vst.msk [vmem:[%s6159_s21 + $0x60] sm:$0xff] %vm1590_vm0, %v3635_v6  ;;  %v3636_v2 = vmul.f32 %v5045_v42, %v4478_v48  ;;  %v3369_v48 = vpop.xlane.xlu1 %3368 }
 0x467   : > { %5072 = vrcp.f32 %v3369_v48 }
 0x468   : > { %3668 = vst.msk [vmem:[%s6159_s21 + $0x68] sm:$0xff] %vm1590_vm0, %v3636_v2  ;;  %v4479_v10 = vpop.f32.mrb[172].mxu0 }
 0x469   : > { %v4480_v29 = vpop.f32.mrb[173].mxu0 }
 0x46a   : > { %v4481_v61 = vadd.f32 %v4480_v29, %v4479_v10  ;;  %v4482_v62 = vpop.f32.mrb[174].mxu0  ;;  %v5067_v29 = vpop.eup %5066 }
 0x46b   : > { %v4483_v58 = vpop.f32.mrb[175].mxu0 }
 0x46c   : > { %v3637_v25 = vmul.f32 %v5047_v28, %v4481_v61  ;;  %v4484_v4 = vadd.f32 %v4483_v58, %v4482_v62  ;;  %v5069_v28 = vpop.eup %5068  ;;  %v3372_v58 = vpop.xlane.xlu0 %3371 }
 0x46d   : > { %5074 = vrcp.f32 %v3372_v58 }
 0x46e   : > { %3669 = vst.msk [vmem:[%s6159_s21 + $0x70] sm:$0xff] %vm1590_vm0, %v3637_v25  ;;  %v3638_v9 = vmul.f32 %v5049_v45, %v4484_v4  ;;  %v3375_v4 = vpop.xlane.xlu1 %3374 }
 0x46f   : > { %5076 = vrcp.f32 %v3375_v4 }
 0x470   : > { %3670 = vst.msk [vmem:[%s6159_s21 + $0x78] sm:$0xff] %vm1590_vm0, %v3638_v9 }
 0x472   : > { %v4485_v1 = vpop.f32.mrb[176].mxu0 }
 0x473   : > { %v4486_v16 = vpop.f32.mrb[177].mxu0 }
 0x474   : > { %v4487_v33 = vadd.f32 %v4486_v16, %v4485_v1  ;;  %v4488_v54 = vpop.f32.mrb[178].mxu0  ;;  %v5071_v1 = vpop.eup %5070 }
 0x475   : > { %v4489_v22 = vpop.f32.mrb[179].mxu0 }
 0x476   : > { %v3639_v41 = vmul.f32 %v5051_v46, %v4487_v33  ;;  %v4490_v14 = vadd.f32 %v4489_v22, %v4488_v54  ;;  %v5073_v46 = vpop.eup %5072  ;;  %v3378_v22 = vpop.xlane.xlu0 %3377 }
 0x477   : > { %5078 = vrcp.f32 %v3378_v22 }
 0x478   : > { %3671 = vst.msk [vmem:[%s6159_s21 + $0x80] sm:$0xff] %vm1590_vm0, %v3639_v41  ;;  %v3640_v40 = vmul.f32 %v5053_v3, %v4490_v14  ;;  %v3381_v14 = vpop.xlane.xlu1 %3380 }
 0x479   : > { %5080 = vrcp.f32 %v3381_v14 }
 0x47a   : > { %3672 = vst.msk [vmem:[%s6159_s21 + $0x88] sm:$0xff] %vm1590_vm0, %v3640_v40  ;;  %v4491_v20 = vpop.f32.mrb[180].mxu0 }
 0x47b   : > { %v4492_v35 = vpop.f32.mrb[181].mxu0 }
 0x47c   : > { %v4493_v5 = vadd.f32 %v4492_v35, %v4491_v20  ;;  %v4494_v15 = vpop.f32.mrb[182].mxu0  ;;  %v5075_v20 = vpop.eup %5074 }
 0x47d   : > { %v4495_v32 = vpop.f32.mrb[183].mxu0 }
 0x47e   : > { %v3641_v21 = vmul.f32 %v5055_v27, %v4493_v5  ;;  %v4496_v56 = vadd.f32 %v4495_v32, %v4494_v15  ;;  %v5077_v27 = vpop.eup %5076 }
 0x480   : > { %3673 = vst.msk [vmem:[%s6159_s21 + $0x90] sm:$0xff] %vm1590_vm0, %v3641_v21  ;;  %v3642_v12 = vmul.f32 %v5057_v52, %v4496_v56 }
 0x482   : > { %3674 = vst.msk [vmem:[%s6159_s21 + $0x98] sm:$0xff] %vm1590_vm0, %v3642_v12  ;;  %v4497_v17 = vpop.f32.mrb[184].mxu0  ;;  %v5079_v12 = vpop.eup %5078 }
 0x483   : > { %v4498_v34 = vpop.f32.mrb[185].mxu0 }
 0x484   : > { %v4499_v24 = vadd.f32 %v4498_v34, %v4497_v17  ;;  %v4500_v43 = vpop.f32.mrb[186].mxu0 }
 0x485   : > { %v4501_v53 = vpop.f32.mrb[187].mxu0 }
 0x486   : > { %v3643_v39 = vmul.f32 %v5059_v8, %v4499_v24  ;;  %v4502_v55 = vadd.f32 %v4501_v53, %v4500_v43  ;;  %v5081_v24 = vpop.eup %5080 }
 0x488   : > { %3675 = vst.msk [vmem:[%s6159_s21 + $0xa0] sm:$0xff] %vm1590_vm0, %v3643_v39  ;;  %v3644_v11 = vmul.f32 %v5061_v44, %v4502_v55 }
 0x48a   : > { %3676 = vst.msk [vmem:[%s6159_s21 + $0xa8] sm:$0xff] %vm1590_vm0, %v3644_v11  ;;  %v4503_v13 = vpop.f32.mrb[188].mxu0 }
 0x48b   : > { %v4504_v49 = vpop.f32.mrb[189].mxu0 }
 0x48c   : > { %v4505_v59 = vadd.f32 %v4504_v49, %v4503_v13  ;;  %v4506_v47 = vpop.f32.mrb[190].mxu0 }
 0x48d   : > { %v4507_v31 = vpop.f32.mrb[191].mxu0 }
 0x48e   : > { %v3645_v38 = vmul.f32 %v5063_v18, %v4505_v59  ;;  %v4508_v51 = vadd.f32 %v4507_v31, %v4506_v47 }
 0x490   : > { %3677 = vst.msk [vmem:[%s6159_s21 + $0xb0] sm:$0xff] %vm1590_vm0, %v3645_v38  ;;  %v3646_v6 = vmul.f32 %v5065_v19, %v4508_v51 }
 0x492   : > { %3678 = vst.msk [vmem:[%s6159_s21 + $0xb8] sm:$0xff] %vm1590_vm0, %v3646_v6  ;;  %v4509_v42 = vpop.f32.mrb[192].mxu0 }
 0x493   : > { %v4510_v2 = vpop.f32.mrb[193].mxu0 }
 0x494   : > { %v4511_v30 = vadd.f32 %v4510_v2, %v4509_v42  ;;  %v4512_v10 = vpop.f32.mrb[194].mxu0 }
 0x495   : > { %v4513_v57 = vpop.f32.mrb[195].mxu0 }
 0x496   : > { %v3647_v61 = vmul.f32 %v5067_v29, %v4511_v30  ;;  %v4514_v62 = vadd.f32 %v4513_v57, %v4512_v10 }
 0x498   : > { %3679 = vst.msk [vmem:[%s6159_s21 + $0xc0] sm:$0xff] %vm1590_vm0, %v3647_v61  ;;  %v3648_v25 = vmul.f32 %v5069_v28, %v4514_v62 }
 0x49a   : > { %3680 = vst.msk [vmem:[%s6159_s21 + $0xc8] sm:$0xff] %vm1590_vm0, %v3648_v25  ;;  %v4515_v45 = vpop.f32.mrb[196].mxu0 }
 0x49b   : > { %v4516_v9 = vpop.f32.mrb[197].mxu0 }
 0x49c   : > { %v4517_v7 = vadd.f32 %v4516_v9, %v4515_v45  ;;  %v4518_v37 = vpop.f32.mrb[198].mxu0 }
 0x49d   : > { %v4519_v16 = vpop.f32.mrb[199].mxu0 }
 0x49e   : > { %v3649_v33 = vmul.f32 %v5071_v1, %v4517_v7  ;;  %v4520_v54 = vadd.f32 %v4519_v16, %v4518_v37 }
 0x4a0   : > { %3681 = vst.msk [vmem:[%s6159_s21 + $0xd0] sm:$0xff] %vm1590_vm0, %v3649_v33  ;;  %v3650_v41 = vmul.f32 %v5073_v46, %v4520_v54 }
 0x4a2   : > { %3682 = vst.msk [vmem:[%s6159_s21 + $0xd8] sm:$0xff] %vm1590_vm0, %v3650_v41  ;;  %v4521_v3 = vpop.f32.mrb[200].mxu0 }
 0x4a3   : > { %v4522_v26 = vpop.f32.mrb[201].mxu0 }
 0x4a4   : > { %v4523_v40 = vadd.f32 %v4522_v26, %v4521_v3  ;;  %v4524_v50 = vpop.f32.mrb[202].mxu0 }
 0x4a5   : > { %v4525_v35 = vpop.f32.mrb[203].mxu0 }
 0x4a6   : > { %v3651_v5 = vmul.f32 %v5075_v20, %v4523_v40  ;;  %v4526_v15 = vadd.f32 %v4525_v35, %v4524_v50 }
 0x4a8   : > { %3683 = vst.msk [vmem:[%s6159_s21 + $0xe0] sm:$0xff] %vm1590_vm0, %v3651_v5  ;;  %v3652_v32 = vmul.f32 %v5077_v27, %v4526_v15 }
 0x4aa   : > { %3684 = vst.msk [vmem:[%s6159_s21 + $0xe8] sm:$0xff] %vm1590_vm0, %v3652_v32  ;;  %v4527_v21 = vpop.f32.mrb[204].mxu0 }
 0x4ab   : > { %v4528_v56 = vpop.f32.mrb[205].mxu0 }
 0x4ac   : > { %v4529_v52 = vadd.f32 %v4528_v56, %v4527_v21  ;;  %v4530_v23 = vpop.f32.mrb[206].mxu0 }
 0x4ad   : > { %v4531_v36 = vpop.f32.mrb[207].mxu0 }
 0x4ae   : > { %v3653_v17 = vmul.f32 %v5079_v12, %v4529_v52  ;;  %v4532_v34 = vadd.f32 %v4531_v36, %v4530_v23 }
 0x4b0   : > { %3685 = vst.msk [vmem:[%s6159_s21 + $0xf0] sm:$0xff] %vm1590_vm0, %v3653_v17  ;;  %v3654_v43 = vmul.f32 %v5081_v24, %v4532_v34 }
 0x4b2   : > { %3686 = vst.msk [vmem:[%s6159_s21 + $0xf8] sm:$0xff] %vm1590_vm0, %v3654_v43 }
 0x4b3 PF: > { %s14_s17 = sadd.s32 1, %s5104_s17   ;;  %s6239_s15 = smov %s5100_s16 }
 0x4b4   : > { %p11_p5 = scmp.ge.s32.totalorder %s14_s17, 4   ;;  %s6240_s16 = smov %s6242_s18 }
 0x4b6   :  { %13 = sbr.rel (!%p11_p5) target bundleno = 2 (0x2), region = 71 }

</bundles_post_ra>
